<compile_context>
chip_gen: v5e
topology: v5e:2x2
jax: 0.10.0
libtpu: 0.0.40
codegen_flags: <defaults>
</compile_context>

<pallas_src>
import functools

import jax
import jax.numpy as jnp
from jax import lax
from jax.experimental import pallas as pl
from jax.experimental.pallas import tpu as pltpu


def _bottleneck_kernel(x_ref, w1_ref, w2_ref, w3_ref, b1_ref, b2_ref, b3_ref,
                       out_ref, pad_ref, *, dilation, tile_h, img_h, kx_fused):
    # x_ref:   (H, W, Cin)        per-batch NHWC input (any float dtype)
    # w1_ref:  (Cin, P)           bf16 conv1 1x1 weights * bn1 scale
    # w2_ref:  (3, 3P, P)         bf16 conv2 weights * bn2 scale, [ky][kx*P+cin]
    # w3_ref:  (P, 4P)            bf16 conv3 1x1 weights * bn3 scale
    # b*_ref:  (1, C)             f32 folded BN shifts
    # out_ref: (TH, W, 4P)        output row tile
    # pad_ref: (TH+2d, W+2d, P)   bf16 scratch: padded conv2 input
    d = dilation
    TH = tile_h
    H = img_h
    HP = TH + 2 * d
    W = x_ref.shape[1]
    Cin = x_ref.shape[2]
    P = w1_ref.shape[1]
    Cout = w3_ref.shape[1]

    i = pl.program_id(1)
    n_tiles = pl.num_programs(1)
    row0 = pl.multiple_of(i * TH, TH)              # first image row of tile

    # ---- haloed input slab via clamped row reads (no HBM pre-padding) ------
    top = jnp.maximum(row0 - d, 0)                 # clamped top-halo start
    bot = jnp.minimum(row0 + TH, H - d)            # clamped bottom-halo start
    mid = x_ref[pl.ds(row0, TH), :, :]             # (TH, W, Cin)
    xs = jnp.concatenate(
        [x_ref[pl.ds(top, d), :, :], mid, x_ref[pl.ds(bot, d), :, :]],
        axis=0).astype(jnp.bfloat16)               # (HP, W, Cin)

    # ---- conv1 (1x1) + folded bn1 + relu over the haloed slab ---------------
    h = jnp.dot(xs.reshape(HP * W, Cin), w1_ref[...],
                preferred_element_type=jnp.float32)              # (HP*W, P)
    h = jnp.maximum(h + b1_ref[...], 0.0).reshape(HP, W, P)

    # ---- stage the W-padded conv2 input in VMEM (bf16) ----------------------
    zero_strip = jnp.zeros((HP, d, P), pad_ref.dtype)
    pad_ref[:, 0:d, :] = zero_strip                # W halo strips (cheap)
    pad_ref[:, d + W:, :] = zero_strip
    pad_ref[:, d:d + W, :] = h.astype(pad_ref.dtype)

    # Out-of-image halo rows are conv2 zero padding: overwrite them only on
    # the boundary row tiles (clamped reads above put in-range garbage there).
    zero_rows = jnp.zeros((d, W + 2 * d, P), pad_ref.dtype)

    @pl.when(i == 0)
    def _():
        pad_ref[0:d, :, :] = zero_rows

    @pl.when(i == n_tiles - 1)
    def _():
        pad_ref[HP - d:, :, :] = zero_rows

    # ---- conv2 (3x3, dilation d, padding d) + folded bn2 + relu -------------
    if kx_fused:
        # Lane-concatenated kx expansion once per step, then 3 matmuls of
        # K = 3P; the per-ky slice is along the leading H axis (free).
        kxbuf = jnp.concatenate(
            [pad_ref[:, kx * d:kx * d + W, :] for kx in range(3)],
            axis=-1)                                             # (HP, W, 3P)
        acc = None
        for ky in range(3):
            win = kxbuf[ky * d:ky * d + TH].reshape(TH * W, 3 * P)
            part = jnp.dot(win, w2_ref[ky],
                           preferred_element_type=jnp.float32)
            acc = part if acc is None else acc + part
    else:
        # v5e / unaligned-P fallback: 9 shifted matmuls with K = P.
        acc = None
        for ky in range(3):
            wk = w2_ref[ky]                                      # (3P, P)
            for kx in range(3):
                win = pad_ref[ky * d:ky * d + TH, kx * d:kx * d + W, :]
                part = jnp.dot(win.reshape(TH * W, P),
                               wk[kx * P:(kx + 1) * P, :],
                               preferred_element_type=jnp.float32)
                acc = part if acc is None else acc + part
    h2 = jnp.maximum(acc + b2_ref[...], 0.0)                     # (TH*W, P)

    # ---- conv3 (1x1) + folded bn3 + relu ------------------------------------
    h3 = jnp.dot(h2.astype(jnp.bfloat16), w3_ref[...],
                 preferred_element_type=jnp.float32)             # (TH*W, 4P)
    h3 = jnp.maximum(h3 + b3_ref[...], 0.0)

    # ---- residual add + final relu -------------------------------------------
    res = mid.astype(jnp.float32).reshape(TH * W, Cout)
    out = jnp.maximum(h3 + res, 0.0)
    out_ref[...] = out.reshape(TH, W, Cout).astype(out_ref.dtype)


def _pick_tile_h(H, W, Cin, P, Cout, d, target_m, budget_bytes):
    """Largest-M row tile that divides H, is >= dilation, and fits the budget."""
    divisors = [t for t in range(1, H + 1) if H % t == 0 and t >= d] or [H]

    def step_bytes(t):
        hp = t + 2 * d
        m = t * W
        return (hp * (W + 2 * d) * P * 2                 # pad_ref (bf16)
                + hp * W * (Cin * 2 + P * 4 + 3 * P * 2)  # xs + conv1 out + kxbuf
                + m * (P * 4 + 3 * Cout * 4)              # h2 + (h3, res, out) f32
                + 2 * m * Cout * 2)                       # double-buffered out tile

    feasible = [t for t in divisors if step_bytes(t) <= budget_bytes] or [divisors[0]]
    meeting = [t for t in feasible if t * W >= target_m]
    return min(meeting) if meeting else max(feasible)


def bottleneck_forward(x_nhwc, params, *, dilation=1, tile_h=None,
                       out_dtype=jnp.bfloat16):
    """Fused Bottleneck forward.  NHWC in (bf16 recommended), NHWC out.

    Only the stride=1 / downsample=None constructor-default path is fused.
    """
    # TODO(synk): the strided conv1 + downsample branch is not implemented.
    N, H, W, Cin = x_nhwc.shape
    w1, w2, w3 = params["w1"], params["w2"], params["w3"]
    P = w1.shape[1]
    Cout = w3.shape[1]
    assert Cout == Cin, "downsample=None requires inplanes == 4 * planes"
    d = dilation

    # Fold frozen-BN scales into the conv weights; bf16 MXU operands.
    w1f = (w1 * params["s1"]).astype(jnp.bfloat16)                      # (Cin, P)
    w2f = (w2 * params["s2"][0]).reshape(3, 3 * P, P).astype(jnp.bfloat16)
    w3f = (w3 * params["s3"]).astype(jnp.bfloat16)                      # (P, 4P)
    b1 = params["b1"].astype(jnp.float32)
    b2 = params["b2"].astype(jnp.float32)
    b3 = params["b3"].astype(jnp.float32)

    # --- generation-aware knobs ----------------------------------------------
    try:
        kind = jax.devices()[0].device_kind.lower()
    except Exception:
        kind = ""
    is_v5e = any(s in kind for s in ("v5 lite", "v5e", "v5litepod"))
    try:
        info = pltpu.get_tpu_info()
        vmem_cap = int(getattr(info, "vmem_capacity_bytes", 64 * 2**20))
    except Exception:
        vmem_cap = 64 * 2**20                       # assume the smallest (v7x)
    vmem_limit = max(int(0.6 * vmem_cap), 32 * 2**20)
    vmem_limit = min(vmem_limit, 96 * 2**20)

    x_block_bytes = H * W * Cin * jnp.dtype(x_nhwc.dtype).itemsize
    weight_bytes = (w1f.size + w2f.size + w3f.size) * 2 + (b1.size + b2.size + b3.size) * 4
    budget = max(vmem_limit - 2 * x_block_bytes - 2 * weight_bytes - (8 << 20),
                 4 << 20)

    target_m = 256 if is_v5e else 512               # rows for the MXU M dim
    if tile_h is None:
        tile_h = _pick_tile_h(H, W, Cin, P, Cout, d, target_m, budget)
    TH = tile_h
    assert H % TH == 0 and TH >= d, (H, TH, d)

    # Fused kx-expansion wants the lane concat 128-aligned and a >=256 MXU;
    # on v5e the 128-wide MXU is already saturated by K = P taps.
    kx_fused = (P % 128 == 0) and not is_v5e

    kernel = functools.partial(_bottleneck_kernel, dilation=d, tile_h=TH,
                               img_h=H, kx_fused=kx_fused)

    def const_spec(a):
        return pl.BlockSpec(a.shape, lambda n, i: (0,) * a.ndim)

    out = pl.pallas_call(
        kernel,
        out_shape=jax.ShapeDtypeStruct((N, H, W, Cout), out_dtype),
        grid=(N, H // TH),
        in_specs=[
            # Per-batch image stays VMEM-resident across the row-tile axis.
            # TODO(synk): for very large PSPNet feature maps on v7x, switch to
            # a haloed per-row-tile block (pl.Element offsets on H) so
            # per-step VMEM stays bounded.
            pl.BlockSpec((None, H, W, Cin), lambda n, i: (n, 0, 0, 0)),
            const_spec(w1f), const_spec(w2f), const_spec(w3f),
            const_spec(b1), const_spec(b2), const_spec(b3),
        ],
        out_specs=pl.BlockSpec((None, TH, W, Cout), lambda n, i: (n, i, 0, 0)),
        scratch_shapes=[pltpu.VMEM((TH + 2 * d, W + 2 * d, P), jnp.bfloat16)],
        compiler_params=pltpu.CompilerParams(
            dimension_semantics=("parallel", "parallel"),
            vmem_limit_bytes=vmem_limit),
    )(x_nhwc, w1f, w2f, w3f, b1, b2, b3)
    return out


def init_params(key, inplanes, planes, dtype=jnp.float32):
    """Deterministic synthetic params matching the module's __init__ shapes."""
    eps = 1e-5
    ks = jax.random.split(key, 15)

    # PyTorch conv weight layouts (OIHW), then converted for the NHWC kernel.
    w1_t = 0.1 * jax.random.normal(ks[0], (planes, inplanes, 1, 1), dtype)
    w2_t = 0.1 * jax.random.normal(ks[1], (planes, planes, 3, 3), dtype)
    w3_t = 0.1 * jax.random.normal(ks[2], (planes * 4, planes, 1, 1), dtype)

    def bn(kg, kb, km, kv, c):
        gamma = 1.0 + 0.1 * jax.random.normal(kg, (c,), dtype)
        beta = 0.1 * jax.random.normal(kb, (c,), dtype)
        mean = 0.1 * jax.random.normal(km, (c,), dtype)
        var = jax.random.uniform(kv, (c,), dtype, 0.5, 1.5)
        scale = gamma / jnp.sqrt(var + eps)
        shift = beta - mean * scale
        return scale.reshape(1, c), shift.reshape(1, c)

    s1, b1 = bn(ks[3], ks[4], ks[5], ks[6], planes)
    s2, b2 = bn(ks[7], ks[8], ks[9], ks[10], planes)
    s3, b3 = bn(ks[11], ks[12], ks[13], ks[14], planes * 4)

    return dict(
        w1=jnp.transpose(w1_t[:, :, 0, 0], (1, 0)),          # (Cin, P)
        w2=jnp.transpose(w2_t, (2, 3, 1, 0)),                 # (3, 3, P, P) HWIO
        w3=jnp.transpose(w3_t[:, :, 0, 0], (1, 0)),           # (P, 4P)
        s1=s1, b1=b1, s2=s2, b2=b2, s3=s3, b3=b3,
    )


def reference_forward(x_nhwc, p, *, dilation=1):
    """Pure-JAX NHWC reference using the same folded-BN / bf16-matmul recipe."""
    xb = x_nhwc.astype(jnp.bfloat16)
    w1f = (p["w1"] * p["s1"]).astype(jnp.bfloat16)
    w2f = (p["w2"] * p["s2"][0]).astype(jnp.bfloat16)        # (3,3,P,P) HWIO
    w3f = (p["w3"] * p["s3"]).astype(jnp.bfloat16)

    h = jnp.einsum("nhwc,cp->nhwp", xb, w1f,
                   preferred_element_type=jnp.float32)
    h = jnp.maximum(h + p["b1"], 0.0)
    h2 = lax.conv_general_dilated(
        h.astype(jnp.bfloat16), w2f, window_strides=(1, 1),
        padding=[(dilation, dilation), (dilation, dilation)],
        rhs_dilation=(dilation, dilation),
        dimension_numbers=("NHWC", "HWIO", "NHWC"),
        preferred_element_type=jnp.float32)
    h2 = jnp.maximum(h2 + p["b2"], 0.0)
    h3 = jnp.einsum("nhwp,pq->nhwq", h2.astype(jnp.bfloat16), w3f,
                    preferred_element_type=jnp.float32)
    h3 = jnp.maximum(h3 + p["b3"], 0.0)          # ReLU after bn3 (per module)
    out = jnp.maximum(h3 + xb.astype(jnp.float32), 0.0)
    return out                                    # NHWC f32


if __name__ == "__main__":
    key = jax.random.PRNGKey(0)
    kx_, kp = jax.random.split(key)

    # inplanes == 4 * planes so the (downsample=None) residual add is valid.
    # planes = 128 keeps the matmul N/K dims and the kx lane-concat aligned.
    inplanes, planes = 512, 128
    N, H, W = 2, 16, 16
    dilation = 2

    x_nchw = jax.random.normal(kx_, (N, inplanes, H, W), jnp.float32)
    params = init_params(kp, inplanes, planes)

    # Chained-bottleneck activation layout: NHWC, bf16 (single upfront cast,
    # done once per network rather than per block).
    x = jnp.transpose(x_nchw, (0, 2, 3, 1)).astype(jnp.bfloat16)

    out = bottleneck_forward(x, params, dilation=dilation)
    out = jax.block_until_ready(out)
    assert out.shape == (N, H, W, planes * 4), out.shape

    ref = reference_forward(x, params, dilation=dilation)
    out_f32 = out.astype(jnp.float32)
    ref_f32 = ref.astype(jnp.bfloat16).astype(jnp.float32)   # fair: bf16 output
    if not jnp.allclose(out_f32, ref_f32, atol=5e-2, rtol=5e-2):
        max_err = float(jnp.max(jnp.abs(out_f32 - ref_f32)))
        raise AssertionError(f"Pallas output mismatch, max abs err = {max_err}")

    print("KERNEL_OK")
</pallas_src>

<mosaic_0001>
module attributes {stable_mosaic.version = 11 : i64} {
  func.func @_bottleneck_kernel(%arg0: i32, %arg1: i32, %arg2: memref<1x16x16x512xbf16, #tpu.memory_space<vmem>>, %arg3: memref<512x128xbf16, #tpu.memory_space<vmem>>, %arg4: memref<3x384x128xbf16, #tpu.memory_space<vmem>>, %arg5: memref<128x512xbf16, #tpu.memory_space<vmem>>, %arg6: memref<1x128xf32, #tpu.memory_space<vmem>>, %arg7: memref<1x128xf32, #tpu.memory_space<vmem>>, %arg8: memref<1x512xf32, #tpu.memory_space<vmem>>, %arg9: memref<1x16x16x512xbf16, #tpu.memory_space<vmem>>, %arg10: memref<20x20x128xbf16, #tpu.memory_space<vmem>>) attributes {dimension_semantics = [#tpu.dimension_semantics<parallel>, #tpu.dimension_semantics<parallel>], iteration_bounds = array<i64: 2, 1>, scalar_prefetch = 0 : i64, scratch_operands = 1 : i64, tpu.core_type = #tpu.core_type<tc>, window_params = [{transform_indices = @transform_0, window_bounds = array<i64: 1, 16, 16, 512>}, {pipeline_mode = #tpu.pipeline_mode<synchronous>, transform_indices = @transform_1, window_bounds = array<i64: 512, 128>}, {pipeline_mode = #tpu.pipeline_mode<synchronous>, transform_indices = @transform_2, window_bounds = array<i64: 3, 384, 128>}, {pipeline_mode = #tpu.pipeline_mode<synchronous>, transform_indices = @transform_3, window_bounds = array<i64: 128, 512>}, {pipeline_mode = #tpu.pipeline_mode<synchronous>, transform_indices = @transform_4, window_bounds = array<i64: 1, 128>}, {pipeline_mode = #tpu.pipeline_mode<synchronous>, transform_indices = @transform_5, window_bounds = array<i64: 1, 128>}, {pipeline_mode = #tpu.pipeline_mode<synchronous>, transform_indices = @transform_6, window_bounds = array<i64: 1, 512>}, {transform_indices = @transform_7, window_bounds = array<i64: 1, 16, 16, 512>}]} {
    %c16_i32 = arith.constant 16 : i32
    %0 = arith.muli %arg1, %c16_i32 : i32
    %1 = tpu.assume_multiple %0, 16 : i32
    %c2_i32 = arith.constant 2 : i32
    %2 = arith.subi %1, %c2_i32 : i32
    %c0_i32 = arith.constant 0 : i32
    %3 = arith.maxsi %2, %c0_i32 : i32
    %c16_i32_0 = arith.constant 16 : i32
    %4 = arith.addi %1, %c16_i32_0 : i32
    %c14_i32 = arith.constant 14 : i32
    %5 = arith.minsi %4, %c14_i32 : i32
    %c0 = arith.constant 0 : index
    %6 = arith.index_cast %1 : i32 to index
    %c0_1 = arith.constant 0 : index
    %c0_2 = arith.constant 0 : index
    %7 = vector.load %arg2[%c0, %6, %c0_1, %c0_2] : memref<1x16x16x512xbf16, #tpu.memory_space<vmem>>, vector<1x16x16x512xbf16>
    %8 = vector.shape_cast %7 : vector<1x16x16x512xbf16> to vector<16x16x512xbf16>
    %c0_3 = arith.constant 0 : index
    %9 = arith.index_cast %3 : i32 to index
    %c0_4 = arith.constant 0 : index
    %c0_5 = arith.constant 0 : index
    %10 = vector.load %arg2[%c0_3, %9, %c0_4, %c0_5] : memref<1x16x16x512xbf16, #tpu.memory_space<vmem>>, vector<1x2x16x512xbf16>
    %11 = vector.shape_cast %10 : vector<1x2x16x512xbf16> to vector<2x16x512xbf16>
    %c0_6 = arith.constant 0 : index
    %12 = arith.index_cast %5 : i32 to index
    %c0_7 = arith.constant 0 : index
    %c0_8 = arith.constant 0 : index
    %13 = vector.load %arg2[%c0_6, %12, %c0_7, %c0_8] : memref<1x16x16x512xbf16, #tpu.memory_space<vmem>>, vector<1x2x16x512xbf16>
    %14 = vector.shape_cast %13 : vector<1x2x16x512xbf16> to vector<2x16x512xbf16>
    %15 = tpu.concatenate %11, %8, %14 in 0 : vector<2x16x512xbf16>, vector<16x16x512xbf16>, vector<2x16x512xbf16> -> vector<20x16x512xbf16>
    %16 = vector.shape_cast %15 : vector<20x16x512xbf16> to vector<320x512xbf16>
    %c0_9 = arith.constant 0 : index
    %c0_10 = arith.constant 0 : index
    %17 = vector.load %arg3[%c0_9, %c0_10] : memref<512x128xbf16, #tpu.memory_space<vmem>>, vector<512x128xbf16>
    %cst = arith.constant dense<0.000000e+00> : vector<320x128xf32>
    %18 = tpu.matmul %16, %17, %cst {dimension_numbers = #tpu.dot_dimension_numbers<[1], [0], [0], [1], [0, 0, 1, 1], [], []>} : vector<320x512xbf16>, vector<512x128xbf16>, vector<320x128xf32> -> vector<320x128xf32>
    %c0_11 = arith.constant 0 : index
    %c0_12 = arith.constant 0 : index
    %19 = vector.load %arg6[%c0_11, %c0_12] : memref<1x128xf32, #tpu.memory_space<vmem>>, vector<1x128xf32>
    %20 = vector.broadcast %19 : vector<1x128xf32> to vector<320x128xf32>
    %21 = arith.addf %18, %20 : vector<320x128xf32>
    %cst_13 = arith.constant 0.000000e+00 : f32
    %22 = vector.broadcast %cst_13 : f32 to vector<320x128xf32>
    %23 = arith.maximumf %21, %22 : vector<320x128xf32>
    %24 = vector.shape_cast %23 : vector<320x128xf32> to vector<20x16x128xf32>
    %cst_14 = arith.constant 0.000000e+00 : bf16
    %25 = vector.broadcast %cst_14 : bf16 to vector<20x2x128xbf16>
    %c0_15 = arith.constant 0 : index
    %c0_16 = arith.constant 0 : index
    %c0_17 = arith.constant 0 : index
    %26 = vector.load %arg10[%c0_15, %c0_16, %c0_17] : memref<20x20x128xbf16, #tpu.memory_space<vmem>>, vector<20x2x128xbf16>
    tpu.vector_store %arg10[%c0_15, %c0_16, %c0_17], %25 {strides = array<i32>} : memref<20x20x128xbf16, #tpu.memory_space<vmem>>, vector<20x2x128xbf16>,
    %c0_18 = arith.constant 0 : index
    %c18 = arith.constant 18 : index
    %c0_19 = arith.constant 0 : index
    %27 = vector.load %arg10[%c0_18, %c18, %c0_19] : memref<20x20x128xbf16, #tpu.memory_space<vmem>>, vector<20x2x128xbf16>
    tpu.vector_store %arg10[%c0_18, %c18, %c0_19], %25 {strides = array<i32>} : memref<20x20x128xbf16, #tpu.memory_space<vmem>>, vector<20x2x128xbf16>,
    %28 = arith.truncf %24 : vector<20x16x128xf32> to vector<20x16x128xbf16>
    %c0_20 = arith.constant 0 : index
    %c2 = arith.constant 2 : index
    %c0_21 = arith.constant 0 : index
    %29 = vector.load %arg10[%c0_20, %c2, %c0_21] : memref<20x20x128xbf16, #tpu.memory_space<vmem>>, vector<20x16x128xbf16>
    tpu.vector_store %arg10[%c0_20, %c2, %c0_21], %28 {strides = array<i32>} : memref<20x20x128xbf16, #tpu.memory_space<vmem>>, vector<20x16x128xbf16>,
    %cst_22 = arith.constant 0.000000e+00 : bf16
    %30 = vector.broadcast %cst_22 : bf16 to vector<2x20x128xbf16>
    %c0_i32_23 = arith.constant 0 : i32
    %31 = arith.cmpi eq, %arg1, %c0_i32_23 : i32
    %32 = arith.extui %31 : i1 to i32
    %c0_i32_24 = arith.constant 0 : i32
    %33 = arith.cmpi ne, %32, %c0_i32_24 : i32
    scf.if %33 {
      %c0_60 = arith.constant 0 : index
      %c0_61 = arith.constant 0 : index
      %c0_62 = arith.constant 0 : index
      %81 = vector.load %arg10[%c0_60, %c0_61, %c0_62] : memref<20x20x128xbf16, #tpu.memory_space<vmem>>, vector<2x20x128xbf16>
      tpu.vector_store %arg10[%c0_60, %c0_61, %c0_62], %30 {strides = array<i32>} : memref<20x20x128xbf16, #tpu.memory_space<vmem>>, vector<2x20x128xbf16>,
    } else {
    }
    %c0_i32_25 = arith.constant 0 : i32
    %34 = arith.cmpi eq, %arg1, %c0_i32_25 : i32
    %35 = arith.extui %34 : i1 to i32
    %c0_i32_26 = arith.constant 0 : i32
    %36 = arith.cmpi ne, %35, %c0_i32_26 : i32
    scf.if %36 {
      %c18_60 = arith.constant 18 : index
      %c0_61 = arith.constant 0 : index
      %c0_62 = arith.constant 0 : index
      %81 = vector.load %arg10[%c18_60, %c0_61, %c0_62] : memref<20x20x128xbf16, #tpu.memory_space<vmem>>, vector<2x20x128xbf16>
      tpu.vector_store %arg10[%c18_60, %c0_61, %c0_62], %30 {strides = array<i32>} : memref<20x20x128xbf16, #tpu.memory_space<vmem>>, vector<2x20x128xbf16>,
    } else {
    }
    %c0_27 = arith.constant 0 : index
    %c0_28 = arith.constant 0 : index
    %c0_29 = arith.constant 0 : index
    %37 = vector.load %arg10[%c0_27, %c0_28, %c0_29] : memref<20x20x128xbf16, #tpu.memory_space<vmem>>, vector<20x16x128xbf16>
    %c0_30 = arith.constant 0 : index
    %c2_31 = arith.constant 2 : index
    %c0_32 = arith.constant 0 : index
    %38 = vector.load %arg10[%c0_30, %c2_31, %c0_32] : memref<20x20x128xbf16, #tpu.memory_space<vmem>>, vector<20x16x128xbf16>
    %c0_33 = arith.constant 0 : index
    %c4 = arith.constant 4 : index
    %c0_34 = arith.constant 0 : index
    %39 = vector.load %arg10[%c0_33, %c4, %c0_34] : memref<20x20x128xbf16, #tpu.memory_space<vmem>>, vector<20x16x128xbf16>
    %40 = tpu.concatenate %37, %38, %39 in 2 : vector<20x16x128xbf16>, vector<20x16x128xbf16>, vector<20x16x128xbf16> -> vector<20x16x384xbf16>
    %41 = vector.extract_strided_slice %40 {offsets = [0, 0, 0], sizes = [16, 16, 384], strides = [1, 1, 1]} : vector<20x16x384xbf16> to vector<16x16x384xbf16>
    %42 = vector.shape_cast %41 : vector<16x16x384xbf16> to vector<256x384xbf16>
    %c0_35 = arith.constant 0 : index
    %c0_36 = arith.constant 0 : index
    %c0_37 = arith.constant 0 : index
    %43 = vector.load %arg4[%c0_35, %c0_36, %c0_37] : memref<3x384x128xbf16, #tpu.memory_space<vmem>>, vector<1x384x128xbf16>
    %44 = vector.shape_cast %43 : vector<1x384x128xbf16> to vector<384x128xbf16>
    %cst_38 = arith.constant dense<0.000000e+00> : vector<256x128xf32>
    %45 = tpu.matmul %42, %44, %cst_38 {dimension_numbers = #tpu.dot_dimension_numbers<[1], [0], [0], [1], [0, 0, 1, 1], [], []>} : vector<256x384xbf16>, vector<384x128xbf16>, vector<256x128xf32> -> vector<256x128xf32>
    %46 = vector.extract_strided_slice %40 {offsets = [2, 0, 0], sizes = [16, 16, 384], strides = [1, 1, 1]} : vector<20x16x384xbf16> to vector<16x16x384xbf16>
    %47 = vector.shape_cast %46 : vector<16x16x384xbf16> to vector<256x384xbf16>
    %c1 = arith.constant 1 : index
    %c0_39 = arith.constant 0 : index
    %c0_40 = arith.constant 0 : index
    %48 = vector.load %arg4[%c1, %c0_39, %c0_40] : memref<3x384x128xbf16, #tpu.memory_space<vmem>>, vector<1x384x128xbf16>
    %49 = vector.shape_cast %48 : vector<1x384x128xbf16> to vector<384x128xbf16>
    %cst_41 = arith.constant dense<0.000000e+00> : vector<256x128xf32>
    %50 = tpu.matmul %47, %49, %cst_41 {dimension_numbers = #tpu.dot_dimension_numbers<[1], [0], [0], [1], [0, 0, 1, 1], [], []>} : vector<256x384xbf16>, vector<384x128xbf16>, vector<256x128xf32> -> vector<256x128xf32>
    %51 = arith.addf %45, %50 : vector<256x128xf32>
    %52 = vector.extract_strided_slice %40 {offsets = [4, 0, 0], sizes = [16, 16, 384], strides = [1, 1, 1]} : vector<20x16x384xbf16> to vector<16x16x384xbf16>
    %53 = vector.shape_cast %52 : vector<16x16x384xbf16> to vector<256x384xbf16>
    %c2_42 = arith.constant 2 : index
    %c0_43 = arith.constant 0 : index
    %c0_44 = arith.constant 0 : index
    %54 = vector.load %arg4[%c2_42, %c0_43, %c0_44] : memref<3x384x128xbf16, #tpu.memory_space<vmem>>, vector<1x384x128xbf16>
    %55 = vector.shape_cast %54 : vector<1x384x128xbf16> to vector<384x128xbf16>
    %cst_45 = arith.constant dense<0.000000e+00> : vector<256x128xf32>
    %56 = tpu.matmul %53, %55, %cst_45 {dimension_numbers = #tpu.dot_dimension_numbers<[1], [0], [0], [1], [0, 0, 1, 1], [], []>} : vector<256x384xbf16>, vector<384x128xbf16>, vector<256x128xf32> -> vector<256x128xf32>
    %57 = arith.addf %51, %56 : vector<256x128xf32>
    %c0_46 = arith.constant 0 : index
    %c0_47 = arith.constant 0 : index
    %58 = vector.load %arg7[%c0_46, %c0_47] : memref<1x128xf32, #tpu.memory_space<vmem>>, vector<1x128xf32>
    %59 = vector.broadcast %58 : vector<1x128xf32> to vector<256x128xf32>
    %60 = arith.addf %57, %59 : vector<256x128xf32>
    %cst_48 = arith.constant 0.000000e+00 : f32
    %61 = vector.broadcast %cst_48 : f32 to vector<256x128xf32>
    %62 = arith.maximumf %60, %61 : vector<256x128xf32>
    %63 = arith.truncf %62 : vector<256x128xf32> to vector<256x128xbf16>
    %c0_49 = arith.constant 0 : index
    %c0_50 = arith.constant 0 : index
    %64 = vector.load %arg5[%c0_49, %c0_50] : memref<128x512xbf16, #tpu.memory_space<vmem>>, vector<128x512xbf16>
    %cst_51 = arith.constant dense<0.000000e+00> : vector<256x512xf32>
    %65 = tpu.matmul %63, %64, %cst_51 {dimension_numbers = #tpu.dot_dimension_numbers<[1], [0], [0], [1], [0, 0, 1, 1], [], []>} : vector<256x128xbf16>, vector<128x512xbf16>, vector<256x512xf32> -> vector<256x512xf32>
    %c0_52 = arith.constant 0 : index
    %c0_53 = arith.constant 0 : index
    %66 = vector.load %arg8[%c0_52, %c0_53] : memref<1x512xf32, #tpu.memory_space<vmem>>, vector<1x512xf32>
    %67 = vector.broadcast %66 : vector<1x512xf32> to vector<256x512xf32>
    %68 = arith.addf %65, %67 : vector<256x512xf32>
    %cst_54 = arith.constant 0.000000e+00 : f32
    %69 = vector.broadcast %cst_54 : f32 to vector<256x512xf32>
    %70 = arith.maximumf %68, %69 : vector<256x512xf32>
    %71 = arith.extf %8 : vector<16x16x512xbf16> to vector<16x16x512xf32>
    %72 = vector.shape_cast %71 : vector<16x16x512xf32> to vector<256x512xf32>
    %73 = arith.addf %70, %72 : vector<256x512xf32>
    %cst_55 = arith.constant 0.000000e+00 : f32
    %74 = vector.broadcast %cst_55 : f32 to vector<256x512xf32>
    %75 = arith.maximumf %73, %74 : vector<256x512xf32>
    %76 = vector.shape_cast %75 : vector<256x512xf32> to vector<16x16x512xf32>
    %77 = arith.truncf %76 : vector<16x16x512xf32> to vector<16x16x512xbf16>
    %c0_56 = arith.constant 0 : index
    %c0_57 = arith.constant 0 : index
    %c0_58 = arith.constant 0 : index
    %c0_59 = arith.constant 0 : index
    %78 = vector.load %arg9[%c0_56, %c0_57, %c0_58, %c0_59] : memref<1x16x16x512xbf16, #tpu.memory_space<vmem>>, vector<1x16x16x512xbf16>
    %79 = vector.shape_cast %78 : vector<1x16x16x512xbf16> to vector<16x16x512xbf16>
    %80 = vector.shape_cast %77 : vector<16x16x512xbf16> to vector<1x16x16x512xbf16>
    tpu.vector_store %arg9[%c0_56, %c0_57, %c0_58, %c0_59], %80 {strides = array<i32>} : memref<1x16x16x512xbf16, #tpu.memory_space<vmem>>, vector<1x16x16x512xbf16>,
    return
  }
  func.func @transform_0(%arg0: i32, %arg1: i32) -> (i32, i32, i32, i32) {
    %c0_i32 = arith.constant 0 : i32
    %c0_i32_0 = arith.constant 0 : i32
    %c0_i32_1 = arith.constant 0 : i32
    %c0_i32_2 = arith.constant 0 : i32
    return %arg0, %c0_i32, %c0_i32_0, %c0_i32_1 : i32, i32, i32, i32
  }
  func.func @transform_1(%arg0: i32, %arg1: i32) -> (i32, i32) {
    %c0_i32 = arith.constant 0 : i32
    %c0_i32_0 = arith.constant 0 : i32
    %c0_i32_1 = arith.constant 0 : i32
    return %c0_i32, %c0_i32_0 : i32, i32
  }
  func.func @transform_2(%arg0: i32, %arg1: i32) -> (i32, i32, i32) {
    %c0_i32 = arith.constant 0 : i32
    %c0_i32_0 = arith.constant 0 : i32
    %c0_i32_1 = arith.constant 0 : i32
    %c0_i32_2 = arith.constant 0 : i32
    return %c0_i32, %c0_i32_0, %c0_i32_1 : i32, i32, i32
  }
  func.func @transform_3(%arg0: i32, %arg1: i32) -> (i32, i32) {
    %c0_i32 = arith.constant 0 : i32
    %c0_i32_0 = arith.constant 0 : i32
    %c0_i32_1 = arith.constant 0 : i32
    return %c0_i32, %c0_i32_0 : i32, i32
  }
  func.func @transform_4(%arg0: i32, %arg1: i32) -> (i32, i32) {
    %c0_i32 = arith.constant 0 : i32
    %c0_i32_0 = arith.constant 0 : i32
    %c0_i32_1 = arith.constant 0 : i32
    return %c0_i32, %c0_i32_0 : i32, i32
  }
  func.func @transform_5(%arg0: i32, %arg1: i32) -> (i32, i32) {
    %c0_i32 = arith.constant 0 : i32
    %c0_i32_0 = arith.constant 0 : i32
    %c0_i32_1 = arith.constant 0 : i32
    return %c0_i32, %c0_i32_0 : i32, i32
  }
  func.func @transform_6(%arg0: i32, %arg1: i32) -> (i32, i32) {
    %c0_i32 = arith.constant 0 : i32
    %c0_i32_0 = arith.constant 0 : i32
    %c0_i32_1 = arith.constant 0 : i32
    return %c0_i32, %c0_i32_0 : i32, i32
  }
  func.func @transform_7(%arg0: i32, %arg1: i32) -> (i32, i32, i32, i32) {
    %c0_i32 = arith.constant 0 : i32
    %c0_i32_0 = arith.constant 0 : i32
    %c0_i32_1 = arith.constant 0 : i32
    return %arg0, %arg1, %c0_i32, %c0_i32_0 : i32, i32, i32, i32
  }
}

</mosaic_0001>

<bundles_post_ra>
// kernel: tpu_custom_call.1
= control target key start
LH: loop header
LB: loop body
LE: loop exit
PB: predicated region body
PF: predicated region fallthrough
CT: control target
= control target key end

     0   :  { %s9001_s0 = inlined_call_operand.hbm [shape: bf16[2,16,16,512], index: 0, kind: input, shape index: {}]   ;;  %s9002_s1 = inlined_call_operand.hbm [shape: bf16[512,128], index: 1, kind: input, shape index: {}]   ;;  %s9003_s2 = inlined_call_operand.hbm [shape: bf16[3,384,128], index: 2, kind: input, shape index: {}]   ;;  %s9004_s3 = inlined_call_operand.hbm [shape: bf16[128,512], index: 3, kind: input, shape index: {}]   ;;  %s9005_s4 = inlined_call_operand.vmem [shape: f32[1,128], index: 4, kind: input, shape index: {}]   ;;  %s9006_s5 = inlined_call_operand.hbm [shape: f32[1,128], index: 5, kind: input, shape index: {}]   ;;  %s9007_s6 = inlined_call_operand.vmem [shape: f32[1,512], index: 6, kind: input, shape index: {}]   ;;  %s9008_s7 = inlined_call_operand.hbm [shape: bf16[2,16,16,512], index: 7, kind: output, shape index: {}]  }
   0x1   :  { %9061 = sst [smem:[#allocation46_spill]] %s9002_s1 }
   0x2   :  { %9062 = sst [smem:[#allocation47_spill]] %s9003_s2 }
   0x3   :  { %9063 = sst [smem:[#allocation48_spill]] %s9004_s3 }
   0x4   :  { %9064 = sst [smem:[#allocation49_spill]] %s9006_s5 }
   0x5   :  { %12 = vsyncpa [#allocation4], 0 }
   0x6   :  { %14 = vsyncpa [#allocation4 + $0x1], 0 }
   0x7   :  { %15 = vsyncpa [#allocation7], 0 }
   0x8   :  { %16 = vsyncpa [#allocation10], 0 }
   0x9   :  { %17 = vsyncpa [#allocation5], 0 }
   0xa   :  { %19 = vsyncpa [#allocation5 + $0x1], 0  ;;  %s7055_s24 = smov 0   ;;  %s7057_s25 = smov 0  }
   0xb   :  { %s7059_s26 = smov 0   ;;  %s7061_s27 = smov 0  }
   0xc   :  { %s7063_s28 = smov 0   ;;  %s7065_s29 = smov 0  }
   0xd LB: > { %s9009_s30 = sadd.s32 4294967295, %s7002_s29   ;;  %s5454_s8 = sadd.s32 4294967294, %s7002_s29   ;;  %s7002_s29 = sphi %s7065_s29, %s25_s29   ;;  %s6998_s28 = sphi %s7063_s28, %s9205_s28   ;;  %s6994_s27 = sphi %s7061_s27, %s9204_s27   ;;  %s6990_s26 = sphi %s7059_s26, %s9203_s26   ;;  %s6986_s25 = sphi %s7057_s25, %s9202_s25   ;;  %s6982_s24 = sphi %s7055_s24, %s9201_s24  }
   0xe   : > { %p57_p0 = scmp.ne.s32.totalorder %s6986_s25, %s6982_s24  ;;  %p7091_p1 = scmp.eq.s32.totalorder %s9009_s30, 0 }
   0xf   : > { %p215_p2 = scmp.eq.s32.totalorder %s5454_s8, 1  ;;  %p5455_p4 = scmp.ge.s32.totalorder %s7002_s29, 1 }
  0x10   : > { %p7097_p3 = por %p7091_p1, %p57_p0  ;;  %p222_p6 = scmp.lt.s32.totalorder %s7002_s29, 3 }
  0x11   : > { %p7102_p5 = por %p215_p2, %p57_p0  ;;  %s9068_s1 = sld [smem:[#allocation46_spill]] }
  0x12   : > { %p7110_p7 = pnand %p5455_p4, %p222_p6  ;;  %s7004_s16 = smov [#allocation6]  }
  0x13   : > { %s235_s17 = sshll.u32 %s7004_s16, 4  ;;  %p5460_p10 = scmp.ge.s32.totalorder %s7002_s29, 2  ;;  %s236_s17 = int_to_ptr.vmem [resolvable:$true] %s235_s17 }
  0x14   : > { %p6659_p8 = pneg %p7110_p7  ;;  %s9071_s3 = sld [smem:[#allocation48_spill]] }
  0x15   : > { %s7005_s22 = smov 64   ;;  %s7006_s23 = smov 4  }
  0x16   : > { %p7118_p9 = pnand %p6659_p8, %p7091_p1  ;;  %s7007_s8 = smov [#allocation9]  }
  0x17   : > { %s233_s14 = sshll.u32 %s9068_s1, 4  ;;  %s263_s12 = sshll.u32 %s7007_s8, 4  ;;  %s234_s14 = int_to_ptr.hbm [resolvable:$true] %s233_s14  ;;  %s264_s12 = int_to_ptr.vmem [resolvable:$true] %s263_s12 }
  0x18   : > { %6662 = dma.hbm_to_vmem [thread:$0]  (!%p7118_p9), %s234_s14, 4096, %s236_s17, [#allocation7], %s7005_s22, %s7005_s22, %s7006_s23  }
  0x19   : > { %s9010_s13 = smov 256   ;;  %s9011_s16 = smov 16  }
  0x1a   : > { %s261_s21 = sshll.u32 %s9071_s3, 4  ;;  %s9072_s2 = sld [smem:[#allocation47_spill]]  ;;  %s262_s21 = int_to_ptr.hbm [resolvable:$true] %s261_s21 }
  0x1b   : > { %6668 = dma.hbm_to_vmem [thread:$0]  (!%p7118_p9), %s262_s21, 4096, %s264_s12, [#allocation10], %s9010_s13, %s9010_s13, %s9011_s16  }
  0x1c   : > { %s7010_s14 = smov [#allocation8]   ;;  %s9073_s5 = sld [smem:[#allocation49_spill]] }
  0x1d   : > { %s249_s17 = sshll.u32 %s7010_s14, 4  ;;  %s7011_s21 = smov [#allocation11]   ;;  %s250_s17 = int_to_ptr.vmem [resolvable:$true] %s249_s17 }
  0x1e   : > { %s281_s12 = sshll.u32 %s7011_s21, 4  ;;  %s9074_s19 = sadd.s32 4294967295, %s7002_s29   ;;  %s282_s12 = int_to_ptr.vmem [resolvable:$true] %s281_s12 }
  0x1f   : > { %p209_p11 = scmp.eq.s32.totalorder %s9074_s19, 1  ;;  %s37_s20 = sadd.s32 1, %s6998_s28 }
  0x20   : > { %s247_s30 = sshll.u32 %s9072_s2, 4  ;;  %p39_p12 = scmp.ge.s32.totalorder %s37_s20, 2  ;;  %s248_s30 = int_to_ptr.hbm [resolvable:$true] %s247_s30 }
  0x21   : > { %6665 = dma.hbm_to_vmem [thread:$0]  (!%p7118_p9), %s248_s30, 9216, %s250_s17, [#allocation7], %s7005_s22, %s7005_s22, %s7006_s23  }
  0x22   : > { %s279_s3 = sshll.u32 %s9073_s5, 4  ;;  %s44_s14 = sadd.s32 1, %s6990_s26  ;;  %s280_s3 = int_to_ptr.hbm [resolvable:$true] %s279_s3 }
  0x23   : > { %6671 = dma.hbm_to_vmem [thread:$0]  (!%p7118_p9), %s280_s3, 16, %s282_s12, [#allocation10]  }
  0x24   : > { %p51_p13 = scmp.ne.s32.totalorder %s6990_s26, %s6986_s25  ;;  %p52_p0 = scmp.eq.s32.totalorder %s7002_s29, 0 }
  0x25   : > { %s9207_s20 = smov (%p39_p12, %s37_s20), 0  ;;  %p6684_p4 = scmp.lt.s32.totalorder %s7002_s29, 2 }
  0x26   : > { %p7152_p2 = por %p209_p11, %p51_p13  ;;  %s41_s30 = ssub.s32 %s6998_s28, %s9207_s20 }
  0x27   : > { %s295_s18 = sand.u32 1, %s6990_s26   ;;  %p42_p6 = scmp.eq.s32.totalorder %s41_s30, 0 }
  0x28   : > { %p53_p8 = por %p52_p0, %p51_p13  ;;  %s5461_s3 = sshll.u32 %s295_s18, 9 }
  0x29   : > { %s6348_s22 = sshll.u32 %s6998_s28, 9  ;;  %s299_s19 = scalar_lea.vmem [#allocation3], %s5461_s3 }
  0x2a   : > { %s7162_s23 = scalar_select %p42_p6, %s6990_s26, %s44_s14  }
  0x2b   : > { %s304_s21 = scalar_lea.hbm %s9001_s0, %s6348_s22  ;;  %s307_s13 = sshll.u32 %s299_s19, 4  ;;  %s308_s13 = int_to_ptr.vmem [resolvable:$true] %s307_s13 }
  0x2c   : > { %s305_s12 = sshll.u32 %s304_s21, 4  ;;  %p6673_p9 = pnand %p6684_p4, %p53_p8  ;;  %s306_s12 = int_to_ptr.hbm [resolvable:$true] %s305_s12 }
  0x2d   : > { %s296_s16 = scalar_lea.sflag [#allocation4], %s295_s18  ;;  %s9076_s2 = smov 16  }
  0x2e   : > { %s9077_s5 = smov 256   ;;  %319 = sbr.rel (%p7110_p7) target bundleno = 1503 (0x5df), region = 48 }
  0x2f   : > { %6675 = dma.hbm_to_vmem [thread:$0]  (!%p6673_p9), %s306_s12, 8192, %s308_s13, %s296_s16, %s9077_s5, %s9077_s5, %s9076_s2  }
  0x33   : > { %s7175_s14 = sand.u32 1, %s6986_s25  }
  0x34   : > { %s5465_s30 = sshll.u32 %s7175_s14, 9  ;;  %s322_s3 = scalar_lea.sflag [#allocation4], %s7175_s14 }
  0x35   : > { %s7181_s22 = scalar_lea.vmem [#allocation3], %s5465_s30 }
  0x36   : > { %6965 = dma.done.wait (%p7097_p3), %s322_s3, 8192  }
  0x37   : > { %6967 = vsyncadd (%p7097_p3), %s322_s3, 4294959104 }
  0x38   : > { %6969 = dma.done.wait (%p7091_p1), [#allocation7], 13312  }
  0x39   : > { %6971 = vsyncadd (%p7091_p1), [#allocation7], 4294953984 }
  0x3a   : > { %6973 = dma.done.wait (%p7091_p1), [#allocation10], 4112  }
  0x3b   : > { %6975 = vsyncadd (%p7091_p1), [#allocation10], 4294963184  ;;  %v6436_v0 = vld [vmem:[#allocation6 + $0x38] sm:$0xff]  ;;  %v6435_v1 = vld [vmem:[#allocation6 + $0x30] sm:$0xff]  ;;  %vm1731_vm0 = vcmask 1040384   ;;  %vm1732_vm1 = vcmask 1044484  }
  0x3c   : > { %6615 = vmatpush.bf16.msra.mxu1 %v6436_v0  ;;  %6616 = vmatpush.bf16.msra.mxu2 %v6436_v0  ;;  %v6434_v2 = vld [vmem:[#allocation6 + $0x28] sm:$0xff]  ;;  %v6433_v3 = vld [vmem:[#allocation6 + $0x20] sm:$0xff]  ;;  %v6432_v4 = vld [vmem:[#allocation6 + $0x18] sm:$0xff]  ;;  %vm2331_vm3 = vcmask 1046528   ;;  %vm2532_vm4 = vcmask 1045504   ;;  %s8540_s16 = scalar_lea.vmem [#allocation12], %s5465_s30 }
  0x3d   : > { %6617 = vmatpush.bf16.msra.mxu3 %v6436_v0  ;;  %1135 = vmatpush.bf16.msra.mxu0 %v6436_v0  ;;  %v6431_v5 = vld [vmem:[#allocation6 + $0x10] sm:$0xff]  ;;  %v6430_v6 = vld [vmem:[#allocation6 + $0x8] sm:$0xff]  ;;  %v6429_v7 = vld [vmem:[#allocation6] sm:$0xff]  ;;  %s6565_s18 = sshll.u32 %s6994_s27, 9  ;;  %s5322_s12 = sshll.u32 %s8540_s16, 4  ;;  %s5323_s12 = int_to_ptr.vmem [resolvable:$true] %s5322_s12 }
  0x3e   : > { %v5609_v8 = vld [vmem:[%s7181_s22 + $0xc0] sm:$0xf]  ;;  %v6375_v9 = vld [vmem:[%s7181_s22 + $0xcc] sm:$0xf0]  ;;  %v6452_v14 = vld [vmem:[#allocation6 + $0xb8] sm:$0xff]  ;;  %s5321_s21 = scalar_lea.hbm %s9008_s7, %s6565_s18  ;;  %s5307_s27 = scalar_lea.sflag [#allocation5], %s7175_s14 }
  0x3f   : > { %v5673_v10 = vld [vmem:[%s7181_s22 + $0x140] sm:$0xf]  ;;  %v6391_v11 = vld [vmem:[%s7181_s22 + $0x14c] sm:$0xf0]  ;;  %v6460_v15 = vld [vmem:[#allocation6 + $0xf8] sm:$0xff]  ;;  %v5610_v17 = vor.u32 %v6375_v9, %v5609_v8  ;;  %s5324_s19 = sshll.u32 %s5321_s21, 4  ;;  %s5325_s19 = int_to_ptr.hbm [resolvable:$true] %s5324_s19 }
  0x40   : > { %6618 = vmatpush.bf16.msra.mxu1 %v6435_v1  ;;  %6619 = vmatpush.bf16.msra.mxu2 %v6435_v1  ;;  %v5737_v12 = vld [vmem:[%s7181_s22 + $0x1c0] sm:$0xf]  ;;  %v6407_v13 = vld [vmem:[%s7181_s22 + $0x1cc] sm:$0xf0]  ;;  %v6444_v16 = vld [vmem:[#allocation6 + $0x78] sm:$0xff]  ;;  %v5674_v18 = vor.u32 %v6391_v11, %v5673_v10  ;;  %s6926_s30 = sshra.s32 %s5325_s19, 4  ;;  %s6927_s30 = int_to_ptr.hbm [resolvable:$true] %s6926_s30 }
  0x41   : > { %6620 = vmatpush.bf16.msra.mxu3 %v6435_v1  ;;  %1136 = vmatpush.bf16.msra.mxu0 %v6435_v1  ;;  %v5738_v19 = vor.u32 %v6407_v13, %v5737_v12  ;;  %v6451_v20 = vld [vmem:[#allocation6 + $0xb0] sm:$0xff]  ;;  %v6450_v23 = vld [vmem:[#allocation6 + $0xa8] sm:$0xff]  ;;  %v6449_v26 = vld [vmem:[#allocation6 + $0xa0] sm:$0xff]  ;;  %s6928_s3 = scalar_lea.hbm %s6927_s30, 512  ;;  %s6932_s5 = scalar_lea.hbm %s9008_s7, 1024 }
  0x42   : > { %v6459_v21 = vld [vmem:[#allocation6 + $0xf0] sm:$0xff]  ;;  %v6458_v24 = vld [vmem:[#allocation6 + $0xe8] sm:$0xff]  ;;  %v6457_v27 = vld [vmem:[#allocation6 + $0xe0] sm:$0xff]  ;;  %p6929_p1 = scmp.ne.s32.totalorder %s6927_s30, %s6928_s3  ;;  %p6933_p11 = scmp.lt.s32.totalorder %s6927_s30, %s9008_s7 }
  0x43   : > { %v6443_v22 = vld [vmem:[#allocation6 + $0x70] sm:$0xff]  ;;  %v6442_v25 = vld [vmem:[#allocation6 + $0x68] sm:$0xff]  ;;  %v6441_v28 = vld [vmem:[#allocation6 + $0x60] sm:$0xff]  ;;  %p6934_p12 = scmp.lt.s32.totalorder %s6932_s5, %s6928_s3 }
  0x44   : > { %6621 = vmatpush.bf16.msra.mxu1 %v6434_v2  ;;  %6622 = vmatpush.bf16.msra.mxu2 %v6434_v2  ;;  %v5625_v29 = vld [vmem:[%s7181_s22 + $0xe0] sm:$0xf]  ;;  %v6379_v30 = vld [vmem:[%s7181_s22 + $0xec] sm:$0xf0]  ;;  %v6448_v35 = vld [vmem:[#allocation6 + $0x98] sm:$0xff]  ;;  %p6930_p3 = pnand %p6929_p1, %p7152_p2 }
  0x45   : > { %6623 = vmatpush.bf16.msra.mxu3 %v6434_v2  ;;  %1137 = vmatpush.bf16.msra.mxu0 %v6434_v2  ;;  %v5689_v31 = vld [vmem:[%s7181_s22 + $0x160] sm:$0xf]  ;;  %v6395_v32 = vld [vmem:[%s7181_s22 + $0x16c] sm:$0xf0]  ;;  %v6456_v36 = vld [vmem:[#allocation6 + $0xd8] sm:$0xff]  ;;  %v5626_v38 = vor.u32 %v6379_v30, %v5625_v29  ;;  %p6935_p13 = por %p6934_p12, %p6933_p11 }
  0x46   : > { %v5753_v33 = vld [vmem:[%s7181_s22 + $0x1e0] sm:$0xf]  ;;  %v6411_v34 = vld [vmem:[%s7181_s22 + $0x1ec] sm:$0xf0]  ;;  %v6440_v37 = vld [vmem:[#allocation6 + $0x58] sm:$0xff]  ;;  %v5690_v39 = vor.u32 %v6395_v32, %v5689_v31  ;;  %p6931_p7 = pneg %p6930_p3 }
  0x47   : > { %v5754_v40 = vor.u32 %v6411_v34, %v5753_v33  ;;  %v6447_v41 = vld [vmem:[#allocation6 + $0x90] sm:$0xff]  ;;  %v6446_v44 = vld [vmem:[#allocation6 + $0x88] sm:$0xff]  ;;  %v5481_v45 = vld [vmem:[%s7181_s22] sm:$0xf] }
  0x48   : > { %6624 = vmatpush.bf16.msra.mxu1 %v6433_v3  ;;  %6625 = vmatpush.bf16.msra.mxu2 %v6433_v3  ;;  %v6455_v42 = vld [vmem:[#allocation6 + $0xd0] sm:$0xff]  ;;  %v6454_v47 = vld [vmem:[#allocation6 + $0xc8] sm:$0xff]  ;;  %v6445_v50 = vld [vmem:[#allocation6 + $0x80] sm:$0xff]  ;;  %p6936_p0 = pnand %p6935_p13, %p6931_p7 }
  0x49   : > { %6626 = vmatpush.bf16.msra.mxu3 %v6433_v3  ;;  %1138 = vmatpush.bf16.msra.mxu0 %v6433_v3  ;;  %v6439_v43 = vld [vmem:[#allocation6 + $0x50] sm:$0xff]  ;;  %v6438_v48 = vld [vmem:[#allocation6 + $0x48] sm:$0xff]  ;;  %v6453_v51 = vld [vmem:[#allocation6 + $0xc0] sm:$0xff] }
  0x4a   : > { %v6415_v46 = vld [vmem:[%s7181_s22 + $0xc] sm:$0xf0]  ;;  %v6437_v52 = vld [vmem:[#allocation6 + $0x40] sm:$0xff]  ;;  %v6418_v29 = vld [vmem:[%s7181_s22 + $0x2c] sm:$0xf] }
  0x4b   : > { %v5482_v49 = vor.u32 %v6415_v46, %v5481_v45  ;;  %v5641_v53 = vld [vmem:[%s7181_s22 + $0x100] sm:$0xf]  ;;  %v6383_v54 = vld [vmem:[%s7181_s22 + $0x10c] sm:$0xf0]  ;;  %v6413_v13 = vld [vmem:[%s7181_s22 + $0x4] sm:$0xf] }
  0x4c   : > { %6627 = vmatpush.bf16.msra.mxu1 %v6432_v4  ;;  %6628 = vmatpush.bf16.msra.mxu2 %v6432_v4  ;;  %v5705_v55 = vld [vmem:[%s7181_s22 + $0x180] sm:$0xf]  ;;  %v6399_v56 = vld [vmem:[%s7181_s22 + $0x18c] sm:$0xf0]  ;;  %v5642_v59 = vor.u32 %v6383_v54, %v5641_v53  ;;  %v5507_v30 = vld [vmem:[%s7181_s22 + $0x38] sm:$0xf0] }
  0x4d   : > { %6629 = vmatpush.bf16.msra.mxu3 %v6432_v4  ;;  %1139 = vmatpush.bf16.msra.mxu0 %v6432_v4  ;;  %v5769_v57 = vld [vmem:[%s7181_s22 + $0x1c0] sm:$0xf]  ;;  %v6423_v58 = vld [vmem:[%s7181_s22 + $0x1cc] sm:$0xf0]  ;;  %v5706_v60 = vor.u32 %v6399_v56, %v5705_v55  ;;  %v5510_v33 = vor.u32 %v6418_v29, %v5507_v30  ;;  %v6492_v46 = vld [vmem:[#allocation8 + $0xf8] sm:$0xff] }
  0x4e   : > { %v5770_v61 = vor.u32 %v6423_v58, %v5769_v57  ;;  %v5497_v62 = vld [vmem:[%s7181_s22 + $0x20] sm:$0xf]  ;;  %v6419_v63 = vld [vmem:[%s7181_s22 + $0x2c] sm:$0xf0]  ;;  %v6356_v53 = vld [vmem:[%s7181_s22 + $0x34] sm:$0xf0] }
  0x4f   : > { %v5498_v0 = vor.u32 %v6419_v63, %v5497_v62  ;;  %v5657_v1 = vld [vmem:[%s7181_s22 + $0x120] sm:$0xf]  ;;  %v6387_v2 = vld [vmem:[%s7181_s22 + $0x12c] sm:$0xf0]  ;;  %v6354_v54 = vld [vmem:[%s7181_s22 + $0x2c] sm:$0xf] }
  0x50   : > { %6630 = vmatpush.bf16.msra.mxu1 %v6431_v5  ;;  %6631 = vmatpush.bf16.msra.mxu2 %v6431_v5  ;;  %v5721_v3 = vld [vmem:[%s7181_s22 + $0x1a0] sm:$0xf]  ;;  %v6403_v4 = vld [vmem:[%s7181_s22 + $0x1ac] sm:$0xf0]  ;;  %v5539_v55 = vld [vmem:[%s7181_s22 + $0x38] sm:$0xf0] }
  0x51   : > { %6632 = vmatpush.bf16.msra.mxu3 %v6431_v5  ;;  %1140 = vmatpush.bf16.msra.mxu0 %v6431_v5  ;;  %v5785_v5 = vld [vmem:[%s7181_s22 + $0x1e0] sm:$0xf]  ;;  %v5722_v8 = vor.u32 %v6403_v4, %v5721_v3  ;;  %v6351_v11 = vld [vmem:[%s7181_s22 + $0xc] sm:$0xf0]  ;;  %v5542_v58 = vor.u32 %v6354_v54, %v5539_v55  ;;  %v6357_v63 = vld [vmem:[%s7181_s22 + $0x44] sm:$0xf] }
  0x52   : > { %v5513_v10 = vld [vmem:[%s7181_s22] sm:$0xf]  ;;  %v6358_v3 = vld [vmem:[%s7181_s22 + $0x4c] sm:$0xf]  ;;  %v5555_v4 = vld [vmem:[%s7181_s22 + $0x58] sm:$0xf0] }
  0x53   : > { %v5514_v12 = vor.u32 %v6351_v11, %v5513_v10  ;;  %v5545_v34 = vld [vmem:[%s7181_s22 + $0x40] sm:$0xf]  ;;  %v6372_v54 = vld [vmem:[%s7181_s22 + $0xb4] sm:$0xf0]  ;;  %v9012_v55 = vmov 0   ;;  %vm7407_vm2 = vmor %vm1731_vm0, %vm1732_vm1 }
  0x54   : > { %6633 = vmatpush.bf16.msra.mxu1 %v6430_v6  ;;  %6634 = vmatpush.bf16.msra.mxu2 %v6430_v6  ;;  %1611 = vst [vmem:[#allocation2] sm:$0x1] %v9012_v55 }
  0x55   : > { %6635 = vmatpush.bf16.msra.mxu3 %v6430_v6  ;;  %1141 = vmatpush.bf16.msra.mxu0 %v6430_v6  ;;  %v6427_v6 = vld [vmem:[%s7181_s22 + $0x1ec] sm:$0xf0]  ;;  %1612 = vst [vmem:[#allocation2 + $0xc] sm:$0x1] %v9012_v55 }
  0x56   : > { %v5786_v9 = vor.u32 %v6427_v6, %v5785_v5  ;;  %1613 = vst [vmem:[#allocation2 + $0x18] sm:$0x1] %v9012_v55 }
  0x57   : > { %1614 = vst [vmem:[#allocation2 + $0x24] sm:$0x1] %v9012_v55 }
  0x58   : > { %6636 = vmatpush.bf16.msra.mxu1 %v6429_v7  ;;  %6637 = vmatpush.bf16.msra.mxu2 %v6429_v7  ;;  %1615 = vst [vmem:[#allocation2 + $0x30] sm:$0x1] %v9012_v55 }
  0x59   : > { %6638 = vmatpush.bf16.msra.mxu3 %v6429_v7  ;;  %1142 = vmatpush.bf16.msra.mxu0 %v6429_v7  ;;  %v5658_v7 = vor.u32 %v6387_v2, %v5657_v1  ;;  %v5553_v1 = vld [vmem:[%s7181_s22 + $0x48] sm:$0xf]  ;;  %v6360_v2 = vld [vmem:[%s7181_s22 + $0x54] sm:$0xf0]  ;;  %1616 = vst [vmem:[#allocation2 + $0x3c] sm:$0x1] %v9012_v55 }
  0x5a   : > { %v5554_v6 = vor.u32 %v6360_v2, %v5553_v1  ;;  %1617 = vst [vmem:[#allocation2 + $0x48] sm:$0x1] %v9012_v55  ;;  %v6500_v1 = vld [vmem:[#allocation8 + $0x138] sm:$0xff] }
  0x5b   : > { %1183 = vmatmul.bf16.vlgmr.msra.gmra.mxu1 %v5610_v17  ;;  %1203 = vmatmul.bf16.vlgmr.msra.gmra.mxu2 %v5674_v18  ;;  %v6414_v17 = vld [vmem:[%s7181_s22 + $0xc] sm:$0xf]  ;;  %v5491_v18 = vld [vmem:[%s7181_s22 + $0x18] sm:$0xf0]  ;;  %1618 = vst [vmem:[#allocation2 + $0x54] sm:$0x1] %v9012_v55 }
  0x5c   : > { %1353 = vmatpush.bf16.msrb.mxu2 %v6452_v14  ;;  %1244 = vmatpush.bf16.msrb.mxu1 %v6444_v16  ;;  %v5483_v14 = vld [vmem:[%s7181_s22 + $0x10] sm:$0xf0]  ;;  %v6416_v16 = vld [vmem:[%s7181_s22 + $0x14] sm:$0xf0]  ;;  %1619 = vst [vmem:[#allocation2 + $0x60] sm:$0x1] %v9012_v55 }
  0x5d   : > { %1462 = vmatpush.bf16.msrb.mxu3 %v6460_v15  ;;  %1143 = vmatmul.bf16.vlgmr.msra.gmra.mxu0 %v5482_v49  ;;  %v5489_v15 = vld [vmem:[%s7181_s22 + $0x8] sm:$0xf]  ;;  %1620 = vst [vmem:[#allocation2 + $0x6c] sm:$0x1] %v9012_v55 }
  0x5e   : > { %1223 = vmatmul.bf16.vlgmr.msra.gmra.mxu3 %v5738_v19  ;;  %v5486_v19 = vor.u32 %v6413_v13, %v5483_v14  ;;  %2854 = vmatpush.bf16.msrb.mxu0 %v6492_v46  ;;  %v5593_v13 = vld [vmem:[%s7181_s22 + $0xa0] sm:$0xf]  ;;  %v6371_v14 = vld [vmem:[%s7181_s22 + $0xac] sm:$0xf0]  ;;  %v6468_v46 = vld [vmem:[#allocation8 + $0x38] sm:$0xff] }
  0x5f   : > { %1621 = vst [vmem:[#allocation2 + $0x78] sm:$0x1] %v9012_v55 }
  0x60   : > { %1354 = vmatpush.bf16.msrb.mxu2 %v6451_v20  ;;  %1245 = vmatpush.bf16.msrb.mxu1 %v6443_v22  ;;  %v5490_v20 = vor.u32 %v6416_v16, %v5489_v15  ;;  %v5529_v22 = vld [vmem:[%s7181_s22 + $0x20] sm:$0xf]  ;;  %v5594_v15 = vor.u32 %v6371_v14, %v5593_v13  ;;  %v6361_v16 = vld [vmem:[%s7181_s22 + $0x64] sm:$0xf]  ;;  %1622 = vst [vmem:[#allocation2 + $0x84] sm:$0x1] %v9012_v55 }
  0x61   : > { %1463 = vmatpush.bf16.msrb.mxu3 %v6459_v21  ;;  %v5494_v21 = vor.u32 %v6414_v17, %v5491_v18  ;;  %v5563_v17 = vld [vmem:[%s7181_s22 + $0x70] sm:$0xf0]  ;;  %v5569_v18 = vld [vmem:[%s7181_s22 + $0x68] sm:$0xf]  ;;  %1623 = vst [vmem:[#allocation2 + $0x90] sm:$0x1] %v9012_v55 }
  0x62   : > { %1624 = vst [vmem:[#allocation2 + $0x9c] sm:$0x1] %v9012_v55  ;;  %v5617_v13 = vld [vmem:[%s7181_s22 + $0xc8] sm:$0xf]  ;;  %v6376_v14 = vld [vmem:[%s7181_s22 + $0xd4] sm:$0xf0] }
  0x63   : > { %1625 = vst [vmem:[#allocation2 + $0xa8] sm:$0x1] %v9012_v55 }
  0x64   : > { %1355 = vmatpush.bf16.msrb.mxu2 %v6450_v23  ;;  %1246 = vmatpush.bf16.msrb.mxu1 %v6442_v25  ;;  %v6355_v23 = vld [vmem:[%s7181_s22 + $0x2c] sm:$0xf0]  ;;  %v6417_v25 = vld [vmem:[%s7181_s22 + $0x24] sm:$0xf]  ;;  %1626 = vst [vmem:[#allocation2 + $0xb4] sm:$0x1] %v9012_v55 }
  0x65   : > { %1464 = vmatpush.bf16.msrb.mxu3 %v6458_v24  ;;  %v5530_v24 = vor.u32 %v6355_v23, %v5529_v22  ;;  %1627 = vst [vmem:[#allocation2 + $0xc0] sm:$0x1] %v9012_v55 }
  0x66   : > { %1628 = vst [vmem:[#allocation2 + $0xcc] sm:$0x1] %v9012_v55 }
  0x67   : > { %1629 = vst [vmem:[#allocation2 + $0xd8] sm:$0x1] %v9012_v55 }
  0x68   : > { %1356 = vmatpush.bf16.msrb.mxu2 %v6449_v26  ;;  %1247 = vmatpush.bf16.msrb.mxu1 %v6441_v28  ;;  %v5499_v26 = vld [vmem:[%s7181_s22 + $0x30] sm:$0xf0]  ;;  %v6420_v28 = vld [vmem:[%s7181_s22 + $0x34] sm:$0xf0]  ;;  %1630 = vst [vmem:[#allocation2 + $0xe4] sm:$0x1] %v9012_v55 }
  0x69   : > { %1465 = vmatpush.bf16.msrb.mxu3 %v6457_v27  ;;  %v5505_v27 = vld [vmem:[%s7181_s22 + $0x28] sm:$0xf]  ;;  %v5502_v31 = vor.u32 %v6417_v25, %v5499_v26  ;;  %1631 = vst [vmem:[#allocation2 + $0x8] sm:$0x2] %v9012_v55 }
  0x6a   : > { %v5506_v32 = vor.u32 %v6420_v28, %v5505_v27  ;;  %1632 = vst [vmem:[#allocation2 + $0x14] sm:$0x2] %v9012_v55 }
  0x6b   : > { %1188 = vmatmul.bf16.gmra.mxu1 %v5626_v38  ;;  %1208 = vmatmul.bf16.gmra.mxu2 %v5690_v39  ;;  %v5515_v38 = vld [vmem:[%s7181_s22 + $0x10] sm:$0xf0]  ;;  %v5521_v39 = vld [vmem:[%s7181_s22 + $0x8] sm:$0xf]  ;;  %1633 = vst [vmem:[#allocation2 + $0x20] sm:$0x2] %v9012_v55 }
  0x6c   : > { %1357 = vmatpush.bf16.msrb.mxu2 %v6448_v35  ;;  %1248 = vmatpush.bf16.msrb.mxu1 %v6440_v37  ;;  %v6359_v35 = vld [vmem:[%s7181_s22 + $0x4c] sm:$0xf0]  ;;  %v6349_v37 = vld [vmem:[%s7181_s22 + $0x4] sm:$0xf]  ;;  %1634 = vst [vmem:[#allocation2 + $0x2c] sm:$0x2] %v9012_v55 }
  0x6d   : > { %1466 = vmatpush.bf16.msrb.mxu3 %v6456_v36  ;;  %1148 = vmatmul.bf16.gmra.mxu0 %v5498_v0  ;;  %v5546_v36 = vor.u32 %v6359_v35, %v5545_v34  ;;  %v5547_v0 = vld [vmem:[%s7181_s22 + $0x50] sm:$0xf0]  ;;  %v5585_v34 = vld [vmem:[%s7181_s22 + $0x88] sm:$0xf]  ;;  %v6368_v35 = vld [vmem:[%s7181_s22 + $0x94] sm:$0xf0] }
  0x6e   : > { %1228 = vmatmul.bf16.gmra.mxu3 %v5754_v40  ;;  %v6352_v40 = vld [vmem:[%s7181_s22 + $0x14] sm:$0xf0]  ;;  %v5550_v5 = vor.u32 %v6357_v63, %v5547_v0  ;;  %1635 = vst [vmem:[#allocation2 + $0x38] sm:$0x2] %v9012_v55 }
  0x6f   : > { %v6488_v0 = vld [vmem:[#allocation8 + $0xd8] sm:$0xff]  ;;  %1636 = vst [vmem:[#allocation2 + $0x44] sm:$0x2] %v9012_v55 }
  0x70   : > { %1358 = vmatpush.bf16.msrb.mxu2 %v6447_v41  ;;  %1249 = vmatpush.bf16.msrb.mxu1 %v6439_v43  ;;  %v6350_v41 = vld [vmem:[%s7181_s22 + $0xc] sm:$0xf]  ;;  %v5518_v43 = vor.u32 %v6349_v37, %v5515_v38  ;;  %v5587_v37 = vld [vmem:[%s7181_s22 + $0x98] sm:$0xf0]  ;;  %1637 = vst [vmem:[#allocation2 + $0x50] sm:$0x2] %v9012_v55 }
  0x71   : > { %1467 = vmatpush.bf16.msrb.mxu3 %v6455_v42  ;;  %v5523_v42 = vld [vmem:[%s7181_s22 + $0x18] sm:$0xf0]  ;;  %1638 = vst [vmem:[#allocation2 + $0x5c] sm:$0x2] %v9012_v55 }
  0x72   : > { %v5526_v45 = vor.u32 %v6350_v41, %v5523_v42  ;;  %v5586_v41 = vor.u32 %v6368_v35, %v5585_v34  ;;  %1639 = vst [vmem:[#allocation2 + $0x68] sm:$0x2] %v9012_v55 }
  0x73   : > { %1640 = vst [vmem:[#allocation2 + $0x74] sm:$0x2] %v9012_v55 }
  0x74   : > { %1359 = vmatpush.bf16.msrb.mxu2 %v6446_v44  ;;  %1250 = vmatpush.bf16.msrb.mxu1 %v6438_v48  ;;  %v5522_v44 = vor.u32 %v6352_v40, %v5521_v39  ;;  %v6363_v48 = vld [vmem:[%s7181_s22 + $0x6c] sm:$0xf0]  ;;  %1641 = vst [vmem:[#allocation2 + $0x80] sm:$0x2] %v9012_v55 }
  0x75   : > { %1468 = vmatpush.bf16.msrb.mxu3 %v6454_v47  ;;  %v5561_v47 = vld [vmem:[%s7181_s22 + $0x60] sm:$0xf]  ;;  %1642 = vst [vmem:[#allocation2 + $0x8c] sm:$0x2] %v9012_v55 }
  0x76   : > { %v5562_v49 = vor.u32 %v6363_v48, %v5561_v47  ;;  %1643 = vst [vmem:[#allocation2 + $0x98] sm:$0x2] %v9012_v55 }
  0x77   : > { %1644 = vst [vmem:[#allocation2 + $0xa4] sm:$0x2] %v9012_v55 }
  0x78   : > { %1360 = vmatpush.bf16.msrb.mxu2 %v6445_v50  ;;  %1251 = vmatpush.bf16.msrb.mxu1 %v6437_v52  ;;  %v6353_v50 = vld [vmem:[%s7181_s22 + $0x24] sm:$0xf]  ;;  %v5537_v52 = vld [vmem:[%s7181_s22 + $0x28] sm:$0xf]  ;;  %1645 = vst [vmem:[#allocation2 + $0xb0] sm:$0x2] %v9012_v55 }
  0x79   : > { %1469 = vmatpush.bf16.msrb.mxu3 %v6453_v51  ;;  %v5531_v51 = vld [vmem:[%s7181_s22 + $0x30] sm:$0xf0]  ;;  %v5538_v57 = vor.u32 %v6356_v53, %v5537_v52  ;;  %v5601_v53 = vld [vmem:[%s7181_s22 + $0xa8] sm:$0xf]  ;;  %1646 = vst [vmem:[#allocation2 + $0xbc] sm:$0x2] %v9012_v55 }
  0x7a   : > { %v5534_v56 = vor.u32 %v6353_v50, %v5531_v51  ;;  %v6369_v50 = vld [vmem:[%s7181_s22 + $0xa4] sm:$0xf]  ;;  %v5595_v51 = vld [vmem:[%s7181_s22 + $0xb0] sm:$0xf0]  ;;  %1647 = vst [vmem:[#allocation2 + $0xc8] sm:$0x2] %v9012_v55 }
  0x7b   : > { %1193 = vmatmul.bf16.gmra.mxu1 %v5642_v59  ;;  %1213 = vmatmul.bf16.gmra.mxu2 %v5706_v60  ;;  %v6491_v59 = vld [vmem:[#allocation8 + $0xf0] sm:$0xff]  ;;  %v5577_v60 = vld [vmem:[%s7181_s22 + $0x80] sm:$0xf]  ;;  %1648 = vst [vmem:[#allocation2 + $0xd4] sm:$0x2] %v9012_v55 }
  0x7c   : > { %2855 = vmatpush.bf16.msrb.mxu0 %v6491_v59  ;;  %2943 = vmatpush.bf16.msra.mxu1 %v6500_v1  ;;  %1649 = vst [vmem:[#allocation2 + $0xe0] sm:$0x2] %v9012_v55 }
  0x7d   : > { %1153 = vmatmul.bf16.gmra.mxu0 %v5514_v12  ;;  %v6490_v12 = vld [vmem:[#allocation8 + $0xe8] sm:$0xff]  ;;  %3265 = vmatpush.bf16.msra.mxu3 %v6468_v46  ;;  %1650 = vst [vmem:[#allocation2 + $0xec] sm:$0x2] %v9012_v55 }
  0x7e   : > { %1233 = vmatmul.bf16.gmra.mxu3 %v5770_v61  ;;  %v6367_v61 = vld [vmem:[%s7181_s22 + $0x8c] sm:$0xf0]  ;;  %v5633_v46 = vld [vmem:[%s7181_s22 + $0xe8] sm:$0xf] }
  0x7f   : > { %v5578_v62 = vor.u32 %v6367_v61, %v5577_v60  ;;  %v5598_v60 = vor.u32 %v6369_v50, %v5595_v51  ;;  %v5602_v61 = vor.u32 %v6372_v54, %v5601_v53  ;;  %v6380_v50 = vld [vmem:[%s7181_s22 + $0xf4] sm:$0xf0]  ;;  %v6378_v54 = vld [vmem:[%s7181_s22 + $0xec] sm:$0xf] }
  0x80   : > { %2856 = vmatpush.bf16.msrb.mxu0 %v6490_v12  ;;  %v5611_v12 = vld [vmem:[%s7181_s22 + $0xd0] sm:$0xf0]  ;;  %v5634_v1 = vor.u32 %v6380_v50, %v5633_v46 }
  0x81   : > { %v5643_v46 = vld [vmem:[%s7181_s22 + $0x110] sm:$0xf0] }
  0x82   : > { %v6499_v50 = vld [vmem:[#allocation8 + $0x130] sm:$0xff] }
  0x83   : > { %2944 = vmatpush.bf16.msra.mxu1 %v6499_v50  ;;  %v5665_v50 = vld [vmem:[%s7181_s22 + $0x128] sm:$0xf] }
  0x8b   : > { %1198 = vmatmul.bf16.gmra.mxu1 %v5658_v7  ;;  %1218 = vmatmul.bf16.gmra.mxu2 %v5722_v8  ;;  %v5558_v8 = vor.u32 %v6358_v3, %v5555_v4 }
  0x8d   : > { %1158 = vmatmul.bf16.gmra.mxu0 %v5530_v24  ;;  %v5566_v24 = vor.u32 %v6361_v16, %v5563_v17  ;;  %v5619_v16 = vld [vmem:[%s7181_s22 + $0xd8] sm:$0xf0] }
  0x8e   : > { %1238 = vmatmul.bf16.gmra.mxu3 %v5786_v9 }
  0x9b   : > { %1252 = vmatmul.bf16.vlgmr.msrb.gmra.mxu1 %v5486_v19  ;;  %1361 = vmatmul.bf16.vlgmr.msrb.gmra.mxu2 %v5490_v20  ;;  %v6364_v19 = vld [vmem:[%s7181_s22 + $0x74] sm:$0xf0]  ;;  %v6362_v20 = vld [vmem:[%s7181_s22 + $0x6c] sm:$0xf] }
  0x9c   : > { %v5570_v25 = vor.u32 %v6364_v19, %v5569_v18 }
  0x9d   : > { %1163 = vmatmul.bf16.gmra.mxu0 %v5546_v36  ;;  %v6366_v36 = vld [vmem:[%s7181_s22 + $0x8c] sm:$0xf] }
  0x9e   : > { %1470 = vmatmul.bf16.vlgmr.msrb.gmra.mxu3 %v5494_v21  ;;  %v5571_v21 = vld [vmem:[%s7181_s22 + $0x78] sm:$0xf0] }
  0x9f   : > { %v5574_v27 = vor.u32 %v6362_v20, %v5571_v21  ;;  %v5618_v21 = vor.u32 %v6376_v14, %v5617_v13  ;;  %v6486_v14 = vld [vmem:[#allocation8 + $0xc8] sm:$0xff] }
  0xab   : > { %1257 = vmatmul.bf16.gmra.mxu1 %v5502_v31  ;;  %1366 = vmatmul.bf16.gmra.mxu2 %v5506_v32  ;;  %v6489_v31 = vld [vmem:[#allocation8 + $0xe0] sm:$0xff] }
  0xac   : > { %2857 = vmatpush.bf16.msrb.mxu0 %v6489_v31  ;;  %v6365_v32 = vld [vmem:[%s7181_s22 + $0x84] sm:$0xf]  ;;  %v6487_v31 = vld [vmem:[#allocation8 + $0xd0] sm:$0xff] }
  0xad   : > { %1168 = vmatmul.bf16.gmra.mxu0 %v5562_v49 }
  0xae   : > { %1475 = vmatmul.bf16.gmra.mxu3 %v5510_v33  ;;  %v5579_v33 = vld [vmem:[%s7181_s22 + $0x90] sm:$0xf0] }
  0xaf   : > { %v5582_v40 = vor.u32 %v6365_v32, %v5579_v33 }
  0xb0   : > { %2858 = vmatpush.bf16.msrb.mxu0 %v6488_v0 }
  0xb4   : > { %2859 = vmatpush.bf16.msrb.mxu0 %v6487_v31 }
  0xb8   : > { %2860 = vmatpush.bf16.msrb.mxu0 %v6486_v14 }
  0xbb   : > { %1262 = vmatmul.bf16.gmra.mxu1 %v5518_v43  ;;  %1371 = vmatmul.bf16.gmra.mxu2 %v5522_v44  ;;  %v5590_v43 = vor.u32 %v6366_v36, %v5587_v37 }
  0xbd   : > { %1173 = vmatmul.bf16.gmra.mxu0 %v5578_v62 }
  0xbe   : > { %1480 = vmatmul.bf16.gmra.mxu3 %v5526_v45  ;;  %v6508_v45 = vld [vmem:[#allocation8 + $0x178] sm:$0xff] }
  0xbf   : > { %3032 = vmatpush.bf16.msra.mxu2 %v6508_v45  ;;  %v5627_v45 = vld [vmem:[%s7181_s22 + $0xf0] sm:$0xf0] }
  0xcb   : > { %1267 = vmatmul.bf16.gmra.mxu1 %v5534_v56  ;;  %1376 = vmatmul.bf16.gmra.mxu2 %v5538_v57  ;;  %v6370_v56 = vld [vmem:[%s7181_s22 + $0xac] sm:$0xf]  ;;  %v5603_v57 = vld [vmem:[%s7181_s22 + $0xb8] sm:$0xf0] }
  0xcc   : > { %v5606_v63 = vor.u32 %v6370_v56, %v5603_v57  ;;  %v5635_v56 = vld [vmem:[%s7181_s22 + $0xf8] sm:$0xf0] }
  0xcd   : > { %1178 = vmatmul.bf16.gmra.mxu0 %v5594_v15  ;;  %v6374_v15 = vld [vmem:[%s7181_s22 + $0xcc] sm:$0xf] }
  0xce   : > { %1485 = vmatmul.bf16.gmra.mxu3 %v5542_v58 }
  0xd8   : > { %v7263_v7 = vpop.f32.mrf.mxu1 }
  0xda   : > { %v7303_v44 = vpop.f32.mrf.mxu0 }
  0xdb   : > { %1272 = vmatmul.bf16.gmra.mxu1 %v5550_v5  ;;  %1381 = vmatmul.bf16.gmra.mxu2 %v5554_v6  ;;  %v7351_v6 = vld [vmem:[%s9005_s4] ss:$0 sm:$0xff] }
  0xdc   : > { %v1145_v18 = vadd.f32 %v7351_v6, %v7303_v44 }
  0xde   : > { %1490 = vmatmul.bf16.gmra.mxu3 %v5558_v8  ;;  %v7265_v9 = vpop.f32.mrf.mxu2  ;;  %v6373_v8 = vld [vmem:[%s7181_s22 + $0xc4] sm:$0xf] }
  0xdf   : > { %v5614_v20 = vor.u32 %v6373_v8, %v5611_v12  ;;  %v5638_v12 = vor.u32 %v6378_v54, %v5635_v56 }
  0xe0   : > { %v7269_v11 = vpop.f32.mrf.mxu1 }
  0xe1   : > { %v7267_v10 = vpop.f32.mrf.mxu3 }
  0xe2   : > { %v7313_v52 = vpop.f32.mrf.mxu0 }
  0xe6   : > { %v7279_v22 = vpop.f32.mrf.mxu2 }
  0xe8   : > { %v7283_v26 = vpop.f32.mrf.mxu1 }
  0xe9   : > { %v7281_v23 = vpop.f32.mrf.mxu3 }
  0xea   : > { %v7335_v2 = vpop.f32.mrf.mxu0 }
  0xeb   : > { %1277 = vmatmul.bf16.gmra.mxu1 %v5566_v24  ;;  %1386 = vmatmul.bf16.gmra.mxu2 %v5570_v25 }
  0xee   : > { %1495 = vmatmul.bf16.gmra.mxu3 %v5574_v27  ;;  %v7285_v28 = vpop.f32.mrf.mxu2  ;;  %v5622_v27 = vor.u32 %v6374_v15, %v5619_v16  ;;  %v6507_v15 = vld [vmem:[#allocation8 + $0x170] sm:$0xff] }
  0xef   : > { %v6467_v16 = vld [vmem:[#allocation8 + $0x30] sm:$0xff]  ;;  %3033 = vmatpush.bf16.msra.mxu2 %v6507_v15 }
  0xf0   : > { %v7289_v30 = vpop.f32.mrf.mxu1  ;;  %3266 = vmatpush.bf16.msra.mxu3 %v6467_v16 }
  0xf1   : > { %v7287_v29 = vpop.f32.mrf.mxu3 }
  0xf2   : > { %v7370_v24 = vpop.f32.mrf.mxu0 }
  0xf6   : > { %v7297_v38 = vpop.f32.mrf.mxu2 }
  0xf8   : > { %v7301_v42 = vpop.f32.mrf.mxu1 }
  0xf9   : > { %v7299_v39 = vpop.f32.mrf.mxu3 }
  0xfb   : > { %1282 = vmatmul.bf16.gmra.mxu1 %v5582_v40  ;;  %1391 = vmatmul.bf16.gmra.mxu2 %v5586_v41  ;;  %v7382_v40 = vpop.f32.mrf.mxu0  ;;  %v6377_v41 = vld [vmem:[%s7181_s22 + $0xe4] sm:$0xf] }
  0xfe   : > { %1500 = vmatmul.bf16.gmra.mxu3 %v5590_v43  ;;  %v7305_v47 = vpop.f32.mrf.mxu2  ;;  %v1147_v43 = vadd.f32 %v7351_v6, %v7313_v52  ;;  %v1150_v52 = vadd.f32 %v7351_v6, %v7335_v2 }
 0x100   : > { %v7309_v49 = vpop.f32.mrf.mxu1 }
 0x101   : > { %v7307_v48 = vpop.f32.mrf.mxu3 }
 0x106   : > { %v7321_v58 = vpop.f32.mrf.mxu2 }
 0x108   : > { %v7327_v62 = vpop.f32.mrf.mxu1 }
 0x109   : > { %v7324_v59 = vpop.f32.mrf.mxu3 }
 0x10b   : > { %1287 = vmatmul.bf16.gmra.mxu1 %v5598_v60  ;;  %1396 = vmatmul.bf16.gmra.mxu2 %v5602_v61  ;;  %v5630_v60 = vor.u32 %v6377_v41, %v5627_v45 }
 0x10e   : > { %1505 = vmatmul.bf16.gmra.mxu3 %v5606_v63  ;;  %v7337_v3 = vpop.f32.mrf.mxu2 }
 0x110   : > { %v7343_v5 = vpop.f32.mrf.mxu1 }
 0x111   : > { %v7340_v4 = vpop.f32.mrf.mxu3 }
 0x116   : > { %v7362_v17 = vpop.f32.mrf.mxu2 }
 0x118   : > { %v1253_v25 = vpop.f32.mrf.mxu1 }
 0x119   : > { %v7367_v19 = vpop.f32.mrf.mxu3  ;;  %v1254_v32 = vadd.f32 %v1253_v25, %v1145_v18 }
 0x11b   : > { %1292 = vmatmul.bf16.gmra.mxu1 %v5614_v20  ;;  %1401 = vmatmul.bf16.gmra.mxu2 %v5618_v21  ;;  %v7403_v20 = vpop.f32.mrf.mxu0 }
 0x11e   : > { %1510 = vmatmul.bf16.gmra.mxu3 %v5622_v27  ;;  %v1362_v33 = vpop.f32.mrf.mxu2 }
 0x11f   : > { %v1363_v34 = vadd.f32 %v1362_v33, %v1254_v32 }
 0x120   : > { %v1255_v36 = vpop.f32.mrf.mxu1 }
 0x121   : > { %v1471_v35 = vpop.f32.mrf.mxu3  ;;  %v1256_v53 = vadd.f32 %v1255_v36, %v1147_v43  ;;  %v6381_v43 = vld [vmem:[%s7181_s22 + $0x104] sm:$0xf] }
 0x122   : > { %v1472_v37 = vadd.f32 %v1471_v35, %v1363_v34 }
 0x124   : > { %v1571_v44 = vmax.f32 %v1472_v37, 0.0 }
 0x126   : > { %v1651_v51 = vpack.c.bf16 %v1571_v44, %v1571_v44  ;;  %v1364_v57 = vpop.f32.mrf.mxu2  ;;  %v1152_v44 = vadd.f32 %v7351_v6, %v7370_v24  ;;  %v6485_v24 = vld [vmem:[#allocation8 + $0xc0] sm:$0xff] }
 0x127   : > { %v1365_v63 = vadd.f32 %v1364_v57, %v1256_v53  ;;  %v6384_v53 = vld [vmem:[%s7181_s22 + $0x114] sm:$0xf0]  ;;  %v6382_v57 = vld [vmem:[%s7181_s22 + $0x10c] sm:$0xf]  ;;  %2861 = vmatpush.bf16.msrb.mxu0 %v6485_v24 }
 0x128   : > { %v1734_v61 = vrot.slane %v1651_v51, 7  ;;  %v1258_v8 = vpop.f32.mrf.mxu1  ;;  %v5649_v51 = vld [vmem:[%s7181_s22 + $0x108] sm:$0xf] }
 0x129   : > { %v1473_v0 = vpop.f32.mrf.mxu3  ;;  %v1259_v2 = vadd.f32 %v1258_v8, %v1150_v52  ;;  %v1155_v52 = vadd.f32 %v7351_v6, %v7382_v40 }
 0x12a   : > { %1894 = vst [vmem:[#allocation2] sm:$0xe] %v1734_v61  ;;  %v1474_v13 = vadd.f32 %v1473_v0, %v1365_v63  ;;  %v1735_v31 = vrot.slane %v1734_v61, 4  ;;  %v1159_v61 = vpop.f32.mrf.mxu0 }
 0x12b   : > { %1958 = vst [vmem:[#allocation2] sm:$0xf] %v9012_v55  ;;  %1297 = vmatmul.bf16.gmra.mxu1 %v5630_v60  ;;  %1406 = vmatmul.bf16.gmra.mxu2 %v5634_v1  ;;  %v5651_v60 = vld [vmem:[%s7181_s22 + $0x118] sm:$0xf0] }
 0x12c   : > { %v1572_v18 = vmax.f32 %v1474_v13, 0.0  ;;  %v5650_v13 = vor.u32 %v6384_v53, %v5649_v51  ;;  %v5654_v15 = vor.u32 %v6382_v57, %v5651_v60  ;;  %v6388_v51 = vld [vmem:[%s7181_s22 + $0x134] sm:$0xf0]  ;;  %v5667_v57 = vld [vmem:[%s7181_s22 + $0x138] sm:$0xf0]  ;;  %v1160_v60 = vadd.f32 %v7351_v6, %v1159_v61 }
 0x12e   : > { %1515 = vmatmul.bf16.gmra.mxu3 %v5638_v12  ;;  %v1652_v21 = vpack.c.bf16 %v1572_v18, %v1572_v18  ;;  %v1367_v27 = vpop.f32.mrf.mxu2  ;;  %v5646_v12 = vor.u32 %v6381_v43, %v5643_v46  ;;  %v6385_v43 = vld [vmem:[%s7181_s22 + $0x124] sm:$0xf]  ;;  %v5659_v46 = vld [vmem:[%s7181_s22 + $0x130] sm:$0xf0] }
 0x12f   : > { %v1368_v33 = vadd.f32 %v1367_v27, %v1259_v2 }
 0x130   : > { %v1736_v32 = vrot.slane %v1652_v21, 7  ;;  %v1260_v35 = vpop.f32.mrf.mxu1 }
 0x131   : > { %v1476_v34 = vpop.f32.mrf.mxu3  ;;  %v1261_v56 = vadd.f32 %v1260_v35, %v1152_v44  ;;  %v1157_v44 = vadd.f32 %v7351_v6, %v7403_v20  ;;  %v5666_v20 = vor.u32 %v6388_v51, %v5665_v50  ;;  %v5675_v50 = vld [vmem:[%s7181_s22 + $0x150] sm:$0xf0]  ;;  %v5681_v51 = vld [vmem:[%s7181_s22 + $0x148] sm:$0xf] }
 0x132   : > { %v1737_v36 = vsel %vm7407_vm2, %v1735_v31, %v1736_v32  ;;  %v1738_v37 = vrot.slane %v1736_v32, 4  ;;  %v1477_v41 = vadd.f32 %v1476_v34, %v1368_v33  ;;  %v1161_v34 = vpop.f32.mrf.mxu0 }
 0x133   : > { %1895 = vst [vmem:[#allocation2 + $0x4] sm:$0xf] %v1737_v36 }
 0x134   : > { %1896 = vst [vmem:[#allocation2 + $0x8] sm:$0x1] %v1738_v37  ;;  %v1573_v45 = vmax.f32 %v1477_v41, 0.0 }
 0x135   : > { %1959 = vst [vmem:[#allocation2 + $0x4] sm:$0xf] %v9012_v55 }
 0x136   : > { %1960 = vst [vmem:[#allocation2 + $0x8] sm:$0x3] %v9012_v55  ;;  %v1653_v54 = vpack.c.bf16 %v1573_v45, %v1573_v45  ;;  %v1369_v63 = vpop.f32.mrf.mxu2 }
 0x137   : > { %v1370_v1 = vadd.f32 %v1369_v63, %v1261_v56  ;;  %v6386_v56 = vld [vmem:[%s7181_s22 + $0x12c] sm:$0xf] }
 0x138   : > { %v1739_v0 = vrot.slane %v1653_v54, 7  ;;  %v1263_v14 = vpop.f32.mrf.mxu1 }
 0x139   : > { %v1478_v8 = vpop.f32.mrf.mxu3  ;;  %v1264_v2 = vadd.f32 %v1263_v14, %v1155_v52 }
 0x13a   : > { %1897 = vst [vmem:[#allocation2 + $0xc] sm:$0xe] %v1739_v0  ;;  %v1479_v16 = vadd.f32 %v1478_v8, %v1370_v1  ;;  %v1740_v27 = vrot.slane %v1739_v0, 4  ;;  %v5662_v1 = vor.u32 %v6385_v43, %v5659_v46  ;;  %v1164_v14 = vpop.f32.mrf.mxu0  ;;  %v6466_v46 = vld [vmem:[#allocation8 + $0x28] sm:$0xff] }
 0x13b   : > { %1961 = vst [vmem:[#allocation2 + $0xc] sm:$0xf] %v9012_v55  ;;  %1302 = vmatmul.bf16.gmra.mxu1 %v5646_v12  ;;  %1411 = vmatmul.bf16.gmra.mxu2 %v5650_v13  ;;  %v5670_v12 = vor.u32 %v6386_v56, %v5667_v57  ;;  %v6390_v57 = vld [vmem:[%s7181_s22 + $0x14c] sm:$0xf] }
 0x13c   : > { %v1574_v18 = vmax.f32 %v1479_v16, 0.0  ;;  %3267 = vmatpush.bf16.msra.mxu3 %v6466_v46  ;;  %v5691_v46 = vld [vmem:[%s7181_s22 + $0x170] sm:$0xf0] }
 0x13e   : > { %1520 = vmatmul.bf16.gmra.mxu3 %v5654_v15  ;;  %v1654_v40 = vpack.c.bf16 %v1574_v18, %v1574_v18  ;;  %v1372_v21 = vpop.f32.mrf.mxu2  ;;  %v6476_v15 = vld [vmem:[#allocation8 + $0x78] sm:$0xff] }
 0x13f   : > { %v1373_v32 = vadd.f32 %v1372_v21, %v1264_v2  ;;  %3354 = vmatpush.bf16.msra.mxu0 %v6476_v15 }
 0x140   : > { %v1741_v31 = vrot.slane %v1654_v40, 7  ;;  %v1265_v35 = vpop.f32.mrf.mxu1 }
 0x141   : > { %v1481_v33 = vpop.f32.mrf.mxu3  ;;  %v1266_v54 = vadd.f32 %v1265_v35, %v1157_v44 }
 0x142   : > { %v1742_v36 = vsel %vm7407_vm2, %v1740_v27, %v1741_v31  ;;  %v1743_v37 = vrot.slane %v1741_v31, 4  ;;  %v1482_v41 = vadd.f32 %v1481_v33, %v1373_v32  ;;  %v1166_v44 = vpop.f32.mrf.mxu0 }
 0x143   : > { %1898 = vst [vmem:[#allocation2 + $0x10] sm:$0xf] %v1742_v36 }
 0x144   : > { %1899 = vst [vmem:[#allocation2 + $0x14] sm:$0x1] %v1743_v37  ;;  %v1575_v45 = vmax.f32 %v1482_v41, 0.0  ;;  %v6389_v37 = vld [vmem:[%s7181_s22 + $0x144] sm:$0xf]  ;;  %v1162_v41 = vadd.f32 %v7351_v6, %v1161_v34 }
 0x145   : > { %1962 = vst [vmem:[#allocation2 + $0x10] sm:$0xf] %v9012_v55  ;;  %v5678_v34 = vor.u32 %v6389_v37, %v5675_v50  ;;  %v5697_v50 = vld [vmem:[%s7181_s22 + $0x168] sm:$0xf] }
 0x146   : > { %1963 = vst [vmem:[#allocation2 + $0x14] sm:$0x3] %v9012_v55  ;;  %v1655_v53 = vpack.c.bf16 %v1575_v45, %v1575_v45  ;;  %v1374_v52 = vpop.f32.mrf.mxu2  ;;  %v6506_v45 = vld [vmem:[#allocation8 + $0x168] sm:$0xff] }
 0x147   : > { %v1375_v24 = vadd.f32 %v1374_v52, %v1266_v54  ;;  %3034 = vmatpush.bf16.msra.mxu2 %v6506_v45  ;;  %v1165_v52 = vadd.f32 %v7351_v6, %v1164_v14  ;;  %v6393_v45 = vld [vmem:[%s7181_s22 + $0x164] sm:$0xf] }
 0x148   : > { %v1744_v63 = vrot.slane %v1655_v53, 7  ;;  %v1268_v8 = vpop.f32.mrf.mxu1  ;;  %v6392_v53 = vld [vmem:[%s7181_s22 + $0x154] sm:$0xf0] }
 0x149   : > { %v1483_v0 = vpop.f32.mrf.mxu3  ;;  %v1269_v18 = vadd.f32 %v1268_v8, %v1160_v60  ;;  %v5683_v60 = vld [vmem:[%s7181_s22 + $0x158] sm:$0xf0] }
 0x14a   : > { %1900 = vst [vmem:[#allocation2 + $0x18] sm:$0xe] %v1744_v63  ;;  %v1484_v13 = vadd.f32 %v1483_v0, %v1375_v24  ;;  %v1745_v40 = vrot.slane %v1744_v63, 4 }
 0x14b   : > { %1307 = vmatmul.bf16.gmra.mxu1 %v5662_v1  ;;  %1416 = vmatmul.bf16.gmra.mxu2 %v5666_v20  ;;  %v5682_v20 = vor.u32 %v6392_v53, %v5681_v51  ;;  %v6396_v51 = vld [vmem:[%s7181_s22 + $0x174] sm:$0xf0] }
 0x14c   : > { %v1576_v16 = vmax.f32 %v1484_v13, 0.0 }
 0x14e   : > { %1525 = vmatmul.bf16.gmra.mxu3 %v5670_v12  ;;  %v1656_v61 = vpack.c.bf16 %v1576_v16, %v1576_v16  ;;  %v1377_v2 = vpop.f32.mrf.mxu2  ;;  %v5686_v12 = vor.u32 %v6390_v57, %v5683_v60  ;;  %v6498_v16 = vld [vmem:[#allocation8 + $0x128] sm:$0xff]  ;;  %v5699_v57 = vld [vmem:[%s7181_s22 + $0x178] sm:$0xf0] }
 0x14f   : > { %v1378_v27 = vadd.f32 %v1377_v2, %v1269_v18  ;;  %2945 = vmatpush.bf16.msra.mxu1 %v6498_v16  ;;  %v1169_v2 = vpop.f32.mrf.mxu0  ;;  %v6475_v16 = vld [vmem:[#allocation8 + $0x70] sm:$0xff] }
 0x150   : > { %v1746_v21 = vrot.slane %v1656_v61, 7  ;;  %v1270_v32 = vpop.f32.mrf.mxu1  ;;  %v1170_v60 = vadd.f32 %v7351_v6, %v1169_v2  ;;  %3355 = vmatpush.bf16.msra.mxu0 %v6475_v16  ;;  %v6505_v16 = vld [vmem:[#allocation8 + $0x160] sm:$0xff] }
 0x151   : > { %v1486_v31 = vpop.f32.mrf.mxu3  ;;  %v1271_v56 = vadd.f32 %v1270_v32, %v1162_v41  ;;  %v1167_v41 = vadd.f32 %v7351_v6, %v1166_v44  ;;  %3035 = vmatpush.bf16.msra.mxu2 %v6505_v16 }
 0x152   : > { %v1747_v33 = vsel %vm7407_vm2, %v1745_v40, %v1746_v21  ;;  %v1748_v35 = vrot.slane %v1746_v21, 4  ;;  %v1487_v36 = vadd.f32 %v1486_v31, %v1378_v27 }
 0x153   : > { %1901 = vst [vmem:[#allocation2 + $0x1c] sm:$0xf] %v1747_v33 }
 0x154   : > { %1902 = vst [vmem:[#allocation2 + $0x20] sm:$0x1] %v1748_v35  ;;  %v1577_v43 = vmax.f32 %v1487_v36, 0.0 }
 0x156   : > { %v1657_v54 = vpack.c.bf16 %v1577_v43, %v1577_v43  ;;  %v1379_v63 = vpop.f32.mrf.mxu2 }
 0x157   : > { %v1380_v0 = vadd.f32 %v1379_v63, %v1271_v56  ;;  %v6394_v56 = vld [vmem:[%s7181_s22 + $0x16c] sm:$0xf] }
 0x158   : > { %v1749_v24 = vrot.slane %v1657_v54, 7  ;;  %v1273_v8 = vpop.f32.mrf.mxu1  ;;  %v5702_v44 = vor.u32 %v6394_v56, %v5699_v57  ;;  %v6398_v57 = vld [vmem:[%s7181_s22 + $0x18c] sm:$0xf] }
 0x159   : > { %v1488_v1 = vpop.f32.mrf.mxu3  ;;  %v1274_v61 = vadd.f32 %v1273_v8, %v1165_v52 }
 0x15a   : > { %1903 = vst [vmem:[#allocation2 + $0x24] sm:$0xe] %v1749_v24  ;;  %v1489_v13 = vadd.f32 %v1488_v1, %v1380_v0  ;;  %v7449_v15 = vld [vmem:[#allocation2 + $0x18] sm:$0xff]   ;;  %v1750_v21 = vrot.slane %v1749_v24, 4  ;;  %v1171_v1 = vpop.f32.mrf.mxu0 }
 0x15b   : > { %2862 = vmatmul.bf16.vlgmr.msrb.gmra.mxu0 %v7449_v15  ;;  %1312 = vmatmul.bf16.gmra.mxu1 %v5678_v34  ;;  %v5694_v34 = vor.u32 %v6393_v45, %v5691_v46  ;;  %v6397_v46 = vld [vmem:[%s7181_s22 + $0x184] sm:$0xf] }
 0x15c   : > { %v1578_v18 = vmax.f32 %v1489_v13, 0.0  ;;  %1421 = vmatmul.bf16.gmra.mxu2 %v5682_v20  ;;  %v5698_v20 = vor.u32 %v6396_v51, %v5697_v50  ;;  %v5707_v50 = vld [vmem:[%s7181_s22 + $0x190] sm:$0xf0]  ;;  %v5713_v51 = vld [vmem:[%s7181_s22 + $0x188] sm:$0xf] }
 0x15e   : > { %1530 = vmatmul.bf16.gmra.mxu3 %v5686_v12  ;;  %v1658_v14 = vpack.c.bf16 %v1578_v18, %v1578_v18  ;;  %v1382_v40 = vpop.f32.mrf.mxu2 }
 0x15f   : > { %v1383_v31 = vadd.f32 %v1382_v40, %v1274_v61 }
 0x160   : > { %v1751_v27 = vrot.slane %v1658_v14, 7  ;;  %v1275_v33 = vpop.f32.mrf.mxu1 }
 0x161   : > { %v1491_v32 = vpop.f32.mrf.mxu3  ;;  %v1276_v54 = vadd.f32 %v1275_v33, %v1167_v41 }
 0x162   : > { %v1752_v35 = vsel %vm7407_vm2, %v1750_v21, %v1751_v27  ;;  %v1753_v36 = vrot.slane %v1751_v27, 4  ;;  %v1492_v37 = vadd.f32 %v1491_v32, %v1383_v31  ;;  %v1174_v41 = vpop.f32.mrf.mxu0 }
 0x163   : > { %1904 = vst [vmem:[#allocation2 + $0x28] sm:$0xf] %v1752_v35 }
 0x164   : > { %1905 = vst [vmem:[#allocation2 + $0x2c] sm:$0x1] %v1753_v36  ;;  %v1579_v43 = vmax.f32 %v1492_v37, 0.0 }
 0x166   : > { %v1659_v53 = vpack.c.bf16 %v1579_v43, %v1579_v43  ;;  %v1384_v52 = vpop.f32.mrf.mxu2  ;;  %v1172_v43 = vadd.f32 %v7351_v6, %v1171_v1 }
 0x167   : > { %v1385_v24 = vadd.f32 %v1384_v52, %v1276_v54  ;;  %v1175_v52 = vadd.f32 %v7351_v6, %v1174_v41 }
 0x168   : > { %v1754_v63 = vrot.slane %v1659_v53, 7  ;;  %v1278_v8 = vpop.f32.mrf.mxu1  ;;  %v6400_v53 = vld [vmem:[%s7181_s22 + $0x194] sm:$0xf0] }
 0x169   : > { %v1493_v0 = vpop.f32.mrf.mxu3  ;;  %v1279_v14 = vadd.f32 %v1278_v8, %v1170_v60  ;;  %v5715_v60 = vld [vmem:[%s7181_s22 + $0x198] sm:$0xf0]  ;;  %v5714_v8 = vor.u32 %v6400_v53, %v5713_v51  ;;  %v6401_v51 = vld [vmem:[%s7181_s22 + $0x1a4] sm:$0xf] }
 0x16a   : > { %1906 = vst [vmem:[#allocation2 + $0x30] sm:$0xe] %v1754_v63  ;;  %v1494_v12 = vadd.f32 %v1493_v0, %v1385_v24  ;;  %v7462_v13 = vld [vmem:[#allocation2 + $0x24] sm:$0xff]   ;;  %v1755_v21 = vrot.slane %v1754_v63, 4  ;;  %v6497_v53 = vld [vmem:[#allocation8 + $0x120] sm:$0xff] }
 0x16b   : > { %v2138_v18 = vunpack.c.h.b16 %v7462_v13  ;;  %1317 = vmatmul.bf16.gmra.mxu1 %v5694_v34  ;;  %2867 = vmatmul.bf16.gmra.mxu0 %v7462_v13 }
 0x16c   : > { %v1580_v61 = vmax.f32 %v1494_v12, 0.0  ;;  %1426 = vmatmul.bf16.gmra.mxu2 %v5698_v20  ;;  %v5710_v20 = vor.u32 %v6397_v46, %v5707_v50  ;;  %v5718_v12 = vor.u32 %v6398_v57, %v5715_v60  ;;  %v6404_v57 = vld [vmem:[%s7181_s22 + $0x1b4] sm:$0xf0]  ;;  %2946 = vmatpush.bf16.msra.mxu1 %v6497_v53 }
 0x16e   : > { %1535 = vmatmul.bf16.gmra.mxu3 %v5702_v44  ;;  %v1660_v2 = vpack.c.bf16 %v1580_v61, %v1580_v61  ;;  %v1387_v40 = vpop.f32.mrf.mxu2  ;;  %v6465_v61 = vld [vmem:[#allocation8 + $0x20] sm:$0xff] }
 0x16f   : > { %v1388_v31 = vadd.f32 %v1387_v40, %v1279_v14  ;;  %v1176_v40 = vpop.f32.mrf.mxu0  ;;  %3268 = vmatpush.bf16.msra.mxu3 %v6465_v61 }
 0x170   : > { %v1756_v27 = vrot.slane %v1660_v2, 7  ;;  %v1280_v33 = vpop.f32.mrf.mxu1  ;;  %v1177_v46 = vadd.f32 %v7351_v6, %v1176_v40 }
 0x171   : > { %v1496_v32 = vpop.f32.mrf.mxu3  ;;  %v1281_v56 = vadd.f32 %v1280_v33, %v1172_v43 }
 0x172   : > { %v1757_v35 = vsel %vm7407_vm2, %v1755_v21, %v1756_v27  ;;  %v1758_v36 = vrot.slane %v1756_v27, 4  ;;  %v1497_v37 = vadd.f32 %v1496_v32, %v1388_v31 }
 0x173   : > { %1907 = vst [vmem:[#allocation2 + $0x34] sm:$0xf] %v1757_v35 }
 0x174   : > { %1908 = vst [vmem:[#allocation2 + $0x38] sm:$0x1] %v1758_v36  ;;  %v1581_v45 = vmax.f32 %v1497_v37, 0.0 }
 0x176   : > { %v1661_v54 = vpack.c.bf16 %v1581_v45, %v1581_v45  ;;  %v1389_v63 = vpop.f32.mrf.mxu2 }
 0x177   : > { %v1390_v0 = vadd.f32 %v1389_v63, %v1281_v56  ;;  %v5729_v56 = vld [vmem:[%s7181_s22 + $0x1a8] sm:$0xf]  ;;  %v1179_v63 = vpop.f32.mrf.mxu0 }
 0x178   : > { %v1759_v24 = vrot.slane %v1661_v54, 7  ;;  %v1283_v44 = vpop.f32.mrf.mxu1  ;;  %v5723_v54 = vld [vmem:[%s7181_s22 + $0x1b0] sm:$0xf0]  ;;  %v5730_v16 = vor.u32 %v6404_v57, %v5729_v56 }
 0x179   : > { %v1498_v34 = vpop.f32.mrf.mxu3  ;;  %v1284_v2 = vadd.f32 %v1283_v44, %v1175_v52 }
 0x17a   : > { %1909 = vst [vmem:[#allocation2 + $0x3c] sm:$0xe] %v1759_v24  ;;  %v1499_v1 = vadd.f32 %v1498_v34, %v1390_v0  ;;  %v7476_v27 = vld [vmem:[#allocation2 + $0x30] sm:$0xff]   ;;  %v1760_v32 = vrot.slane %v1759_v24, 4  ;;  %v6402_v24 = vld [vmem:[%s7181_s22 + $0x1ac] sm:$0xf]  ;;  %v1180_v34 = vadd.f32 %v7351_v6, %v1179_v63 }
 0x17b   : > { %1322 = vmatmul.bf16.gmra.mxu1 %v5710_v20  ;;  %2872 = vmatmul.bf16.gmra.mxu0 %v7476_v27  ;;  %v5731_v0 = vld [vmem:[%s7181_s22 + $0x1b8] sm:$0xf0]  ;;  %v5745_v63 = vld [vmem:[%s7181_s22 + $0x1c8] sm:$0xf] }
 0x17c   : > { %v1582_v14 = vmax.f32 %v1499_v1, 0.0  ;;  %1431 = vmatmul.bf16.gmra.mxu2 %v5714_v8  ;;  %v5726_v1 = vor.u32 %v6401_v51, %v5723_v54 }
 0x17e   : > { %1540 = vmatmul.bf16.gmra.mxu3 %v5718_v12  ;;  %v1662_v21 = vpack.c.bf16 %v1582_v14, %v1582_v14  ;;  %v1392_v31 = vpop.f32.mrf.mxu2  ;;  %v5734_v14 = vor.u32 %v6402_v24, %v5731_v0  ;;  %v6408_v24 = vld [vmem:[%s7181_s22 + $0x1d4] sm:$0xf0] }
 0x17f   : > { %v1393_v35 = vadd.f32 %v1392_v31, %v1284_v2 }
 0x180   : > { %v1761_v33 = vrot.slane %v1662_v21, 7  ;;  %v1285_v37 = vpop.f32.mrf.mxu1  ;;  %v6474_v21 = vld [vmem:[#allocation8 + $0x68] sm:$0xff] }
 0x181   : > { %v1501_v36 = vpop.f32.mrf.mxu3  ;;  %v1286_v52 = vadd.f32 %v1285_v37, %v1177_v46  ;;  %3356 = vmatpush.bf16.msra.mxu0 %v6474_v21  ;;  %v1181_v46 = vpop.f32.mrf.mxu0 }
 0x182   : > { %v1762_v41 = vsel %vm7407_vm2, %v1760_v32, %v1761_v33  ;;  %v1763_v43 = vrot.slane %v1761_v33, 4  ;;  %v1502_v45 = vadd.f32 %v1501_v36, %v1393_v35  ;;  %v1182_v56 = vadd.f32 %v7351_v6, %v1181_v46 }
 0x183   : > { %1910 = vst [vmem:[#allocation2 + $0x40] sm:$0xf] %v1762_v41 }
 0x184   : > { %1911 = vst [vmem:[#allocation2 + $0x44] sm:$0x1] %v1763_v43  ;;  %v1583_v50 = vmax.f32 %v1502_v45, 0.0 }
 0x186   : > { %v1663_v60 = vpack.c.bf16 %v1583_v50, %v1583_v50  ;;  %v1394_v20 = vpop.f32.mrf.mxu2 }
 0x187   : > { %v1395_v44 = vadd.f32 %v1394_v20, %v1286_v52  ;;  %v5739_v52 = vld [vmem:[%s7181_s22 + $0x1d0] sm:$0xf0]  ;;  %v6406_v20 = vld [vmem:[%s7181_s22 + $0x1cc] sm:$0xf] }
 0x188   : > { %v1764_v8 = vrot.slane %v1663_v60, 7  ;;  %v1288_v61 = vpop.f32.mrf.mxu1  ;;  %v6405_v60 = vld [vmem:[%s7181_s22 + $0x1c4] sm:$0xf] }
 0x189   : > { %v1503_v12 = vpop.f32.mrf.mxu3  ;;  %v1289_v33 = vadd.f32 %v1288_v61, %v1180_v34  ;;  %v5742_v61 = vor.u32 %v6405_v60, %v5739_v52  ;;  %v1187_v60 = vadd.f32 %v7351_v6, %v7269_v11 }
 0x18a   : > { %1912 = vst [vmem:[#allocation2 + $0x48] sm:$0xe] %v1764_v8  ;;  %v1504_v2 = vadd.f32 %v1503_v12, %v1395_v44  ;;  %v7489_v40 = vld [vmem:[#allocation2 + $0x3c] sm:$0xff]   ;;  %v1765_v37 = vrot.slane %v1764_v8, 4  ;;  %v5747_v8 = vld [vmem:[%s7181_s22 + $0x1d8] sm:$0xf0] }
 0x18b   : > { %9080 = vst [vmem:[#allocation17_spill] sm:$0xff] %v7489_v40  ;;  %v2142_v31 = vunpack.c.h.b16 %v7489_v40  ;;  %1327 = vmatmul.bf16.gmra.mxu1 %v5726_v1  ;;  %2877 = vmatmul.bf16.gmra.mxu0 %v7489_v40  ;;  %v5750_v21 = vor.u32 %v6406_v20, %v5747_v8  ;;  %v6412_v20 = vld [vmem:[%s7181_s22 + $0x1f4] sm:$0xf0] }
 0x18c   : > { %v1584_v32 = vmax.f32 %v1504_v2, 0.0  ;;  %1436 = vmatmul.bf16.gmra.mxu2 %v5730_v16 }
 0x18e   : > { %1545 = vmatmul.bf16.gmra.mxu3 %v5734_v14  ;;  %v1664_v35 = vpack.c.bf16 %v1584_v32, %v1584_v32  ;;  %v1397_v36 = vpop.f32.mrf.mxu2  ;;  %v5746_v14 = vor.u32 %v6408_v24, %v5745_v63  ;;  %v6504_v63 = vld [vmem:[#allocation8 + $0x158] sm:$0xff] }
 0x18f   : > { %v1398_v43 = vadd.f32 %v1397_v36, %v1289_v33  ;;  %v1185_v33 = vadd.f32 %v7351_v6, %v7263_v7  ;;  %v6464_v24 = vld [vmem:[#allocation8 + $0x18] sm:$0xff]  ;;  %3036 = vmatpush.bf16.msra.mxu2 %v6504_v63  ;;  %v6503_v63 = vld [vmem:[#allocation8 + $0x150] sm:$0xff] }
 0x190   : > { %v1766_v41 = vrot.slane %v1664_v35, 7  ;;  %v1290_v50 = vpop.f32.mrf.mxu1  ;;  %3269 = vmatpush.bf16.msra.mxu3 %v6464_v24  ;;  %v6463_v24 = vld [vmem:[#allocation8 + $0x10] sm:$0xff] }
 0x191   : > { %v1506_v45 = vpop.f32.mrf.mxu3  ;;  %v1291_v34 = vadd.f32 %v1290_v50, %v1182_v56 }
 0x192   : > { %v1767_v51 = vsel %vm7407_vm2, %v1765_v37, %v1766_v41  ;;  %v1768_v53 = vrot.slane %v1766_v41, 4  ;;  %v1507_v54 = vadd.f32 %v1506_v45, %v1398_v43 }
 0x193   : > { %1913 = vst [vmem:[#allocation2 + $0x4c] sm:$0xf] %v1767_v51  ;;  %3037 = vmatpush.bf16.msra.mxu2 %v6503_v63 }
 0x194   : > { %1914 = vst [vmem:[#allocation2 + $0x50] sm:$0x1] %v1768_v53  ;;  %v1585_v57 = vmax.f32 %v1507_v54, 0.0  ;;  %3270 = vmatpush.bf16.msra.mxu3 %v6463_v24 }
 0x196   : > { %v1665_v0 = vpack.c.bf16 %v1585_v57, %v1585_v57  ;;  %v1399_v44 = vpop.f32.mrf.mxu2  ;;  %v6409_v57 = vld [vmem:[%s7181_s22 + $0x1e4] sm:$0xf] }
 0x197   : > { %v1400_v1 = vadd.f32 %v1399_v44, %v1291_v34  ;;  %v5761_v34 = vld [vmem:[%s7181_s22 + $0x1e8] sm:$0xf] }
 0x198   : > { %v1769_v12 = vrot.slane %v1665_v0, 7  ;;  %v1293_v2 = vpop.f32.mrf.mxu1  ;;  %v5755_v0 = vld [vmem:[%s7181_s22 + $0x1f0] sm:$0xf0] }
 0x199   : > { %v1508_v16 = vpop.f32.mrf.mxu3  ;;  %v1294_v37 = vadd.f32 %v1293_v2, %v1185_v33 }
 0x19a   : > { %1915 = vst [vmem:[#allocation2 + $0x54] sm:$0xe] %v1769_v12  ;;  %v1509_v32 = vadd.f32 %v1508_v16, %v1400_v1  ;;  %v7504_v41 = vld [vmem:[#allocation2 + $0x48] sm:$0xff]   ;;  %v1770_v45 = vrot.slane %v1769_v12, 4  ;;  %v6410_v12 = vld [vmem:[%s7181_s22 + $0x1ec] sm:$0xf] }
 0x19b   : > { %1332 = vmatmul.bf16.gmra.mxu1 %v5742_v61  ;;  %2882 = vmatmul.bf16.gmra.mxu0 %v7504_v41  ;;  %v5763_v1 = vld [vmem:[%s7181_s22 + $0x1f8] sm:$0xf0] }
 0x19c   : > { %v1586_v35 = vmax.f32 %v1509_v32, 0.0  ;;  %1441 = vmatmul.bf16.gmra.mxu2 %v5746_v14  ;;  %v5762_v32 = vor.u32 %v6412_v20, %v5761_v34  ;;  %v5766_v33 = vor.u32 %v6410_v12, %v5763_v1  ;;  %v6494_v1 = vld [vmem:[#allocation8 + $0x108] sm:$0xff] }
 0x19e   : > { %1550 = vmatmul.bf16.gmra.mxu3 %v5750_v21  ;;  %v1666_v36 = vpack.c.bf16 %v1586_v35, %v1586_v35  ;;  %v1402_v43 = vpop.f32.mrf.mxu2  ;;  %v5758_v21 = vor.u32 %v6409_v57, %v5755_v0 }
 0x19f   : > { %v1403_v50 = vadd.f32 %v1402_v43, %v1294_v37  ;;  %v6496_v37 = vld [vmem:[#allocation8 + $0x118] sm:$0xff]  ;;  %v6473_v43 = vld [vmem:[#allocation8 + $0x60] sm:$0xff] }
 0x1a0   : > { %v1771_v46 = vrot.slane %v1666_v36, 7  ;;  %v1295_v7 = vpop.f32.mrf.mxu1  ;;  %2947 = vmatpush.bf16.msra.mxu1 %v6496_v37  ;;  %3357 = vmatpush.bf16.msra.mxu0 %v6473_v43 }
 0x1a1   : > { %v1511_v51 = vpop.f32.mrf.mxu3  ;;  %v1296_v44 = vadd.f32 %v1295_v7, %v1187_v60 }
 0x1a2   : > { %v1772_v53 = vsel %vm7407_vm2, %v1770_v45, %v1771_v46  ;;  %v1773_v54 = vrot.slane %v1771_v46, 4  ;;  %v1512_v56 = vadd.f32 %v1511_v51, %v1403_v50  ;;  %v1190_v46 = vadd.f32 %v7351_v6, %v7283_v26 }
 0x1a3   : > { %1916 = vst [vmem:[#allocation2 + $0x58] sm:$0xf] %v1772_v53 }
 0x1a4   : > { %1917 = vst [vmem:[#allocation2 + $0x5c] sm:$0x1] %v1773_v54  ;;  %v1587_v52 = vmax.f32 %v1512_v56, 0.0 }
 0x1a6   : > { %v1667_v8 = vpack.c.bf16 %v1587_v52, %v1587_v52  ;;  %v1404_v16 = vpop.f32.mrf.mxu2  ;;  %v6495_v52 = vld [vmem:[#allocation8 + $0x110] sm:$0xff] }
 0x1a7   : > { %v1405_v14 = vadd.f32 %v1404_v16, %v1296_v44  ;;  %2948 = vmatpush.bf16.msra.mxu1 %v6495_v52  ;;  %v1192_v44 = vadd.f32 %v7351_v6, %v7289_v30  ;;  %v6502_v16 = vld [vmem:[#allocation8 + $0x148] sm:$0xff]  ;;  %v1195_v52 = vadd.f32 %v7351_v6, %v7301_v42 }
 0x1a8   : > { %v1774_v61 = vrot.slane %v1667_v8, 7  ;;  %v1298_v11 = vpop.f32.mrf.mxu1  ;;  %v6421_v8 = vld [vmem:[%s7181_s22 + $0x1c4] sm:$0xf]  ;;  %3038 = vmatpush.bf16.msra.mxu2 %v6502_v16 }
 0x1a9   : > { %v1513_v2 = vpop.f32.mrf.mxu3  ;;  %v1299_v7 = vadd.f32 %v1298_v11, %v1190_v46 }
 0x1aa   : > { %1918 = vst [vmem:[#allocation2 + $0x60] sm:$0xe] %v1774_v61  ;;  %v1514_v35 = vadd.f32 %v1513_v2, %v1405_v14  ;;  %v7517_v36 = vld [vmem:[#allocation2 + $0x54] sm:$0xff]   ;;  %v1775_v54 = vrot.slane %v1774_v61, 4  ;;  %v5771_v14 = vld [vmem:[%s7181_s22 + $0x1d0] sm:$0xf0] }
 0x1ab   : > { %9081 = vst [vmem:[#allocation18_spill] sm:$0xff] %v7517_v36  ;;  %v2146_v45 = vunpack.c.h.b16 %v7517_v36  ;;  %1337 = vmatmul.bf16.gmra.mxu1 %v5758_v21  ;;  %2887 = vmatmul.bf16.gmra.mxu0 %v7517_v36  ;;  %v6462_v61 = vld [vmem:[#allocation8 + $0x8] sm:$0xff]  ;;  %v6424_v21 = vld [vmem:[%s7181_s22 + $0x1d4] sm:$0xf0]  ;;  %v5774_v30 = vor.u32 %v6421_v8, %v5771_v14 }
 0x1ac   : > { %v1588_v50 = vmax.f32 %v1514_v35, 0.0  ;;  %1446 = vmatmul.bf16.gmra.mxu2 %v5762_v32  ;;  %v5777_v2 = vld [vmem:[%s7181_s22 + $0x1c8] sm:$0xf]  ;;  %v5779_v35 = vld [vmem:[%s7181_s22 + $0x1d8] sm:$0xf0]  ;;  %2949 = vmatpush.bf16.msra.mxu1 %v6494_v1 }
 0x1ad   : > { %3271 = vmatpush.bf16.msra.mxu3 %v6462_v61  ;;  %v7543_v61 = vld [vmem:[%s9005_s4] ss:$0 sm:$0xff] }
 0x1ae   : > { %1555 = vmatmul.bf16.gmra.mxu3 %v5766_v33  ;;  %v1668_v51 = vpack.c.bf16 %v1588_v50, %v1588_v50  ;;  %v1407_v53 = vpop.f32.mrf.mxu2  ;;  %v6422_v33 = vld [vmem:[%s7181_s22 + $0x1cc] sm:$0xf]  ;;  %v1197_v14 = vadd.f32 %v7543_v61, %v7309_v49 }
 0x1af   : > { %v1408_v57 = vadd.f32 %v1407_v53, %v1299_v7  ;;  %v6493_v7 = vld [vmem:[#allocation8 + $0x100] sm:$0xff] }
 0x1b0   : > { %v1776_v56 = vrot.slane %v1668_v51, 7  ;;  %v1300_v26 = vpop.f32.mrf.mxu1  ;;  %v5778_v51 = vor.u32 %v6424_v21, %v5777_v2  ;;  %v6501_v53 = vld [vmem:[#allocation8 + $0x140] sm:$0xff]  ;;  %2950 = vmatpush.bf16.msra.mxu1 %v6493_v7 }
 0x1b1   : > { %v1516_v60 = vpop.f32.mrf.mxu3  ;;  %v1301_v11 = vadd.f32 %v1300_v26, %v1192_v44  ;;  %3039 = vmatpush.bf16.msra.mxu2 %v6501_v53  ;;  %v6425_v21 = vld [vmem:[%s7181_s22 + $0x1e4] sm:$0xf] }
 0x1b2   : > { %v1777_v0 = vsel %vm7407_vm2, %v1775_v54, %v1776_v56  ;;  %v1778_v34 = vrot.slane %v1776_v56, 4  ;;  %v1517_v20 = vadd.f32 %v1516_v60, %v1408_v57  ;;  %v6461_v54 = vld [vmem:[#allocation8] sm:$0xff]  ;;  %v5782_v57 = vor.u32 %v6422_v33, %v5779_v35  ;;  %v6428_v33 = vld [vmem:[%s7181_s22 + $0x1f4] sm:$0xf0] }
 0x1b3   : > { %1919 = vst [vmem:[#allocation2 + $0x64] sm:$0xf] %v1777_v0  ;;  %3272 = vmatpush.bf16.msra.mxu3 %v6461_v54 }
 0x1b4   : > { %1920 = vst [vmem:[#allocation2 + $0x68] sm:$0x1] %v1778_v34  ;;  %v1589_v12 = vmax.f32 %v1517_v20, 0.0 }
 0x1b6   : > { %v1669_v32 = vpack.c.bf16 %v1589_v12, %v1589_v12  ;;  %v1409_v37 = vpop.f32.mrf.mxu2 }
 0x1b7   : > { %v1410_v46 = vadd.f32 %v1409_v37, %v1301_v11  ;;  %v5793_v11 = vld [vmem:[%s7181_s22 + $0x1e8] sm:$0xf] }
 0x1b8   : > { %v1779_v43 = vrot.slane %v1669_v32, 7  ;;  %v1303_v56 = vpop.f32.mrf.mxu1  ;;  %v5787_v32 = vld [vmem:[%s7181_s22 + $0x1f0] sm:$0xf0]  ;;  %v5794_v54 = vor.u32 %v6428_v33, %v5793_v11 }
 0x1b9   : > { %v1518_v50 = vpop.f32.mrf.mxu3  ;;  %v1304_v26 = vadd.f32 %v1303_v56, %v1195_v52  ;;  %v5790_v53 = vor.u32 %v6425_v21, %v5787_v32  ;;  %v6472_v52 = vld [vmem:[#allocation8 + $0x58] sm:$0xff] }
 0x1ba   : > { %1921 = vst [vmem:[#allocation2 + $0x6c] sm:$0xe] %v1779_v43  ;;  %v1519_v60 = vadd.f32 %v1518_v50, %v1410_v46  ;;  %v7535_v0 = vld [vmem:[#allocation2 + $0x60] sm:$0xff]   ;;  %v1780_v20 = vrot.slane %v1779_v43, 4  ;;  %v6426_v43 = vld [vmem:[%s7181_s22 + $0x1ec] sm:$0xf]  ;;  %3358 = vmatpush.bf16.msra.mxu0 %v6472_v52 }
 0x1bb   : > { %1342 = vmatmul.bf16.gmra.mxu1 %v5774_v30  ;;  %2892 = vmatmul.bf16.gmra.mxu0 %v7535_v0  ;;  %v5795_v46 = vld [vmem:[%s7181_s22 + $0x1f8] sm:$0xf0] }
 0x1bc   : > { %v1590_v63 = vmax.f32 %v1519_v60, 0.0  ;;  %1451 = vmatmul.bf16.gmra.mxu2 %v5778_v51 }
 0x1be   : > { %1560 = vmatmul.bf16.gmra.mxu3 %v5782_v57  ;;  %v1670_v24 = vpack.c.bf16 %v1590_v63, %v1590_v63  ;;  %v1412_v34 = vpop.f32.mrf.mxu2  ;;  %v5798_v57 = vor.u32 %v6426_v43, %v5795_v46 }
 0x1bf   : > { %v1413_v44 = vadd.f32 %v1412_v34, %v1304_v26  ;;  %v2016_v34 = vld [vmem:[#allocation2 + $0x20] sm:$0x1] }
 0x1c0   : > { %v1781_v8 = vrot.slane %v1670_v24, 7  ;;  %v1305_v42 = vpop.f32.mrf.mxu1  ;;  %v1200_v24 = vadd.f32 %v7543_v61, %v7327_v62 }
 0x1c1   : > { %v1521_v12 = vpop.f32.mrf.mxu3  ;;  %v1306_v37 = vadd.f32 %v1305_v42, %v1197_v14 }
 0x1c2   : > { %v1782_v6 = vsel %vm7407_vm2, %v1780_v20, %v1781_v8  ;;  %v1783_v1 = vrot.slane %v1781_v8, 4  ;;  %v1522_v16 = vadd.f32 %v1521_v12, %v1413_v44  ;;  %v2056_v20 = vld [vmem:[#allocation2 + $0x20] sm:$0x3]  ;;  %v2015_v8 = vld [vmem:[#allocation2 + $0x18] sm:$0xe] }
 0x1c3   : > { %1922 = vst [vmem:[#allocation2 + $0x70] sm:$0xf] %v1782_v6  ;;  %v2055_v44 = vld [vmem:[#allocation2 + $0x18] sm:$0xc]  ;;  %v6573_v6 = vunpack.c.h.b16 %v7449_v15  ;;  %v2457_v14 = vunpack.c.l.b16 %v2056_v20  ;;  %v2255_v11 = vunpack.c.l.b16 %v2015_v8 }
 0x1c4   : > { %1923 = vst [vmem:[#allocation2 + $0x74] sm:$0x1] %v1783_v1  ;;  %v1591_v2 = vmax.f32 %v1522_v16, 0.0  ;;  %v2256_v16 = vunpack.c.l.b16 %v2016_v34  ;;  %v2456_v33 = vunpack.c.l.b16 %v2055_v44 }
 0x1c6   : > { %v1671_v35 = vpack.c.bf16 %v1591_v2, %v1591_v2  ;;  %v1414_v50 = vpop.f32.mrf.mxu2 }
 0x1c7   : > { %v1415_v51 = vadd.f32 %v1414_v50, %v1306_v37  ;;  %v2295_v50 = vpack.c.b16 %v6573_v6, %v2255_v11 }
 0x1c8   : > { %v1784_v30 = vrot.slane %v1671_v35, 7  ;;  %v1308_v56 = vpop.f32.mrf.mxu1 }
 0x1c9   : > { %v1523_v7 = vpop.f32.mrf.mxu3  ;;  %v1309_v42 = vadd.f32 %v1308_v56, %v1200_v24 }
 0x1ca   : > { %1924 = vst [vmem:[#allocation2 + $0x78] sm:$0xe] %v1784_v30  ;;  %v1524_v49 = vadd.f32 %v1523_v7, %v1415_v51  ;;  %v7553_v60 = vld [vmem:[#allocation2 + $0x6c] sm:$0xff]   ;;  %v1785_v2 = vrot.slane %v1784_v30, 4  ;;  %v2496_v51 = vpack.c.b16 %v6573_v6, %v2456_v33  ;;  %v2296_v7 = vpack.c.b16 %v2256_v16, %v2256_v16 }
 0x1cb   : > { %9082 = vst [vmem:[#allocation19_spill] sm:$0xff] %v7553_v60  ;;  %1347 = vmatmul.bf16.gmra.mxu1 %v5790_v53  ;;  %2897 = vmatmul.bf16.gmra.mxu0 %v7553_v60  ;;  %v2497_v53 = vpack.c.b16 %v2457_v14, %v2457_v14  ;;  %v1205_v14 = vadd.f32 %v7543_v61, %v7265_v9 }
 0x1cc   : > { %v1592_v26 = vmax.f32 %v1524_v49, 0.0  ;;  %1456 = vmatmul.bf16.gmra.mxu2 %v5794_v54  ;;  %v1202_v54 = vadd.f32 %v7543_v61, %v7343_v5  ;;  %v2338_v49 = vrot.slane %v2295_v50, 1  ;;  %v2539_v52 = vrot.slane %v2496_v51, 2  ;;  %v7566_v5 = vld [vmem:[#allocation2] sm:$0xff]  }
 0x1cd   : > { %v2540_v34 = vrot.slane %v2497_v53, 2 }
 0x1ce   : > { %1565 = vmatmul.bf16.gmra.mxu3 %v5798_v57  ;;  %v1672_v12 = vpack.c.bf16 %v1592_v26, %v1592_v26  ;;  %v1417_v1 = vpop.f32.mrf.mxu2  ;;  %v2339_v26 = vrot.slane %v2296_v7, 1 }
 0x1cf   : > { %v1418_v21 = vadd.f32 %v1417_v1, %v1309_v42  ;;  %v7572_v16 = vsel %vm2532_vm4, %v2539_v52, %v2540_v34 }
 0x1d0   : > { %v1786_v62 = vrot.slane %v1672_v12, 7  ;;  %v1310_v35 = vpop.f32.mrf.mxu1  ;;  %v7569_v1 = vsel %vm2331_vm3, %v2338_v49, %v2339_v26  ;;  %9083 = vst [vmem:[#allocation20_spill] sm:$0xff] %v7572_v16 }
 0x1d1   : > { %v1526_v32 = vpop.f32.mrf.mxu3  ;;  %v1311_v57 = vadd.f32 %v1310_v35, %v1202_v54  ;;  %v2017_v35 = vld [vmem:[#allocation2 + $0x24] sm:$0xe] }
 0x1d2   : > { %v1787_v37 = vsel %vm7407_vm2, %v1785_v2, %v1786_v62  ;;  %v1788_v43 = vrot.slane %v1786_v62, 4  ;;  %v1527_v46 = vadd.f32 %v1526_v32, %v1418_v21  ;;  %v2018_v62 = vld [vmem:[#allocation2 + $0x2c] sm:$0x1] }
 0x1d3   : > { %1925 = vst [vmem:[#allocation2 + $0x7c] sm:$0xf] %v1787_v37  ;;  %v2058_v21 = vld [vmem:[#allocation2 + $0x2c] sm:$0x3]  ;;  %v2057_v37 = vld [vmem:[#allocation2 + $0x24] sm:$0xc] }
 0x1d4   : > { %1926 = vst [vmem:[#allocation2 + $0x80] sm:$0x1] %v1788_v43  ;;  %v1593_v30 = vmax.f32 %v1527_v46, 0.0  ;;  %v2258_v46 = vunpack.c.l.b16 %v2018_v62  ;;  %v2459_v9 = vunpack.c.l.b16 %v2058_v21 }
 0x1d6   : > { %v1673_v56 = vpack.c.bf16 %v1593_v30, %v1593_v30  ;;  %v1419_v24 = vpop.f32.mrf.mxu2  ;;  %v2257_v30 = vunpack.c.l.b16 %v2017_v35  ;;  %v2298_v34 = vpack.c.b16 %v2258_v46, %v2258_v46 }
 0x1d7   : > { %v1420_v8 = vadd.f32 %v1419_v24, %v1311_v57  ;;  %v7584_v24 = vld [vmem:[#allocation2 + $0xc] sm:$0xff]  }
 0x1d8   : > { %v1789_v20 = vrot.slane %v1673_v56, 7  ;;  %v1313_v12 = vpop.f32.mrf.mxu1  ;;  %v7564_v6 = vpop.f32.mrf.mxu0  ;;  %v2458_v56 = vunpack.c.l.b16 %v2057_v37  ;;  %v2297_v26 = vpack.c.b16 %v2138_v18, %v2257_v30  ;;  %v1210_v30 = vadd.f32 %v7543_v61, %v7285_v28 }
 0x1d9   : > { %v1528_v44 = vpop.f32.mrf.mxu3  ;;  %v1314_v11 = vadd.f32 %v1313_v12, %v1205_v14  ;;  %v9101_v25 = vunpack.c.h.b16 %v7584_v24 }
 0x1da   : > { %1927 = vst [vmem:[#allocation2 + $0x84] sm:$0xe] %v1789_v20  ;;  %v1529_v42 = vadd.f32 %v1528_v44, %v1420_v8  ;;  %v7579_v33 = vld [vmem:[#allocation2 + $0x78] sm:$0xff]   ;;  %v1790_v50 = vrot.slane %v1789_v20, 4  ;;  %v2498_v20 = vpack.c.b16 %v2138_v18, %v2458_v56  ;;  %v2499_v8 = vpack.c.b16 %v2459_v9, %v2459_v9 }
 0x1db   : > { %2951 = vmatmul.bf16.vlgmr.msra.gmra.mxu1 %v7569_v1  ;;  %2902 = vmatmul.bf16.gmra.mxu0 %v7579_v33  ;;  %v1207_v44 = vadd.f32 %v7543_v61, %v7279_v22 }
 0x1dc   : > { %v1594_v2 = vmax.f32 %v1529_v42, 0.0  ;;  %3040 = vmatmul.bf16.vlgmr.msra.gmra.mxu2 %v7572_v16  ;;  %v2542_v35 = vrot.slane %v2498_v20, 2  ;;  %v2543_v37 = vrot.slane %v2499_v8, 2  ;;  %v2019_v20 = vld [vmem:[#allocation2 + $0x30] sm:$0xe] }
 0x1dd   : > { %v2059_v8 = vld [vmem:[#allocation2 + $0x30] sm:$0xc] }
 0x1de   : > { %3273 = vmatmul.bf16.vlgmr.msra.gmra.mxu3 %v7566_v5  ;;  %v1674_v32 = vpack.c.bf16 %v1594_v2, %v1594_v2 }
 0x1df   : > { %v1422_v43 = vpop.f32.mrf.mxu2 }
 0x1e0   : > { %v1791_v51 = vrot.slane %v1674_v32, 7  ;;  %v1423_v7 = vadd.f32 %v1422_v43, %v1314_v11  ;;  %v1315_v54 = vpop.f32.mrf.mxu1  ;;  %v7592_v42 = vpop.f32.mrf.mxu0  ;;  %v2341_v32 = vrot.slane %v2297_v26, 1  ;;  %v2342_v11 = vrot.slane %v2298_v34, 1 }
 0x1e1   : > { %v1531_v53 = vpop.f32.mrf.mxu3  ;;  %v1316_v62 = vadd.f32 %v1315_v54, %v1207_v44  ;;  %v6577_v44 = vunpack.c.h.b16 %v7476_v27 }
 0x1e2   : > { %v1792_v57 = vsel %vm7407_vm2, %v1790_v50, %v1791_v51  ;;  %v1793_v49 = vrot.slane %v1791_v51, 4  ;;  %v1532_v52 = vadd.f32 %v1531_v53, %v1423_v7  ;;  %v6471_v51 = vld [vmem:[#allocation8 + $0x50] sm:$0xff]  ;;  %v7598_v7 = vsel %vm2331_vm3, %v2341_v32, %v2342_v11 }
 0x1e3   : > { %1928 = vst [vmem:[#allocation2 + $0x88] sm:$0xf] %v1792_v57  ;;  %v7601_v53 = vsel %vm2532_vm4, %v2542_v35, %v2543_v37  ;;  %3359 = vmatpush.bf16.msra.mxu0 %v6471_v51  ;;  %v2259_v37 = vunpack.c.l.b16 %v2019_v20 }
 0x1e4   : > { %1929 = vst [vmem:[#allocation2 + $0x8c] sm:$0x1] %v1793_v49  ;;  %v1595_v12 = vmax.f32 %v1532_v52, 0.0  ;;  %v2020_v49 = vld [vmem:[#allocation2 + $0x38] sm:$0x1] }
 0x1e5   : > { %9085 = vst [vmem:[#allocation22_spill] sm:$0xff] %v7601_v53  ;;  %v2060_v52 = vld [vmem:[#allocation2 + $0x38] sm:$0x3]  ;;  %v2260_v28 = vunpack.c.l.b16 %v2020_v49  ;;  %v2299_v51 = vpack.c.b16 %v6577_v44, %v2259_v37  ;;  %v1212_v49 = vadd.f32 %v7543_v61, %v7297_v38 }
 0x1e6   : > { %v1675_v2 = vpack.c.bf16 %v1595_v12, %v1595_v12 }
 0x1e7   : > { %v1424_v21 = vpop.f32.mrf.mxu2  ;;  %v2300_v27 = vpack.c.b16 %v2260_v28, %v2260_v28 }
 0x1e8   : > { %v1794_v43 = vrot.slane %v1675_v2, 7  ;;  %v1425_v46 = vadd.f32 %v1424_v21, %v1316_v62  ;;  %v1318_v9 = vpop.f32.mrf.mxu1  ;;  %v7606_v57 = vpop.f32.mrf.mxu0  ;;  %v2461_v2 = vunpack.c.l.b16 %v2060_v52 }
 0x1e9   : > { %v1533_v18 = vpop.f32.mrf.mxu3  ;;  %v1319_v34 = vadd.f32 %v1318_v9, %v1210_v30 }
 0x1ea   : > { %1930 = vst [vmem:[#allocation2 + $0x90] sm:$0xe] %v1794_v43  ;;  %v1534_v50 = vadd.f32 %v1533_v18, %v1425_v46  ;;  %v7595_v22 = vld [vmem:[#allocation2 + $0x84] sm:$0xff]   ;;  %v1795_v62 = vrot.slane %v1794_v43, 4  ;;  %v2460_v46 = vunpack.c.l.b16 %v2059_v8  ;;  %v2344_v8 = vrot.slane %v2299_v51, 1 }
 0x1eb   : > { %9084 = vst [vmem:[#allocation21_spill] sm:$0xff] %v7595_v22  ;;  %2956 = vmatmul.bf16.gmra.mxu1 %v7598_v7  ;;  %2907 = vmatmul.bf16.gmra.mxu0 %v7595_v22 }
 0x1ec   : > { %v1596_v56 = vmax.f32 %v1534_v50, 0.0  ;;  %3045 = vmatmul.bf16.gmra.mxu2 %v7601_v53  ;;  %v2500_v30 = vpack.c.b16 %v6577_v44, %v2460_v46 }
 0x1ee   : > { %3278 = vmatmul.bf16.gmra.mxu3 %v7584_v24  ;;  %v1676_v26 = vpack.c.bf16 %v1596_v56, %v1596_v56  ;;  %v2501_v56 = vpack.c.b16 %v2461_v2, %v2461_v2 }
 0x1ef   : > { %v1427_v12 = vpop.f32.mrf.mxu2 }
 0x1f0   : > { %v1796_v21 = vrot.slane %v1676_v26, 7  ;;  %v1428_v32 = vadd.f32 %v1427_v12, %v1319_v34  ;;  %v1320_v35 = vpop.f32.mrf.mxu1  ;;  %v7617_v52 = vpop.f32.mrf.mxu0  ;;  %v2345_v12 = vrot.slane %v2300_v27, 1 }
 0x1f1   : > { %v1536_v11 = vpop.f32.mrf.mxu3  ;;  %v1321_v34 = vadd.f32 %v1320_v35, %v1212_v49  ;;  %v1215_v35 = vadd.f32 %v7543_v61, %v7305_v47  ;;  %v2061_v49 = vld [vmem:[#allocation2 + $0x3c] sm:$0xc] }
 0x1f2   : > { %v1797_v18 = vsel %vm7407_vm2, %v1795_v62, %v1796_v21  ;;  %v1798_v9 = vrot.slane %v1796_v21, 4  ;;  %v1537_v50 = vadd.f32 %v1536_v11, %v1428_v32  ;;  %v2545_v62 = vrot.slane %v2500_v30, 2 }
 0x1f3   : > { %1931 = vst [vmem:[#allocation2 + $0x94] sm:$0xf] %v1797_v18  ;;  %v2546_v21 = vrot.slane %v2501_v56, 2  ;;  %v7620_v2 = vsel %vm2331_vm3, %v2344_v8, %v2345_v12  ;;  %v2021_v56 = vld [vmem:[#allocation2 + $0x3c] sm:$0xe] }
 0x1f4   : > { %1932 = vst [vmem:[#allocation2 + $0x98] sm:$0x1] %v1798_v9  ;;  %v1597_v43 = vmax.f32 %v1537_v50, 0.0  ;;  %v2022_v9 = vld [vmem:[#allocation2 + $0x44] sm:$0x1] }
 0x1f5   : > { %v7623_v38 = vsel %vm2532_vm4, %v2545_v62, %v2546_v21  ;;  %v2062_v50 = vld [vmem:[#allocation2 + $0x44] sm:$0x3]  ;;  %v2262_v47 = vunpack.c.l.b16 %v2022_v9  ;;  %v2261_v21 = vunpack.c.l.b16 %v2021_v56  ;;  %v1217_v9 = vadd.f32 %v7543_v61, %v7321_v58  ;;  %v6470_v58 = vld [vmem:[#allocation8 + $0x48] sm:$0xff] }
 0x1f6   : > { %v1677_v26 = vpack.c.bf16 %v1597_v43, %v1597_v43  ;;  %9086 = vst [vmem:[#allocation23_spill] sm:$0xff] %v7623_v38  ;;  %3360 = vmatpush.bf16.msra.mxu0 %v6470_v58 }
 0x1f7   : > { %v1429_v20 = vpop.f32.mrf.mxu2 }
 0x1f8   : > { %v1799_v32 = vrot.slane %v1677_v26, 7  ;;  %v1430_v11 = vadd.f32 %v1429_v20, %v1321_v34  ;;  %v1323_v28 = vpop.f32.mrf.mxu1  ;;  %v7627_v18 = vpop.f32.mrf.mxu0  ;;  %v2463_v26 = vunpack.c.l.b16 %v2062_v50 }
 0x1f9   : > { %v1538_v37 = vpop.f32.mrf.mxu3  ;;  %v1324_v27 = vadd.f32 %v1323_v28, %v1215_v35  ;;  %v2302_v35 = vpack.c.b16 %v2262_v47, %v2262_v47 }
 0x1fa   : > { %1933 = vst [vmem:[#allocation2 + $0x9c] sm:$0xe] %v1799_v32  ;;  %v1539_v44 = vadd.f32 %v1538_v37, %v1430_v11  ;;  %v7632_v30 = vld [vmem:[#allocation2 + $0x90] sm:$0xff]   ;;  %v1800_v34 = vrot.slane %v1799_v32, 4  ;;  %v2462_v11 = vunpack.c.l.b16 %v2061_v49  ;;  %v2503_v32 = vpack.c.b16 %v2463_v26, %v2463_v26 }
 0x1fb   : > { %2961 = vmatmul.bf16.gmra.mxu1 %v7620_v2  ;;  %2912 = vmatmul.bf16.gmra.mxu0 %v7632_v30 }
 0x1fc   : > { %v1598_v46 = vmax.f32 %v1539_v44, 0.0  ;;  %3050 = vmatmul.bf16.gmra.mxu2 %v7623_v38  ;;  %v2301_v44 = vpack.c.b16 %v2142_v31, %v2261_v21 }
 0x1fe   : > { %3283 = vmatmul.bf16.gmra.mxu3 %v7449_v15  ;;  %v1678_v51 = vpack.c.bf16 %v1598_v46, %v1598_v46  ;;  %v2502_v46 = vpack.c.b16 %v2142_v31, %v2462_v11 }
 0x1ff   : > { %v1432_v43 = vpop.f32.mrf.mxu2 }
 0x200   : > { %v1801_v20 = vrot.slane %v1678_v51, 7  ;;  %v1433_v8 = vadd.f32 %v1432_v43, %v1324_v27  ;;  %v1325_v62 = vpop.f32.mrf.mxu1  ;;  %v7643_v51 = vpop.f32.mrf.mxu0  ;;  %v2347_v43 = vrot.slane %v2301_v44, 1 }
 0x201   : > { %v1541_v12 = vpop.f32.mrf.mxu3  ;;  %v1326_v56 = vadd.f32 %v1325_v62, %v1217_v9 }
 0x202   : > { %v1802_v15 = vsel %vm7407_vm2, %v1800_v34, %v1801_v20  ;;  %v1803_v37 = vrot.slane %v1801_v20, 4  ;;  %v1542_v28 = vadd.f32 %v1541_v12, %v1433_v8  ;;  %v2348_v34 = vrot.slane %v2302_v35, 1 }
 0x203   : > { %1934 = vst [vmem:[#allocation2 + $0xa0] sm:$0xf] %v1802_v15  ;;  %v2548_v20 = vrot.slane %v2502_v46, 2  ;;  %v2549_v8 = vrot.slane %v2503_v32, 2  ;;  %v2024_v46 = vld [vmem:[#allocation2 + $0x50] sm:$0x1] }
 0x204   : > { %1935 = vst [vmem:[#allocation2 + $0xa4] sm:$0x1] %v1803_v37  ;;  %v1599_v50 = vmax.f32 %v1542_v28, 0.0  ;;  %v7648_v11 = vsel %vm2331_vm3, %v2347_v43, %v2348_v34  ;;  %v1220_v28 = vadd.f32 %v7543_v61, %v7337_v3  ;;  %v2064_v32 = vld [vmem:[#allocation2 + $0x50] sm:$0x3]  ;;  %v2264_v3 = vunpack.c.l.b16 %v2024_v46 }
 0x205   : > { %v7651_v37 = vsel %vm2532_vm4, %v2548_v20, %v2549_v8  ;;  %v2465_v34 = vunpack.c.l.b16 %v2064_v32  ;;  %v1222_v46 = vadd.f32 %v7543_v61, %v7362_v17 }
 0x206   : > { %v1679_v27 = vpack.c.bf16 %v1599_v50, %v1599_v50  ;;  %9088 = vst [vmem:[#allocation25_spill] sm:$0xff] %v7651_v37 }
 0x207   : > { %v1434_v49 = vpop.f32.mrf.mxu2  ;;  %v2505_v54 = vpack.c.b16 %v2465_v34, %v2465_v34  ;;  %v1225_v34 = vadd.f32 %v7543_v61, %v7267_v10 }
 0x208   : > { %v1804_v12 = vrot.slane %v1679_v27, 7  ;;  %v1435_v47 = vadd.f32 %v1434_v49, %v1326_v56  ;;  %v1328_v15 = vpop.f32.mrf.mxu1  ;;  %v7656_v35 = vpop.f32.mrf.mxu0  ;;  %v2023_v27 = vld [vmem:[#allocation2 + $0x48] sm:$0xe]  ;;  %v6581_v49 = vunpack.c.h.b16 %v7504_v41  ;;  %v2304_v41 = vpack.c.b16 %v2264_v3, %v2264_v3 }
 0x209   : > { %v1543_v21 = vpop.f32.mrf.mxu3  ;;  %v1329_v50 = vadd.f32 %v1328_v15, %v1220_v28  ;;  %v2063_v56 = vld [vmem:[#allocation2 + $0x48] sm:$0xc]  ;;  %v2263_v62 = vunpack.c.l.b16 %v2023_v27 }
 0x20a   : > { %1936 = vst [vmem:[#allocation2 + $0xa8] sm:$0xe] %v1804_v12  ;;  %v1544_v31 = vadd.f32 %v1543_v21, %v1435_v47  ;;  %v7645_v26 = vld [vmem:[#allocation2 + $0x9c] sm:$0xff]   ;;  %v1805_v20 = vrot.slane %v1804_v12, 4  ;;  %v2464_v14 = vunpack.c.l.b16 %v2063_v56 }
 0x20b   : > { %9087 = vst [vmem:[#allocation24_spill] sm:$0xff] %v7645_v26  ;;  %2966 = vmatmul.bf16.gmra.mxu1 %v7648_v11  ;;  %2917 = vmatmul.bf16.gmra.mxu0 %v7645_v26  ;;  %v2303_v28 = vpack.c.b16 %v6581_v49, %v2263_v62 }
 0x20c   : > { %v1600_v44 = vmax.f32 %v1544_v31, 0.0  ;;  %3055 = vmatmul.bf16.gmra.mxu2 %v7651_v37  ;;  %v6532_v37 = vld [vmem:[#allocation8 + $0x238] sm:$0xff] }
 0x20d   : > { %v2350_v56 = vrot.slane %v2303_v28, 1 }
 0x20e   : > { %3288 = vmatmul.bf16.gmra.mxu3 %v7462_v13  ;;  %v1680_v9 = vpack.c.bf16 %v1600_v44, %v1600_v44  ;;  %v2504_v44 = vpack.c.b16 %v6581_v49, %v2464_v14 }
 0x20f   : > { %v1437_v43 = vpop.f32.mrf.mxu2 }
 0x210   : > { %v1806_v8 = vrot.slane %v1680_v9, 7  ;;  %v1438_v47 = vadd.f32 %v1437_v43, %v1329_v50  ;;  %v1330_v31 = vpop.f32.mrf.mxu1  ;;  %v7667_v32 = vpop.f32.mrf.mxu0  ;;  %v2351_v43 = vrot.slane %v2304_v41, 1 }
 0x211   : > { %v1546_v21 = vpop.f32.mrf.mxu3  ;;  %v1331_v50 = vadd.f32 %v1330_v31, %v1222_v46  ;;  %v2025_v46 = vld [vmem:[#allocation2 + $0x54] sm:$0xe] }
 0x212   : > { %v1807_v13 = vsel %vm7407_vm2, %v1805_v20, %v1806_v8  ;;  %v1808_v15 = vrot.slane %v1806_v8, 4  ;;  %v1547_v58 = vadd.f32 %v1546_v21, %v1438_v47  ;;  %v2551_v20 = vrot.slane %v2504_v44, 2 }
 0x213   : > { %1937 = vst [vmem:[#allocation2 + $0xac] sm:$0xf] %v1807_v13  ;;  %v2552_v8 = vrot.slane %v2505_v54, 2  ;;  %v7670_v49 = vsel %vm2331_vm3, %v2350_v56, %v2351_v43  ;;  %v2026_v54 = vld [vmem:[#allocation2 + $0x5c] sm:$0x1] }
 0x214   : > { %1938 = vst [vmem:[#allocation2 + $0xb0] sm:$0x1] %v1808_v15  ;;  %v1601_v12 = vmax.f32 %v1547_v58, 0.0  ;;  %v2066_v15 = vld [vmem:[#allocation2 + $0x5c] sm:$0x3]  ;;  %v6752_v58 = vld [vmem:[#allocation2 + $0x30] sm:$0xff]   ;;  %v2266_v10 = vunpack.c.l.b16 %v2026_v54 }
 0x215   : > { %v7673_v17 = vsel %vm2532_vm4, %v2551_v20, %v2552_v8 }
 0x216   : > { %v1681_v9 = vpack.c.bf16 %v1601_v12, %v1601_v12  ;;  %9089 = vst [vmem:[#allocation26_spill] sm:$0xff] %v7673_v17  ;;  %v2065_v12 = vld [vmem:[#allocation2 + $0x54] sm:$0xc] }
 0x217   : > { %v1439_v27 = vpop.f32.mrf.mxu2 }
 0x218   : > { %v1809_v47 = vrot.slane %v1681_v9, 7  ;;  %v1440_v21 = vadd.f32 %v1439_v27, %v1331_v50  ;;  %v1333_v3 = vpop.f32.mrf.mxu1  ;;  %v7677_v13 = vpop.f32.mrf.mxu0  ;;  %v2467_v50 = vunpack.c.l.b16 %v2066_v15  ;;  %v1227_v15 = vadd.f32 %v7543_v61, %v7281_v23 }
 0x219   : > { %v1548_v62 = vpop.f32.mrf.mxu3  ;;  %v1334_v41 = vadd.f32 %v1333_v3, %v1225_v34 }
 0x21a   : > { %1939 = vst [vmem:[#allocation2 + $0xb4] sm:$0xe] %v1809_v47  ;;  %v1549_v14 = vadd.f32 %v1548_v62, %v1440_v21  ;;  %v7681_v44 = vld [vmem:[#allocation2 + $0xa8] sm:$0xff]   ;;  %v1810_v27 = vrot.slane %v1809_v47, 4  ;;  %v2265_v21 = vunpack.c.l.b16 %v2025_v46  ;;  %v2466_v62 = vunpack.c.l.b16 %v2065_v12 }
 0x21b   : > { %2971 = vmatmul.bf16.gmra.mxu1 %v7670_v49  ;;  %2922 = vmatmul.bf16.gmra.mxu0 %v7681_v44  ;;  %v2507_v47 = vpack.c.b16 %v2467_v50, %v2467_v50 }
 0x21c   : > { %v1602_v31 = vmax.f32 %v1549_v14, 0.0  ;;  %3060 = vmatmul.bf16.gmra.mxu2 %v7673_v17  ;;  %v2506_v54 = vpack.c.b16 %v2146_v45, %v2466_v62 }
 0x21e   : > { %3293 = vmatmul.bf16.gmra.mxu3 %v6752_v58  ;;  %v1682_v28 = vpack.c.bf16 %v1602_v31, %v1602_v31  ;;  %v2305_v31 = vpack.c.b16 %v2146_v45, %v2265_v21  ;;  %v2306_v58 = vpack.c.b16 %v2266_v10, %v2266_v10 }
 0x21f   : > { %v1442_v9 = vpop.f32.mrf.mxu2 }
 0x220   : > { %v1811_v56 = vrot.slane %v1682_v28, 7  ;;  %v1443_v43 = vadd.f32 %v1442_v9, %v1334_v41  ;;  %v1335_v8 = vpop.f32.mrf.mxu1  ;;  %v7692_v41 = vpop.f32.mrf.mxu0 }
 0x221   : > { %v1551_v20 = vpop.f32.mrf.mxu3  ;;  %v1336_v12 = vadd.f32 %v1335_v8, %v1227_v15 }
 0x222   : > { %v1812_v14 = vsel %vm7407_vm2, %v1810_v27, %v1811_v56  ;;  %v1813_v3 = vrot.slane %v1811_v56, 4  ;;  %v1552_v34 = vadd.f32 %v1551_v20, %v1443_v43  ;;  %v2353_v27 = vrot.slane %v2305_v31, 1 }
 0x223   : > { %1940 = vst [vmem:[#allocation2 + $0xb8] sm:$0xf] %v1812_v14  ;;  %v2354_v56 = vrot.slane %v2306_v58, 1  ;;  %v2554_v43 = vrot.slane %v2506_v54, 2  ;;  %v2555_v20 = vrot.slane %v2507_v47, 2 }
 0x224   : > { %1941 = vst [vmem:[#allocation2 + $0xbc] sm:$0x1] %v1813_v3  ;;  %v1603_v28 = vmax.f32 %v1552_v34, 0.0  ;;  %v6469_v3 = vld [vmem:[#allocation8 + $0x40] sm:$0xff]  ;;  %v1230_v34 = vadd.f32 %v7543_v61, %v7287_v29  ;;  %v2028_v54 = vld [vmem:[#allocation2 + $0x68] sm:$0x1] }
 0x225   : > { %v7697_v23 = vsel %vm2331_vm3, %v2353_v27, %v2354_v56  ;;  %v7700_v62 = vsel %vm2532_vm4, %v2554_v43, %v2555_v20  ;;  %v2068_v47 = vld [vmem:[#allocation2 + $0x68] sm:$0x3]  ;;  %3361 = vmatpush.bf16.msra.mxu0 %v6469_v3  ;;  %v2268_v29 = vunpack.c.l.b16 %v2028_v54  ;;  %v1232_v54 = vadd.f32 %v7543_v61, %v7299_v39 }
 0x226   : > { %v1683_v46 = vpack.c.bf16 %v1603_v28, %v1603_v28  ;;  %9090 = vst [vmem:[#allocation27_spill] sm:$0xff] %v7700_v62  ;;  %v2469_v56 = vunpack.c.l.b16 %v2068_v47 }
 0x227   : > { %v1444_v9 = vpop.f32.mrf.mxu2 }
 0x228   : > { %v1814_v21 = vrot.slane %v1683_v46, 7  ;;  %v1445_v10 = vadd.f32 %v1444_v9, %v1336_v12  ;;  %v1338_v55 = vpop.f32.mrf.mxu1  ;;  %v7705_v58 = vpop.f32.mrf.mxu0  ;;  %v2027_v46 = vld [vmem:[#allocation2 + $0x60] sm:$0xe]  ;;  %v6585_v9 = vunpack.c.h.b16 %v7535_v0  ;;  %v2308_v0 = vpack.c.b16 %v2268_v29, %v2268_v29 }
 0x229   : > { %v1553_v14 = vpop.f32.mrf.mxu3  ;;  %v1339_v28 = vadd.f32 %v1338_v55, %v1230_v34  ;;  %v2067_v12 = vld [vmem:[#allocation2 + $0x60] sm:$0xc]  ;;  %v2267_v8 = vunpack.c.l.b16 %v2027_v46  ;;  %v2509_v17 = vpack.c.b16 %v2469_v56, %v2469_v56  ;;  %v1235_v56 = vadd.f32 %v7543_v61, %v7307_v48  ;;  %3903 = vmatpush.bf16.msrb.mxu0 %v6532_v37 }
 0x22a   : > { %1942 = vst [vmem:[#allocation2 + $0xc0] sm:$0xe] %v1814_v21  ;;  %v1554_v45 = vadd.f32 %v1553_v14, %v1445_v10  ;;  %v7694_v50 = vld [vmem:[#allocation2 + $0xb4] sm:$0xff]   ;;  %v1815_v43 = vrot.slane %v1814_v21, 4  ;;  %v2468_v63 = vunpack.c.l.b16 %v2067_v12 }
 0x22b   : > { %2976 = vmatmul.bf16.gmra.mxu1 %v7697_v23  ;;  %2927 = vmatmul.bf16.gmra.mxu0 %v7694_v50 }
 0x22c   : > { %v1604_v31 = vmax.f32 %v1554_v45, 0.0  ;;  %3065 = vmatmul.bf16.gmra.mxu2 %v7700_v62  ;;  %v2508_v62 = vpack.c.b16 %v6585_v9, %v2468_v63 }
 0x22e   : > { %3298 = vmatmul.bf16.gmra.mxu3 %v7489_v40  ;;  %v1684_v15 = vpack.c.bf16 %v1604_v31, %v1604_v31  ;;  %v2307_v31 = vpack.c.b16 %v6585_v9, %v2267_v8 }
 0x22f   : > { %v1447_v27 = vpop.f32.mrf.mxu2 }
 0x230   : > { %v1816_v20 = vrot.slane %v1684_v15, 7  ;;  %v1448_v10 = vadd.f32 %v1447_v27, %v1339_v28  ;;  %v1340_v45 = vpop.f32.mrf.mxu1  ;;  %v7716_v47 = vpop.f32.mrf.mxu0  ;;  %v2356_v12 = vrot.slane %v2307_v31, 1  ;;  %v2357_v27 = vrot.slane %v2308_v0, 1 }
 0x231   : > { %v1556_v14 = vpop.f32.mrf.mxu3  ;;  %v1341_v28 = vadd.f32 %v1340_v45, %v1232_v54  ;;  %v2029_v54 = vld [vmem:[#allocation2 + $0x6c] sm:$0xe] }
 0x232   : > { %v1817_v3 = vsel %vm7407_vm2, %v1815_v43, %v1816_v20  ;;  %v1818_v55 = vrot.slane %v1816_v20, 4  ;;  %v1557_v34 = vadd.f32 %v1556_v14, %v1448_v10  ;;  %v2557_v43 = vrot.slane %v2508_v62, 2  ;;  %v2070_v62 = vld [vmem:[#allocation2 + $0x74] sm:$0x3] }
 0x233   : > { %1943 = vst [vmem:[#allocation2 + $0xc4] sm:$0xf] %v1817_v3  ;;  %v2558_v20 = vrot.slane %v2509_v17, 2  ;;  %v7719_v9 = vsel %vm2331_vm3, %v2356_v12, %v2357_v27  ;;  %v2030_v17 = vld [vmem:[#allocation2 + $0x74] sm:$0x1] }
 0x234   : > { %1944 = vst [vmem:[#allocation2 + $0xc8] sm:$0x1] %v1818_v55  ;;  %v1605_v21 = vmax.f32 %v1557_v34, 0.0  ;;  %v6753_v55 = vld [vmem:[#allocation2 + $0x48] sm:$0xff]   ;;  %v2270_v48 = vunpack.c.l.b16 %v2030_v17 }
 0x235   : > { %v7722_v39 = vsel %vm2532_vm4, %v2557_v43, %v2558_v20 }
 0x236   : > { %v1685_v15 = vpack.c.bf16 %v1605_v21, %v1605_v21  ;;  %9091 = vst [vmem:[#allocation28_spill] sm:$0xff] %v7722_v39  ;;  %v2069_v21 = vld [vmem:[#allocation2 + $0x6c] sm:$0xc] }
 0x237   : > { %v1449_v46 = vpop.f32.mrf.mxu2 }
 0x238   : > { %v1819_v10 = vrot.slane %v1685_v15, 7  ;;  %v1450_v14 = vadd.f32 %v1449_v46, %v1341_v28  ;;  %v1343_v29 = vpop.f32.mrf.mxu1  ;;  %v7726_v3 = vpop.f32.mrf.mxu0  ;;  %v2471_v28 = vunpack.c.l.b16 %v2070_v62 }
 0x239   : > { %v1558_v8 = vpop.f32.mrf.mxu3  ;;  %v1344_v31 = vadd.f32 %v1343_v29, %v1235_v56 }
 0x23a   : > { %1945 = vst [vmem:[#allocation2 + $0xcc] sm:$0xe] %v1819_v10  ;;  %v1559_v63 = vadd.f32 %v1558_v8, %v1450_v14  ;;  %v7730_v0 = vld [vmem:[#allocation2 + $0xc0] sm:$0xff]   ;;  %v1820_v46 = vrot.slane %v1819_v10, 4  ;;  %v2269_v14 = vunpack.c.l.b16 %v2029_v54  ;;  %v2470_v8 = vunpack.c.l.b16 %v2069_v21 }
 0x23b   : > { %2981 = vmatmul.bf16.gmra.mxu1 %v7719_v9  ;;  %2932 = vmatmul.bf16.gmra.mxu0 %v7730_v0  ;;  %v2511_v10 = vpack.c.b16 %v2471_v28, %v2471_v28 }
 0x23c   : > { %v1606_v45 = vmax.f32 %v1559_v63, 0.0  ;;  %3070 = vmatmul.bf16.gmra.mxu2 %v7722_v39  ;;  %v2310_v39 = vpack.c.b16 %v2270_v48, %v2270_v48 }
 0x23e   : > { %3303 = vmatmul.bf16.gmra.mxu3 %v6753_v55  ;;  %v1686_v34 = vpack.c.bf16 %v1606_v45, %v1606_v45  ;;  %v9092_v45 = vunpack.c.h.b16 %v7553_v60 }
 0x23f   : > { %v1452_v15 = vpop.f32.mrf.mxu2 }
 0x240   : > { %v1821_v12 = vrot.slane %v1686_v34, 7  ;;  %v1453_v27 = vadd.f32 %v1452_v15, %v1344_v31  ;;  %v1345_v20 = vpop.f32.mrf.mxu1  ;;  %v2309_v55 = vpack.c.b16 %v9092_v45, %v2269_v14  ;;  %v9093_v17 = vmov %v9092_v45  ;;  %v7741_v54 = vpop.f32.mrf.mxu0 }
 0x241   : > { %v1561_v43 = vpop.f32.mrf.mxu3  ;;  %v2510_v62 = vpack.c.b16 %v9093_v17, %v2470_v8  ;;  %v1237_v34 = vadd.f32 %v7543_v61, %v7324_v59  ;;  %v2360_v14 = vrot.slane %v2310_v39, 1  ;;  %v2561_v45 = vrot.slane %v2511_v10, 2 }
 0x242   : > { %v1822_v63 = vsel %vm7407_vm2, %v1820_v46, %v1821_v12  ;;  %v1823_v29 = vrot.slane %v1821_v12, 4  ;;  %v1562_v56 = vadd.f32 %v1561_v43, %v1453_v27  ;;  %v6516_v46 = vld [vmem:[#allocation8 + $0x1b8] sm:$0xff]  ;;  %v1240_v10 = vadd.f32 %v7543_v61, %v7340_v4 }
 0x243   : > { %1946 = vst [vmem:[#allocation2 + $0xd0] sm:$0xf] %v1822_v63  ;;  %v1346_v15 = vadd.f32 %v1345_v20, %v1237_v34  ;;  %v6524_v12 = vld [vmem:[#allocation8 + $0x1f8] sm:$0xff]  ;;  %v2359_v63 = vrot.slane %v2309_v55, 1  ;;  %v2560_v48 = vrot.slane %v2510_v62, 2  ;;  %3725 = vmatpush.bf16.msrb.mxu2 %v6516_v46  ;;  %v9094_v34 = vmov 0  }
 0x244   : > { %1947 = vst [vmem:[#allocation2 + $0xd4] sm:$0x1] %v1823_v29  ;;  %v1607_v31 = vmax.f32 %v1562_v56, 0.0  ;;  %v6484_v27 = vld [vmem:[#allocation8 + $0xb8] sm:$0xff]  ;;  %3814 = vmatpush.bf16.msrb.mxu3 %v6524_v12  ;;  %v2011_v56 = vld [vmem:[#allocation2] sm:$0xe]  ;;  %v6589_v4 = vunpack.c.h.b16 %v7579_v33 }
 0x245   : > { %3443 = vmatpush.bf16.msrb.mxu1 %v6484_v27  ;;  %v7747_v39 = vsel %vm2331_vm3, %v2359_v63, %v2360_v14  ;;  %v7750_v55 = vsel %vm2532_vm4, %v2560_v48, %v2561_v45  ;;  %v2012_v46 = vld [vmem:[#allocation2 + $0x8] sm:$0x1]  ;;  %v2031_v63 = vld [vmem:[#allocation2 + $0x78] sm:$0xe]  ;;  %v2251_v48 = vunpack.c.l.b16 %v2011_v56 }
 0x246   : > { %v1687_v21 = vpack.c.bf16 %v1607_v31, %v1607_v31  ;;  %9095 = vst [vmem:[#allocation29_spill] sm:$0xff] %v7747_v39  ;;  %v2071_v14 = vld [vmem:[#allocation2 + $0x78] sm:$0xc]  ;;  %v2271_v16 = vunpack.c.l.b16 %v2031_v63 }
 0x247   : > { %v1454_v43 = vpop.f32.mrf.mxu2  ;;  %9096 = vst [vmem:[#allocation30_spill] sm:$0xff] %v7750_v55  ;;  %v2472_v12 = vunpack.c.l.b16 %v2071_v14 }
 0x248   : > { %v1824_v8 = vrot.slane %v1687_v21, 7  ;;  %v1455_v28 = vadd.f32 %v1454_v43, %v1346_v15  ;;  %v1348_v59 = vpop.f32.mrf.mxu1  ;;  %v7755_v37 = vpop.f32.mrf.mxu0  ;;  %v2032_v21 = vld [vmem:[#allocation2 + $0x80] sm:$0x1]  ;;  %v2311_v33 = vpack.c.b16 %v6589_v4, %v2271_v16 }
 0x249   : > { %v1563_v17 = vpop.f32.mrf.mxu3  ;;  %v2072_v15 = vld [vmem:[#allocation2 + $0x80] sm:$0x3]  ;;  %v1349_v43 = vadd.f32 %v1348_v59, %v1240_v10 }
 0x24a   : > { %1948 = vst [vmem:[#allocation2 + $0xd8] sm:$0xe] %v1824_v8  ;;  %v1564_v29 = vadd.f32 %v1563_v17, %v1455_v28  ;;  %v7743_v20 = vld [vmem:[#allocation2 + $0xcc] sm:$0xff]   ;;  %v2272_v28 = vunpack.c.l.b16 %v2032_v21  ;;  %v2473_v17 = vunpack.c.l.b16 %v2072_v15  ;;  %v9097_v21 = vunpack.c.h.b16 %v7566_v5 }
 0x24b   : > { %1965 = vst [vmem:[#allocation2 + $0xd8] sm:$0xf] %v9094_v34  ;;  %2986 = vmatmul.bf16.gmra.mxu1 %v7747_v39  ;;  %2937 = vmatmul.bf16.gmra.mxu0 %v7743_v20  ;;  %v2512_v39 = vpack.c.b16 %v6589_v4, %v2472_v12 }
 0x24c   : > { %v1608_v31 = vmax.f32 %v1564_v29, 0.0  ;;  %3075 = vmatmul.bf16.gmra.mxu2 %v7750_v55  ;;  %v1825_v29 = vrot.slane %v1824_v8, 4  ;;  %v2513_v40 = vpack.c.b16 %v2473_v17, %v2473_v17  ;;  %v1242_v8 = vadd.f32 %v7543_v61, %v7367_v19 }
 0x24d   : > { %v2291_v15 = vpack.c.b16 %v9097_v21, %v2251_v48  ;;  %v2563_v63 = vrot.slane %v2512_v39, 2  ;;  %v2034_v39 = vld [vmem:[#allocation2 + $0x8c] sm:$0x1]  ;;  %v2014_v21 = vld [vmem:[#allocation2 + $0x14] sm:$0x1] }
 0x24e   : > { %3308 = vmatmul.bf16.gmra.mxu3 %v7517_v36  ;;  %v1688_v27 = vpack.c.bf16 %v1608_v31, %v1608_v31  ;;  %v2252_v36 = vunpack.c.l.b16 %v2012_v46  ;;  %v2312_v31 = vpack.c.b16 %v2272_v28, %v2272_v28  ;;  %v2564_v14 = vrot.slane %v2513_v40, 2 }
 0x24f   : > { %v1457_v45 = vpop.f32.mrf.mxu2  ;;  %v2332_v19 = vrot.slane %v2291_v15, 1 }
 0x250   : > { %v1826_v62 = vrot.slane %v1688_v27, 7  ;;  %v1458_v55 = vadd.f32 %v1457_v45, %v1349_v43  ;;  %v1350_v53 = vpop.f32.mrf.mxu1  ;;  %v7769_v27 = vpop.f32.mrf.mxu0  ;;  %v2292_v43 = vpack.c.b16 %v2252_v36, %v2252_v36  ;;  %v2363_v12 = vrot.slane %v2312_v31, 1  ;;  %v6515_v36 = vld [vmem:[#allocation8 + $0x1b0] sm:$0xff]  ;;  %v2013_v31 = vld [vmem:[#allocation2 + $0xc] sm:$0xe] }
 0x251   : > { %v1566_v38 = vpop.f32.mrf.mxu3  ;;  %v1351_v16 = vadd.f32 %v1350_v53, %v1242_v8  ;;  %v7778_v53 = vsel %vm2532_vm4, %v2563_v63, %v2564_v14  ;;  %v7785_v8 = vld [vmem:[#allocation2 + $0x60] sm:$0xff]   ;;  %3726 = vmatpush.bf16.msrb.mxu2 %v6515_v36 }
 0x252   : > { %v1827_v59 = vsel %vm7407_vm2, %v1825_v29, %v1826_v62  ;;  %v1828_v10 = vrot.slane %v1826_v62, 4  ;;  %v1567_v56 = vadd.f32 %v1566_v38, %v1458_v55  ;;  %v2362_v62 = vrot.slane %v2311_v33, 1  ;;  %v6523_v29 = vld [vmem:[#allocation8 + $0x1f0] sm:$0xff]  ;;  %9098 = vst [vmem:[#allocation31_spill] sm:$0xff] %v7778_v53  ;;  %v2074_v33 = vld [vmem:[#allocation2 + $0x8c] sm:$0x3] }
 0x253   : > { %1949 = vst [vmem:[#allocation2 + $0xdc] sm:$0xf] %v1827_v59  ;;  %v2333_v45 = vrot.slane %v2292_v43, 1  ;;  %v2033_v43 = vld [vmem:[#allocation2 + $0x84] sm:$0xe]  ;;  %3815 = vmatpush.bf16.msrb.mxu3 %v6523_v29 }
 0x254   : > { %1950 = vst [vmem:[#allocation2 + $0xe0] sm:$0x1] %v1828_v10  ;;  %v1609_v46 = vmax.f32 %v1567_v56, 0.0  ;;  %v7775_v59 = vsel %vm2331_vm3, %v2362_v62, %v2363_v12  ;;  %v2475_v62 = vunpack.c.l.b16 %v2074_v33  ;;  %v2253_v12 = vunpack.c.l.b16 %v2013_v31  ;;  %v6483_v29 = vld [vmem:[#allocation8 + $0xb0] sm:$0xff] }
 0x255   : > { %1966 = vst [vmem:[#allocation2 + $0xdc] sm:$0xf] %v9094_v34  ;;  %v2334_v56 = vsel %vm2331_vm3, %v2332_v19, %v2333_v45  ;;  %3444 = vmatpush.bf16.msrb.mxu1 %v6483_v29  ;;  %v2076_v29 = vld [vmem:[#allocation2 + $0x98] sm:$0x3] }
 0x256   : > { %1967 = vst [vmem:[#allocation2 + $0xe0] sm:$0x3] %v9094_v34  ;;  %v1689_v38 = vpack.c.bf16 %v1609_v46, %v1609_v46 }
 0x257   : > { %v1459_v55 = vpop.f32.mrf.mxu2 }
 0x258   : > { %v1829_v61 = vrot.slane %v1689_v38, 7  ;;  %v1460_v4 = vadd.f32 %v1459_v55, %v1351_v16  ;;  %v2952_v28 = vpop.f32.mrf.mxu1  ;;  %v7780_v10 = vpop.f32.mrf.mxu0  ;;  %v2073_v38 = vld [vmem:[#allocation2 + $0x84] sm:$0xc]  ;;  %v2274_v55 = vunpack.c.l.b16 %v2034_v39  ;;  %v9099_v39 = vunpack.c.h.b16 %v7595_v22 }
 0x259   : > { %v1568_v48 = vpop.f32.mrf.mxu3  ;;  %v2953_v46 = vadd.f32 %v2952_v28, %v7564_v6 }
 0x25a   : > { %1951 = vst [vmem:[#allocation2 + $0xe4] sm:$0xe] %v1829_v61  ;;  %v1569_v17 = vadd.f32 %v1568_v48, %v1460_v4  ;;  %v1830_v63 = vrot.slane %v1829_v61, 4  ;;  %v2254_v48 = vunpack.c.l.b16 %v2014_v21  ;;  %v2314_v61 = vpack.c.b16 %v2274_v55, %v2274_v55 }
 0x25b   : > { %1968 = vst [vmem:[#allocation2 + $0xe4] sm:$0xf] %v9094_v34  ;;  %2991 = vmatmul.bf16.gmra.mxu1 %v7775_v59  ;;  %3362 = vmatmul.bf16.vlgmr.msra.gmra.mxu0 %v2334_v56  ;;  %v9100_v33 = vmov %v9099_v39  ;;  %v2515_v21 = vpack.c.b16 %v2475_v62, %v2475_v62 }
 0x25c   : > { %v1610_v40 = vmax.f32 %v1569_v17, 0.0  ;;  %3080 = vmatmul.bf16.gmra.mxu2 %v7778_v53  ;;  %v2273_v17 = vunpack.c.l.b16 %v2033_v43  ;;  %v2474_v53 = vunpack.c.l.b16 %v2073_v38  ;;  %v2294_v43 = vpack.c.b16 %v2254_v48, %v2254_v48 }
 0x25d   : > { %v2567_v62 = vrot.slane %v2515_v21, 2  ;;  %v2477_v21 = vunpack.c.l.b16 %v2076_v29 }
 0x25e   : > { %3313 = vmatmul.bf16.gmra.mxu3 %v7785_v8  ;;  %v1690_v15 = vpack.c.bf16 %v1610_v40, %v1610_v40  ;;  %v6531_v40 = vld [vmem:[#allocation8 + $0x230] sm:$0xff]  ;;  %v2313_v56 = vpack.c.b16 %v9099_v39, %v2273_v17  ;;  %v2514_v31 = vpack.c.b16 %v9100_v33, %v2474_v53  ;;  %v2336_v17 = vrot.slane %v2294_v43, 1  ;;  %v2035_v39 = vld [vmem:[#allocation2 + $0x90] sm:$0xe] }
 0x25f   : > { %v3041_v16 = vpop.f32.mrf.mxu2  ;;  %3904 = vmatpush.bf16.msrb.mxu0 %v6531_v40 }
 0x260   : > { %v1831_v14 = vrot.slane %v1690_v15, 7  ;;  %v3042_v19 = vadd.f32 %v3041_v16, %v2953_v46  ;;  %v2954_v45 = vpop.f32.mrf.mxu1  ;;  %v7797_v15 = vpop.f32.mrf.mxu0  ;;  %v2293_v46 = vpack.c.b16 %v9101_v25, %v2253_v12  ;;  %v2365_v55 = vrot.slane %v2313_v56, 1  ;;  %v2075_v56 = vld [vmem:[#allocation2 + $0x90] sm:$0xc] }
 0x261   : > { %v3274_v4 = vpop.f32.mrf.mxu3  ;;  %v2955_v38 = vadd.f32 %v2954_v45, %v7592_v42  ;;  %v2566_v53 = vrot.slane %v2514_v31, 2  ;;  %v2036_v45 = vld [vmem:[#allocation2 + $0x98] sm:$0x1] }
 0x262   : > { %v1832_v36 = vsel %vm7407_vm2, %v1830_v63, %v1831_v14  ;;  %v1833_v6 = vrot.slane %v1831_v14, 4  ;;  %v7791_v28 = vadd.f32 %v3274_v4, %v3042_v19  ;;  %v2366_v63 = vrot.slane %v2314_v61, 1 }
 0x263   : > { %1952 = vst [vmem:[#allocation2 + $0xe8] sm:$0xf] %v1832_v36  ;;  %v2335_v4 = vrot.slane %v2293_v46, 1  ;;  %v6593_v61 = vunpack.c.h.b16 %v7632_v30  ;;  %v2276_v31 = vunpack.c.l.b16 %v2036_v45 }
 0x264   : > { %1953 = vst [vmem:[#allocation2 + $0xec] sm:$0x1] %v1833_v6  ;;  %v7807_v48 = vsel %vm2331_vm3, %v2365_v55, %v2366_v63  ;;  %v7810_v6 = vsel %vm2532_vm4, %v2566_v53, %v2567_v62 }
 0x265   : > { %1969 = vst [vmem:[#allocation2 + $0xe8] sm:$0xf] %v9094_v34  ;;  %v2337_v42 = vsel %vm2331_vm3, %v2335_v4, %v2336_v17  ;;  %v2316_v53 = vpack.c.b16 %v2276_v31, %v2276_v31 }
 0x266   : > { %1970 = vst [vmem:[#allocation2 + $0xec] sm:$0x3] %v9094_v34 }
 0x267   : > { %v3043_v16 = vpop.f32.mrf.mxu2  ;;  %9102 = vst [vmem:[#allocation32_spill] sm:$0xff] %v7810_v6  ;;  %v2369_v17 = vrot.slane %v2316_v53, 1 }
 0x268   : > { %v3044_v14 = vadd.f32 %v3043_v16, %v2955_v38  ;;  %v2957_v36 = vpop.f32.mrf.mxu1  ;;  %v7812_v34 = vpop.f32.mrf.mxu0  ;;  %v2275_v38 = vunpack.c.l.b16 %v2035_v39  ;;  %v2476_v16 = vunpack.c.l.b16 %v2075_v56  ;;  %v6514_v56 = vld [vmem:[#allocation8 + $0x1a8] sm:$0xff] }
 0x269   : > { %v3276_v19 = vpop.f32.mrf.mxu3  ;;  %v2958_v40 = vadd.f32 %v2957_v36, %v7606_v57  ;;  %3727 = vmatpush.bf16.msrb.mxu2 %v6514_v56 }
 0x26a   : > { %v7804_v12 = vadd.f32 %v3276_v19, %v3044_v14  ;;  %v2315_v63 = vpack.c.b16 %v6593_v61, %v2275_v38  ;;  %v2516_v62 = vpack.c.b16 %v6593_v61, %v2476_v16  ;;  %v2517_v14 = vpack.c.b16 %v2477_v21, %v2477_v21  ;;  %v2037_v38 = vld [vmem:[#allocation2 + $0x9c] sm:$0xe] }
 0x26b   : > { %2996 = vmatmul.bf16.gmra.mxu1 %v7807_v48  ;;  %3367 = vmatmul.bf16.gmra.mxu0 %v2337_v42  ;;  %v2077_v16 = vld [vmem:[#allocation2 + $0x9c] sm:$0xc] }
 0x26c   : > { %3085 = vmatmul.bf16.gmra.mxu2 %v7810_v6  ;;  %v2368_v4 = vrot.slane %v2315_v63, 1  ;;  %v2569_v36 = vrot.slane %v2516_v62, 2  ;;  %v2570_v42 = vrot.slane %v2517_v14, 2 }
 0x26e   : > { %3318 = vmatmul.bf16.gmra.mxu3 %v7553_v60  ;;  %v7828_v31 = vsel %vm2331_vm3, %v2368_v4, %v2369_v17  ;;  %v7831_v61 = vsel %vm2532_vm4, %v2569_v36, %v2570_v42  ;;  %v2277_v4 = vunpack.c.l.b16 %v2037_v38  ;;  %v2478_v17 = vunpack.c.l.b16 %v2077_v16  ;;  %v6482_v42 = vld [vmem:[#allocation8 + $0xa8] sm:$0xff] }
 0x26f   : > { %v3046_v33 = vpop.f32.mrf.mxu2  ;;  %9103 = vst [vmem:[#allocation33_spill] sm:$0xff] %v7831_v61  ;;  %3445 = vmatpush.bf16.msrb.mxu1 %v6482_v42  ;;  %v2039_v42 = vld [vmem:[#allocation2 + $0xa8] sm:$0xe] }
 0x270   : > { %v3047_v25 = vadd.f32 %v3046_v33, %v2958_v40  ;;  %v2959_v43 = vpop.f32.mrf.mxu1  ;;  %v7822_v57 = vpop.f32.mrf.mxu0  ;;  %v6522_v33 = vld [vmem:[#allocation8 + $0x1e8] sm:$0xff] }
 0x271   : > { %v3279_v46 = vpop.f32.mrf.mxu3  ;;  %v2960_v19 = vadd.f32 %v2959_v43, %v7617_v52  ;;  %v2038_v52 = vld [vmem:[#allocation2 + $0xa4] sm:$0x1]  ;;  %3816 = vmatpush.bf16.msrb.mxu3 %v6522_v33 }
 0x272   : > { %v7820_v55 = vadd.f32 %v3279_v46, %v3047_v25  ;;  %v2078_v25 = vld [vmem:[#allocation2 + $0xa4] sm:$0x3]  ;;  %v7837_v46 = vld [vmem:[#allocation2 + $0x78] sm:$0xff]   ;;  %v2278_v53 = vunpack.c.l.b16 %v2038_v52 }
 0x273   : > { %9104 = vst [vmem:[#allocation34_spill] sm:$0xff] %v7837_v46  ;;  %v2479_v62 = vunpack.c.l.b16 %v2078_v25 }
 0x277   : > { %v3048_v30 = vpop.f32.mrf.mxu2 }
 0x278   : > { %v3049_v45 = vadd.f32 %v3048_v30, %v2960_v19  ;;  %v2962_v40 = vpop.f32.mrf.mxu1  ;;  %v7833_v21 = vpop.f32.mrf.mxu0 }
 0x279   : > { %v3281_v29 = vpop.f32.mrf.mxu3  ;;  %v2963_v43 = vadd.f32 %v2962_v40, %v7627_v18  ;;  %v2318_v40 = vpack.c.b16 %v2278_v53, %v2278_v53 }
 0x27a   : > { %v7825_v39 = vadd.f32 %v3281_v29, %v3049_v45  ;;  %v6530_v45 = vld [vmem:[#allocation8 + $0x228] sm:$0xff]  ;;  %v9105_v29 = vunpack.c.h.b16 %v7645_v26 }
 0x27b   : > { %3001 = vmatmul.bf16.gmra.mxu1 %v7828_v31  ;;  %3372 = vmatmul.bf16.gmra.mxu0 %v7569_v1  ;;  %v2372_v38 = vrot.slane %v2318_v40, 1 }
 0x27c   : > { %3090 = vmatmul.bf16.gmra.mxu2 %v7831_v61  ;;  %v2317_v18 = vpack.c.b16 %v9105_v29, %v2277_v4  ;;  %v9106_v56 = vmov %v9105_v29  ;;  %v2519_v61 = vpack.c.b16 %v2479_v62, %v2479_v62  ;;  %3905 = vmatpush.bf16.msrb.mxu0 %v6530_v45  ;;  %v2079_v45 = vld [vmem:[#allocation2 + $0xa8] sm:$0xc]  ;;  %v6597_v29 = vunpack.c.h.b16 %v7681_v44 }
 0x27d   : > { %v2518_v33 = vpack.c.b16 %v9106_v56, %v2478_v17 }
 0x27e   : > { %3323 = vmatmul.bf16.gmra.mxu3 %v7837_v46 }
 0x27f   : > { %v3051_v63 = vpop.f32.mrf.mxu2  ;;  %v2572_v16 = vrot.slane %v2518_v33, 2 }
 0x280   : > { %v3052_v14 = vadd.f32 %v3051_v63, %v2963_v43  ;;  %v2964_v30 = vpop.f32.mrf.mxu1  ;;  %v7848_v1 = vpop.f32.mrf.mxu0  ;;  %v2371_v43 = vrot.slane %v2317_v18, 1  ;;  %v2573_v63 = vrot.slane %v2519_v61, 2 }
 0x281   : > { %v3284_v19 = vpop.f32.mrf.mxu3  ;;  %v2965_v52 = vadd.f32 %v2964_v30, %v7643_v51  ;;  %v2040_v51 = vld [vmem:[#allocation2 + $0xb0] sm:$0x1] }
 0x282   : > { %v7842_v36 = vadd.f32 %v3284_v19, %v3052_v14  ;;  %v7854_v53 = vsel %vm2331_vm3, %v2371_v43, %v2372_v38  ;;  %v7857_v62 = vsel %vm2532_vm4, %v2572_v16, %v2573_v63  ;;  %v2080_v30 = vld [vmem:[#allocation2 + $0xb0] sm:$0x3]  ;;  %v2280_v40 = vunpack.c.l.b16 %v2040_v51 }
 0x283   : > { %9107 = vst [vmem:[#allocation35_spill] sm:$0xff] %v7854_v53  ;;  %v2481_v56 = vunpack.c.l.b16 %v2080_v30  ;;  %v2279_v43 = vunpack.c.l.b16 %v2039_v42  ;;  %v2480_v38 = vunpack.c.l.b16 %v2079_v45  ;;  %v6513_v45 = vld [vmem:[#allocation8 + $0x1a0] sm:$0xff] }
 0x284   : > { %9108 = vst [vmem:[#allocation36_spill] sm:$0xff] %v7857_v62  ;;  %3728 = vmatpush.bf16.msrb.mxu2 %v6513_v45  ;;  %v9112_v45 = vunpack.c.h.b16 %v7694_v50 }
 0x285   : > { %v2319_v63 = vpack.c.b16 %v6597_v29, %v2279_v43  ;;  %v2081_v43 = vld [vmem:[#allocation2 + $0xb4] sm:$0xc] }
 0x287   : > { %v3053_v25 = vpop.f32.mrf.mxu2 }
 0x288   : > { %v3054_v14 = vadd.f32 %v3053_v25, %v2965_v52  ;;  %v2967_v6 = vpop.f32.mrf.mxu1  ;;  %v7859_v17 = vpop.f32.mrf.mxu0 }
 0x289   : > { %v3286_v19 = vpop.f32.mrf.mxu3  ;;  %v2968_v61 = vadd.f32 %v2967_v6, %v7656_v35  ;;  %v2521_v35 = vpack.c.b16 %v2481_v56, %v2481_v56 }
 0x28a   : > { %v7851_v4 = vadd.f32 %v3286_v19, %v3054_v14  ;;  %v2320_v14 = vpack.c.b16 %v2280_v40, %v2280_v40  ;;  %v2520_v19 = vpack.c.b16 %v6597_v29, %v2480_v38 }
 0x28b   : > { %3006 = vmatmul.bf16.gmra.mxu1 %v7854_v53  ;;  %3377 = vmatmul.bf16.gmra.mxu0 %v7598_v7  ;;  %v2576_v30 = vrot.slane %v2521_v35, 2 }
 0x28c   : > { %3095 = vmatmul.bf16.gmra.mxu2 %v7857_v62  ;;  %v2375_v7 = vrot.slane %v2320_v14, 1  ;;  %v2575_v51 = vrot.slane %v2520_v19, 2 }
 0x28e   : > { %3328 = vmatmul.bf16.gmra.mxu3 %v7595_v22  ;;  %v2374_v22 = vrot.slane %v2319_v63, 1  ;;  %v7878_v29 = vsel %vm2532_vm4, %v2575_v51, %v2576_v30  ;;  %v2482_v51 = vunpack.c.l.b16 %v2081_v43 }
 0x28f   : > { %v3056_v18 = vpop.f32.mrf.mxu2  ;;  %9110 = vst [vmem:[#allocation38_spill] sm:$0xff] %v7878_v29 }
 0x290   : > { %v3057_v33 = vadd.f32 %v3056_v18, %v2968_v61  ;;  %v2969_v25 = vpop.f32.mrf.mxu1  ;;  %v7869_v6 = vpop.f32.mrf.mxu0  ;;  %v7875_v40 = vsel %vm2331_vm3, %v2374_v22, %v2375_v7  ;;  %v2041_v22 = vld [vmem:[#allocation2 + $0xb4] sm:$0xe] }
 0x291   : > { %v3289_v52 = vpop.f32.mrf.mxu3  ;;  %v2970_v44 = vadd.f32 %v2969_v25, %v7667_v32  ;;  %9109 = vst [vmem:[#allocation37_spill] sm:$0xff] %v7875_v40  ;;  %v2042_v32 = vld [vmem:[#allocation2 + $0xbc] sm:$0x1]  ;;  %v2281_v7 = vunpack.c.l.b16 %v2041_v22 }
 0x292   : > { %v7867_v16 = vadd.f32 %v3289_v52, %v3057_v33  ;;  %v6521_v33 = vld [vmem:[#allocation8 + $0x1e0] sm:$0xff]  ;;  %v2282_v63 = vunpack.c.l.b16 %v2042_v32 }
 0x293   : > { %v7884_v52 = vld [vmem:[#allocation2 + $0x90] sm:$0xff]   ;;  %3817 = vmatpush.bf16.msrb.mxu3 %v6521_v33  ;;  %v9113_v33 = vmov %v9112_v45 }
 0x294   : > { %9111 = vst [vmem:[#allocation39_spill] sm:$0xff] %v7884_v52 }
 0x297   : > { %v3058_v62 = vpop.f32.mrf.mxu2 }
 0x298   : > { %v3059_v61 = vadd.f32 %v3058_v62, %v2970_v44  ;;  %v2972_v46 = vpop.f32.mrf.mxu1  ;;  %v7880_v56 = vpop.f32.mrf.mxu0  ;;  %v2082_v62 = vld [vmem:[#allocation2 + $0xbc] sm:$0x3] }
 0x299   : > { %v3291_v18 = vpop.f32.mrf.mxu3  ;;  %v2973_v25 = vadd.f32 %v2972_v46, %v7677_v13  ;;  %v2483_v14 = vunpack.c.l.b16 %v2082_v62  ;;  %v2321_v13 = vpack.c.b16 %v9112_v45, %v2281_v7  ;;  %v2322_v46 = vpack.c.b16 %v2282_v63, %v2282_v63  ;;  %v2083_v45 = vld [vmem:[#allocation2 + $0xc0] sm:$0xc] }
 0x29a   : > { %v7872_v42 = vadd.f32 %v3291_v18, %v3059_v61  ;;  %v6481_v61 = vld [vmem:[#allocation8 + $0xa0] sm:$0xff] }
 0x29b   : > { %3011 = vmatmul.bf16.gmra.mxu1 %v7875_v40  ;;  %3382 = vmatmul.bf16.gmra.mxu0 %v7620_v2  ;;  %v6529_v18 = vld [vmem:[#allocation8 + $0x220] sm:$0xff]  ;;  %v2378_v22 = vrot.slane %v2322_v46, 1  ;;  %v6601_v46 = vunpack.c.h.b16 %v7730_v0 }
 0x29c   : > { %3100 = vmatmul.bf16.gmra.mxu2 %v7878_v29  ;;  %v2522_v29 = vpack.c.b16 %v9113_v33, %v2482_v51  ;;  %3446 = vmatpush.bf16.msrb.mxu1 %v6481_v61  ;;  %v6520_v61 = vld [vmem:[#allocation8 + $0x1d8] sm:$0xff] }
 0x29d   : > { %3906 = vmatpush.bf16.msrb.mxu0 %v6529_v18  ;;  %v2043_v18 = vld [vmem:[#allocation2 + $0xc0] sm:$0xe]  ;;  %3818 = vmatpush.bf16.msrb.mxu3 %v6520_v61 }
 0x29e   : > { %3333 = vmatmul.bf16.gmra.mxu3 %v7884_v52  ;;  %v2523_v52 = vpack.c.b16 %v2483_v14, %v2483_v14  ;;  %v2578_v43 = vrot.slane %v2522_v29, 2  ;;  %v2084_v29 = vld [vmem:[#allocation2 + $0xc8] sm:$0x3] }
 0x29f   : > { %v3061_v38 = vpop.f32.mrf.mxu2 }
 0x2a0   : > { %v3062_v19 = vadd.f32 %v3061_v38, %v2973_v25  ;;  %v2974_v44 = vpop.f32.mrf.mxu1  ;;  %v7895_v40 = vpop.f32.mrf.mxu0  ;;  %v2377_v25 = vrot.slane %v2321_v13, 1  ;;  %v2579_v38 = vrot.slane %v2523_v52, 2  ;;  %v6480_v52 = vld [vmem:[#allocation8 + $0x98] sm:$0xff] }
 0x2a1   : > { %v3294_v35 = vpop.f32.mrf.mxu3  ;;  %v2975_v32 = vadd.f32 %v2974_v44, %v7692_v41  ;;  %v2044_v41 = vld [vmem:[#allocation2 + $0xc8] sm:$0x1]  ;;  %3447 = vmatpush.bf16.msrb.mxu1 %v6480_v52  ;;  %v6518_v52 = vld [vmem:[#allocation8 + $0x1c8] sm:$0xff] }
 0x2a2   : > { %v7889_v30 = vadd.f32 %v3294_v35, %v3062_v19  ;;  %v7901_v63 = vsel %vm2331_vm3, %v2377_v25, %v2378_v22  ;;  %v7904_v14 = vsel %vm2532_vm4, %v2578_v43, %v2579_v38  ;;  %v6512_v44 = vld [vmem:[#allocation8 + $0x198] sm:$0xff]  ;;  %v2283_v43 = vunpack.c.l.b16 %v2043_v18 }
 0x2a3   : > { %9114 = vst [vmem:[#allocation40_spill] sm:$0xff] %v7901_v63  ;;  %3729 = vmatpush.bf16.msrb.mxu2 %v6512_v44  ;;  %v2484_v38 = vunpack.c.l.b16 %v2083_v45 }
 0x2a4   : > { %9115 = vst [vmem:[#allocation41_spill] sm:$0xff] %v7904_v14 }
 0x2a5   : > { %v2524_v0 = vpack.c.b16 %v6601_v46, %v2484_v38  ;;  %v2086_v38 = vld [vmem:[#allocation2 + $0xd4] sm:$0x3] }
 0x2a7   : > { %v3063_v62 = vpop.f32.mrf.mxu2 }
 0x2a8   : > { %v3064_v19 = vadd.f32 %v3063_v62, %v2975_v32  ;;  %v2977_v53 = vpop.f32.mrf.mxu1  ;;  %v7906_v51 = vpop.f32.mrf.mxu0  ;;  %v2284_v32 = vunpack.c.l.b16 %v2044_v41  ;;  %v2485_v62 = vunpack.c.l.b16 %v2084_v29  ;;  %v6478_v41 = vld [vmem:[#allocation8 + $0x88] sm:$0xff] }
 0x2a9   : > { %v3296_v35 = vpop.f32.mrf.mxu3  ;;  %9116 = vst [vmem:[#allocation42_spill] sm:$0xff] %v7906_v51  ;;  %v2978_v13 = vadd.f32 %v2977_v53, %v7705_v58  ;;  %v6519_v58 = vld [vmem:[#allocation8 + $0x1d0] sm:$0xff]  ;;  %v2323_v53 = vpack.c.b16 %v6601_v46, %v2283_v43  ;;  %v6510_v29 = vld [vmem:[#allocation8 + $0x188] sm:$0xff] }
 0x2aa   : > { %v7898_v7 = vadd.f32 %v3296_v35, %v3064_v19  ;;  %v2525_v51 = vpack.c.b16 %v2485_v62, %v2485_v62  ;;  %3819 = vmatpush.bf16.msrb.mxu3 %v6519_v58  ;;  %v6517_v62 = vld [vmem:[#allocation8 + $0x1c0] sm:$0xff] }
 0x2ab   : > { %3016 = vmatmul.bf16.gmra.mxu1 %v7901_v63  ;;  %3387 = vmatmul.bf16.gmra.mxu0 %v7648_v11  ;;  %v2324_v63 = vpack.c.b16 %v2284_v32, %v2284_v32  ;;  %v2380_v18 = vrot.slane %v2323_v53, 1  ;;  %v2045_v53 = vld [vmem:[#allocation2 + $0xcc] sm:$0xe] }
 0x2ac   : > { %3105 = vmatmul.bf16.gmra.mxu2 %v7904_v14  ;;  %v6479_v14 = vld [vmem:[#allocation8 + $0x90] sm:$0xff] }
 0x2ad   : > { %3448 = vmatpush.bf16.msrb.mxu1 %v6479_v14  ;;  %v2381_v45 = vrot.slane %v2324_v63, 1  ;;  %v6509_v14 = vld [vmem:[#allocation8 + $0x180] sm:$0xff] }
 0x2ae   : > { %3338 = vmatmul.bf16.gmra.mxu3 %v7645_v26  ;;  %v6511_v26 = vld [vmem:[#allocation8 + $0x190] sm:$0xff] }
 0x2af   : > { %v3066_v33 = vpop.f32.mrf.mxu2  ;;  %3730 = vmatpush.bf16.msrb.mxu2 %v6511_v26  ;;  %3820 = vmatpush.bf16.msrb.mxu3 %v6518_v52  ;;  %v6477_v26 = vld [vmem:[#allocation8 + $0x80] sm:$0xff]  ;;  %v7922_v43 = vsel %vm2331_vm3, %v2380_v18, %v2381_v45  ;;  %v2487_v52 = vunpack.c.l.b16 %v2086_v38  ;;  %v2285_v45 = vunpack.c.l.b16 %v2045_v53 }
 0x2b0   : > { %v3067_v25 = vadd.f32 %v3066_v33, %v2978_v13  ;;  %v2979_v19 = vpop.f32.mrf.mxu1  ;;  %v7916_v60 = vpop.f32.mrf.mxu0  ;;  %v2581_v13 = vrot.slane %v2524_v0, 2  ;;  %v2582_v33 = vrot.slane %v2525_v51, 2  ;;  %9117 = vst [vmem:[#allocation43_spill] sm:$0xff] %v7922_v43  ;;  %v2046_v51 = vld [vmem:[#allocation2 + $0xd4] sm:$0x1] }
 0x2b1   : > { %v3299_v22 = vpop.f32.mrf.mxu3  ;;  %v2980_v44 = vadd.f32 %v2979_v19, %v7716_v47  ;;  %3449 = vmatpush.bf16.msrb.mxu1 %v6478_v41  ;;  %v7931_v19 = vld [vmem:[#allocation2 + $0xa8] sm:$0xff]  }
 0x2b2   : > { %v7914_v35 = vadd.f32 %v3299_v22, %v3067_v25  ;;  %v7925_v47 = vsel %vm2532_vm4, %v2581_v13, %v2582_v33  ;;  %9119 = vst [vmem:[#allocation45_spill] sm:$0xff] %v7931_v19  ;;  %v2085_v0 = vld [vmem:[#allocation2 + $0xcc] sm:$0xc] }
 0x2b3   : > { %3731 = vmatpush.bf16.msrb.mxu2 %v6510_v29  ;;  %9118 = vst [vmem:[#allocation44_spill] sm:$0xff] %v7925_v47  ;;  %3821 = vmatpush.bf16.msrb.mxu3 %v6517_v62  ;;  %v2286_v29 = vunpack.c.l.b16 %v2046_v51  ;;  %v2486_v13 = vunpack.c.l.b16 %v2085_v0  ;;  %v2527_v62 = vpack.c.b16 %v2487_v52, %v2487_v52 }
 0x2b5   : > { %3450 = vmatpush.bf16.msrb.mxu1 %v6477_v26 }
 0x2b7   : > { %v3068_v61 = vpop.f32.mrf.mxu2  ;;  %3732 = vmatpush.bf16.msrb.mxu2 %v6509_v14 }
 0x2b8   : > { %v3069_v25 = vadd.f32 %v3068_v61, %v2980_v44  ;;  %v2982_v46 = vpop.f32.mrf.mxu1  ;;  %v7927_v63 = vpop.f32.mrf.mxu0 }
 0x2b9   : > { %v3301_v22 = vpop.f32.mrf.mxu3  ;;  %v2983_v58 = vadd.f32 %v2982_v46, %v7726_v3  ;;  %v2326_v46 = vpack.c.b16 %v2286_v29, %v2286_v29  ;;  %v2052_v29 = vld [vmem:[#allocation2 + $0x8] sm:$0x3] }
 0x2ba   : > { %v7919_v32 = vadd.f32 %v3301_v22, %v3069_v25  ;;  %v6528_v25 = vld [vmem:[#allocation8 + $0x218] sm:$0xff]  ;;  %v9120_v22 = vunpack.c.h.b16 %v7743_v20 }
 0x2bb   : > { %3021 = vmatmul.bf16.gmra.mxu1 %v7922_v43  ;;  %3392 = vmatmul.bf16.gmra.mxu0 %v7670_v49  ;;  %v2384_v53 = vrot.slane %v2326_v46, 1 }
 0x2bc   : > { %3110 = vmatmul.bf16.gmra.mxu2 %v7925_v47  ;;  %v2325_v3 = vpack.c.b16 %v9120_v22, %v2285_v45  ;;  %v9121_v26 = vmov %v9120_v22  ;;  %3907 = vmatpush.bf16.msrb.mxu0 %v6528_v25 }
 0x2bd   : > { %v2526_v14 = vpack.c.b16 %v9121_v26, %v2486_v13 }
 0x2be   : > { %3343 = vmatmul.bf16.gmra.mxu3 %v7931_v19  ;;  %v2051_v19 = vld [vmem:[#allocation2] sm:$0xc] }
 0x2bf   : > { %v3071_v41 = vpop.f32.mrf.mxu2  ;;  %v2584_v0 = vrot.slane %v2526_v14, 2  ;;  %v9122_v14 = vunpack.c.h.b16 %v7566_v5  ;;  %v2053_v5 = vld [vmem:[#allocation2 + $0xc] sm:$0xc] }
 0x2c0   : > { %v3072_v44 = vadd.f32 %v3071_v41, %v2983_v58  ;;  %v2984_v18 = vpop.f32.mrf.mxu1  ;;  %v7942_v47 = vpop.f32.mrf.mxu0  ;;  %v2383_v58 = vrot.slane %v2325_v3, 1  ;;  %v2585_v41 = vrot.slane %v2527_v62, 2 }
 0x2c1   : > { %v3304_v61 = vpop.f32.mrf.mxu3  ;;  %v2985_v51 = vadd.f32 %v2984_v18, %v7741_v54  ;;  %v2452_v54 = vunpack.c.l.b16 %v2051_v19  ;;  %v2453_v18 = vunpack.c.l.b16 %v2052_v29 }
 0x2c2   : > { %v7936_v33 = vadd.f32 %v3304_v61, %v3072_v44  ;;  %v7948_v13 = vsel %vm2331_vm3, %v2383_v58, %v2384_v53  ;;  %v7951_v52 = vsel %vm2532_vm4, %v2584_v0, %v2585_v41 }
 0x2c3   : > { %v2492_v62 = vpack.c.b16 %v9122_v14, %v2452_v54  ;;  %v2054_v54 = vld [vmem:[#allocation2 + $0x14] sm:$0x3] }
 0x2c5   : > { %v2533_v19 = vrot.slane %v2492_v62, 2 }
 0x2c7   : > { %v3073_v38 = vpop.f32.mrf.mxu2 }
 0x2c8   : > { %v3074_v44 = vadd.f32 %v3073_v38, %v2985_v51  ;;  %v2987_v43 = vpop.f32.mrf.mxu1  ;;  %v7953_v25 = vpop.f32.mrf.mxu0  ;;  %v2493_v38 = vpack.c.b16 %v2453_v18, %v2453_v18  ;;  %v6758_v18 = vld [vmem:[#allocation2 + $0x30] sm:$0xff]  }
 0x2c9   : > { %v3306_v61 = vpop.f32.mrf.mxu3  ;;  %v2988_v22 = vadd.f32 %v2987_v43, %v7755_v37 }
 0x2ca   : > { %v7945_v45 = vadd.f32 %v3306_v61, %v3074_v44  ;;  %v2534_v0 = vrot.slane %v2493_v38, 2 }
 0x2cb   : > { %3026 = vmatmul.bf16.gmra.mxu1 %v7948_v13  ;;  %3397 = vmatmul.bf16.gmra.mxu0 %v7697_v23 }
 0x2cc   : > { %3115 = vmatmul.bf16.gmra.mxu2 %v7951_v52  ;;  %v2535_v29 = vsel %vm2532_vm4, %v2533_v19, %v2534_v0  ;;  %v9123_v0 = vunpack.c.h.b16 %v7584_v24 }
 0x2ce   : > { %3348 = vmatmul.bf16.gmra.mxu3 %v7694_v50 }
 0x2cf   : > { %v3076_v3 = vpop.f32.mrf.mxu2 }
 0x2d0   : > { %v3077_v46 = vadd.f32 %v3076_v3, %v2988_v22  ;;  %v2989_v51 = vpop.f32.mrf.mxu1  ;;  %v7964_v53 = vpop.f32.mrf.mxu0 }
 0x2d1   : > { %v3309_v26 = vpop.f32.mrf.mxu3  ;;  %v2990_v41 = vadd.f32 %v2989_v51, %v7769_v27  ;;  %v2454_v27 = vunpack.c.l.b16 %v2053_v5 }
 0x2d2   : > { %v7962_v58 = vadd.f32 %v3309_v26, %v3077_v46  ;;  %v2455_v26 = vunpack.c.l.b16 %v2054_v54 }
 0x2d7   : > { %v3078_v44 = vpop.f32.mrf.mxu2 }
 0x2d8   : > { %v3079_v37 = vadd.f32 %v3078_v44, %v2990_v41  ;;  %v2992_v61 = vpop.f32.mrf.mxu1  ;;  %v3363_v3 = vpop.f32.mrf.mxu0  ;;  %v2494_v41 = vpack.c.b16 %v9123_v0, %v2454_v27  ;;  %v2495_v44 = vpack.c.b16 %v2455_v26, %v2455_v26 }
 0x2d9   : > { %v3311_v43 = vpop.f32.mrf.mxu3  ;;  %v7971_v46 = vadd.f32 %v3363_v3, %v7791_v28  ;;  %v2993_v14 = vadd.f32 %v2992_v61, %v7780_v10  ;;  %v6527_v28 = vld [vmem:[#allocation8 + $0x210] sm:$0xff] }
 0x2da   : > { %v7968_v22 = vadd.f32 %v3311_v43, %v3079_v37  ;;  %3908 = vmatpush.bf16.msrb.mxu0 %v6527_v28  ;;  %v2537_v10 = vrot.slane %v2495_v44, 2 }
 0x2db   : > { %3451 = vmatmul.bf16.vlgmr.msrb.gmra.mxu1 %v2535_v29  ;;  %3402 = vmatmul.bf16.gmra.mxu0 %v7719_v9  ;;  %v2536_v29 = vrot.slane %v2494_v41, 2 }
 0x2dc   : > { %3733 = vmatmul.bf16.vlgmr.msrb.gmra.mxu2 %v6758_v18 }
 0x2dd   : > { %v2538_v24 = vsel %vm2532_vm4, %v2536_v29, %v2537_v10 }
 0x2de   : > { %3822 = vmatmul.bf16.vlgmr.msrb.gmra.mxu3 %v7620_v2 }
 0x2df   : > { %v3081_v62 = vpop.f32.mrf.mxu2 }
 0x2e0   : > { %v3082_v51 = vadd.f32 %v3081_v62, %v2993_v14  ;;  %v2994_v19 = vpop.f32.mrf.mxu1  ;;  %v3365_v43 = vpop.f32.mrf.mxu0  ;;  %v9124_v14 = vld [vmem:[#allocation17_spill] sm:$0xff] }
 0x2e1   : > { %v3314_v38 = vpop.f32.mrf.mxu3  ;;  %v7981_v2 = vadd.f32 %v3365_v43, %v7804_v12  ;;  %v2995_v61 = vadd.f32 %v2994_v19, %v7797_v15 }
 0x2e2   : > { %v7978_v37 = vadd.f32 %v3314_v38, %v3082_v51  ;;  %v9125_v51 = vld [vmem:[#allocation29_spill] sm:$0xff] }
 0x2e7   : > { %v3083_v5 = vpop.f32.mrf.mxu2 }
 0x2e8   : > { %v3084_v54 = vadd.f32 %v3083_v5, %v2995_v61  ;;  %v2997_v18 = vpop.f32.mrf.mxu1  ;;  %v3368_v26 = vpop.f32.mrf.mxu0  ;;  %v9126_v5 = vld [vmem:[#allocation20_spill] sm:$0xff] }
 0x2e9   : > { %v3316_v3 = vpop.f32.mrf.mxu3  ;;  %v7989_v62 = vadd.f32 %v3368_v26, %v7820_v55  ;;  %v2998_v12 = vadd.f32 %v2997_v18, %v7812_v34 }
 0x2ea   : > { %v7985_v27 = vadd.f32 %v3316_v3, %v3084_v54  ;;  %v6759_v54 = vld [vmem:[#allocation2 + $0x48] sm:$0xff]  }
 0x2eb   : > { %3456 = vmatmul.bf16.gmra.mxu1 %v2538_v24  ;;  %3407 = vmatmul.bf16.gmra.mxu0 %v9125_v51 }
 0x2ec   : > { %3738 = vmatmul.bf16.gmra.mxu2 %v9124_v14 }
 0x2ee   : > { %3827 = vmatmul.bf16.gmra.mxu3 %v7648_v11 }
 0x2ef   : > { %v3086_v15 = vpop.f32.mrf.mxu2 }
 0x2f0   : > { %v3087_v38 = vadd.f32 %v3086_v15, %v2998_v12  ;;  %v2999_v0 = vpop.f32.mrf.mxu1  ;;  %v3370_v44 = vpop.f32.mrf.mxu0  ;;  %v6526_v12 = vld [vmem:[#allocation8 + $0x208] sm:$0xff] }
 0x2f1   : > { %v3319_v19 = vpop.f32.mrf.mxu3  ;;  %v7997_v28 = vadd.f32 %v3370_v44, %v7825_v39  ;;  %v3000_v43 = vadd.f32 %v2999_v0, %v7822_v57  ;;  %3909 = vmatpush.bf16.msrb.mxu0 %v6526_v12 }
 0x2f2   : > { %v7994_v41 = vadd.f32 %v3319_v19, %v3087_v38 }
 0x2f7   : > { %v3088_v55 = vpop.f32.mrf.mxu2 }
 0x2f8   : > { %v3089_v29 = vadd.f32 %v3088_v55, %v3000_v43  ;;  %v3002_v11 = vpop.f32.mrf.mxu1  ;;  %v3373_v34 = vpop.f32.mrf.mxu0  ;;  %v9127_v55 = vld [vmem:[#allocation22_spill] sm:$0xff] }
 0x2f9   : > { %v3321_v10 = vpop.f32.mrf.mxu3  ;;  %v8004_v3 = vadd.f32 %v3373_v34, %v7842_v36  ;;  %v3003_v39 = vadd.f32 %v3002_v11, %v7833_v21 }
 0x2fa   : > { %v8000_v61 = vadd.f32 %v3321_v10, %v3089_v29  ;;  %v9128_v29 = vld [vmem:[#allocation18_spill] sm:$0xff] }
 0x2fb   : > { %3461 = vmatmul.bf16.gmra.mxu1 %v9126_v5  ;;  %3412 = vmatmul.bf16.gmra.mxu0 %v7775_v59 }
 0x2fc   : > { %3743 = vmatmul.bf16.gmra.mxu2 %v6759_v54 }
 0x2fe   : > { %3832 = vmatmul.bf16.gmra.mxu3 %v7670_v49 }
 0x2ff   : > { %v3091_v18 = vpop.f32.mrf.mxu2 }
 0x300   : > { %v3092_v57 = vadd.f32 %v3091_v18, %v3003_v39  ;;  %v3004_v26 = vpop.f32.mrf.mxu1  ;;  %v3375_v15 = vpop.f32.mrf.mxu0 }
 0x301   : > { %v3324_v24 = vpop.f32.mrf.mxu3  ;;  %v8012_v38 = vadd.f32 %v3375_v15, %v7851_v4  ;;  %v3005_v36 = vadd.f32 %v3004_v26, %v7848_v1  ;;  %v9129_v15 = vld [vmem:[#allocation23_spill] sm:$0xff] }
 0x302   : > { %v8009_v14 = vadd.f32 %v3324_v24, %v3092_v57 }
 0x307   : > { %v3093_v19 = vpop.f32.mrf.mxu2 }
 0x308   : > { %v3094_v49 = vadd.f32 %v3093_v19, %v3005_v36  ;;  %v3007_v21 = vpop.f32.mrf.mxu1  ;;  %v3378_v43 = vpop.f32.mrf.mxu0 }
 0x309   : > { %v3326_v0 = vpop.f32.mrf.mxu3  ;;  %v8020_v10 = vadd.f32 %v3378_v43, %v7867_v16  ;;  %v3008_v4 = vadd.f32 %v3007_v21, %v7859_v17  ;;  %v6525_v43 = vld [vmem:[#allocation8 + $0x200] sm:$0xff] }
 0x30a   : > { %v8015_v44 = vadd.f32 %v3326_v0, %v3094_v49  ;;  %3910 = vmatpush.bf16.msrb.mxu0 %v6525_v43 }
 0x30b   : > { %3466 = vmatmul.bf16.gmra.mxu1 %v9127_v55  ;;  %3417 = vmatmul.bf16.gmra.mxu0 %v7807_v48 }
 0x30c   : > { %3748 = vmatmul.bf16.gmra.mxu2 %v9128_v29 }
 0x30e   : > { %3837 = vmatmul.bf16.gmra.mxu3 %v7697_v23 }
 0x30f   : > { %v3096_v11 = vpop.f32.mrf.mxu2 }
 0x310   : > { %v3097_v1 = vadd.f32 %v3096_v11, %v3008_v4  ;;  %v3009_v5 = vpop.f32.mrf.mxu1  ;;  %v3380_v39 = vpop.f32.mrf.mxu0 }
 0x311   : > { %v3329_v34 = vpop.f32.mrf.mxu3  ;;  %v8028_v18 = vadd.f32 %v3380_v39, %v7872_v42  ;;  %v3010_v57 = vadd.f32 %v3009_v5, %v7869_v6  ;;  %v9131_v5 = vld [vmem:[#allocation19_spill] sm:$0xff] }
 0x312   : > { %v8025_v54 = vadd.f32 %v3329_v34, %v3097_v1  ;;  %v9130_v34 = vld [vmem:[#allocation25_spill] sm:$0xff] }
 0x317   : > { %v3098_v16 = vpop.f32.mrf.mxu2 }
 0x318   : > { %v3099_v24 = vadd.f32 %v3098_v16, %v3010_v57  ;;  %v3012_v23 = vpop.f32.mrf.mxu1  ;;  %v3383_v17 = vpop.f32.mrf.mxu0 }
 0x319   : > { %v3331_v26 = vpop.f32.mrf.mxu3  ;;  %v8036_v36 = vadd.f32 %v3383_v17, %v7889_v30  ;;  %v3013_v42 = vadd.f32 %v3012_v23, %v7880_v56 }
 0x31a   : > { %v8031_v12 = vadd.f32 %v3331_v26, %v3099_v24 }
 0x31b   : > { %3471 = vmatmul.bf16.gmra.mxu1 %v9129_v15  ;;  %3422 = vmatmul.bf16.gmra.mxu0 %v7828_v31 }
 0x31c   : > { %3753 = vmatmul.bf16.gmra.mxu2 %v7785_v8 }
 0x31e   : > { %3842 = vmatmul.bf16.gmra.mxu3 %v7719_v9 }
 0x31f   : > { %v3101_v19 = vpop.f32.mrf.mxu2 }
 0x320   : > { %v3102_v6 = vadd.f32 %v3101_v19, %v3013_v42  ;;  %v3014_v0 = vpop.f32.mrf.mxu1  ;;  %v3385_v55 = vpop.f32.mrf.mxu0 }
 0x321   : > { %v3334_v49 = vpop.f32.mrf.mxu3  ;;  %v8044_v8 = vadd.f32 %v3385_v55, %v7898_v7  ;;  %v3015_v30 = vadd.f32 %v3014_v0, %v7895_v40  ;;  %v9132_v7 = vld [vmem:[#allocation42_spill] sm:$0xff]  ;;  %v9133_v40 = vld [vmem:[#allocation35_spill] sm:$0xff]  ;;  %v6561_v55 = vld [vmem:[#allocation9 + $0xe4] sm:$0xf] }
 0x322   : > { %v8041_v21 = vadd.f32 %v3334_v49, %v3102_v6 }
 0x327   : > { %v3103_v29 = vpop.f32.mrf.mxu2 }
 0x328   : > { %v3104_v9 = vadd.f32 %v3103_v29, %v3015_v30  ;;  %v3017_v56 = vpop.f32.mrf.mxu1  ;;  %v3388_v1 = vpop.f32.mrf.mxu0  ;;  %v6331_v30 = vld [vmem:[#allocation9 + $0xf0] sm:$0xf0]  ;;  %v6337_v29 = vld [vmem:[#allocation9 + $0xe8] sm:$0xf] }
 0x329   : > { %v3336_v4 = vpop.f32.mrf.mxu3  ;;  %v8052_v39 = vadd.f32 %v3388_v1, %v7914_v35  ;;  %v3018_v57 = vadd.f32 %v3017_v56, %v9132_v7  ;;  %v9135_v1 = vld [vmem:[#allocation26_spill] sm:$0xff] }
 0x32a   : > { %v8047_v11 = vadd.f32 %v3336_v4, %v3104_v9  ;;  %v6334_v9 = vor.u32 %v6561_v55, %v6331_v30  ;;  %v6564_v4 = vld [vmem:[#allocation9 + $0xf4] sm:$0xf0] }
 0x32b   : > { %3476 = vmatmul.bf16.gmra.mxu1 %v9130_v34  ;;  %3427 = vmatmul.bf16.gmra.mxu0 %v9133_v40 }
 0x32c   : > { %3758 = vmatmul.bf16.gmra.mxu2 %v9131_v5  ;;  %v9136_v5 = vld [vmem:[#allocation34_spill] sm:$0xff] }
 0x32d   : > { %4399 = vmatpush.bf16.msra.mxu2 %v6334_v9 }
 0x32e   : > { %3847 = vmatmul.bf16.gmra.mxu3 %v9125_v51 }
 0x32f   : > { %v3106_v16 = vpop.f32.mrf.mxu2 }
 0x330   : > { %v3107_v24 = vadd.f32 %v3106_v16, %v3018_v57  ;;  %v3019_v23 = vpop.f32.mrf.mxu1  ;;  %v3390_v42 = vpop.f32.mrf.mxu0  ;;  %v9137_v16 = vld [vmem:[#allocation37_spill] sm:$0xff] }
 0x331   : > { %v3339_v26 = vpop.f32.mrf.mxu3  ;;  %v8060_v19 = vadd.f32 %v3390_v42, %v7919_v32  ;;  %v3020_v6 = vadd.f32 %v3019_v23, %v7916_v60  ;;  %v6338_v32 = vor.u32 %v6564_v4, %v6337_v29  ;;  %v6329_v42 = vld [vmem:[#allocation9 + $0xe0] sm:$0xf] }
 0x332   : > { %v8057_v17 = vadd.f32 %v3339_v26, %v3107_v24 }
 0x333   : > { %9134 = vst [vmem:[#allocation17_spill] sm:$0xff] %v8060_v19  ;;  %4488 = vmatpush.bf16.msra.mxu3 %v6338_v32  ;;  %v9139_v32 = vld [vmem:[#allocation27_spill] sm:$0xff] }
 0x337   : > { %v3108_v35 = vpop.f32.mrf.mxu2 }
 0x338   : > { %v3109_v49 = vadd.f32 %v3108_v35, %v3020_v6  ;;  %v3022_v51 = vpop.f32.mrf.mxu1  ;;  %v3393_v56 = vpop.f32.mrf.mxu0  ;;  %v6563_v6 = vld [vmem:[#allocation9 + $0xec] sm:$0xf0]  ;;  %v6562_v35 = vld [vmem:[#allocation9 + $0xec] sm:$0xf] }
 0x339   : > { %v3341_v0 = vpop.f32.mrf.mxu3  ;;  %v8068_v7 = vadd.f32 %v3393_v56, %v7936_v33  ;;  %v3023_v60 = vadd.f32 %v3022_v51, %v7927_v63  ;;  %v6339_v33 = vld [vmem:[#allocation9 + $0xf8] sm:$0xf0] }
 0x33a   : > { %v8063_v43 = vadd.f32 %v3341_v0, %v3109_v49  ;;  %v6330_v0 = vor.u32 %v6563_v6, %v6329_v42  ;;  %v6342_v55 = vor.u32 %v6562_v35, %v6339_v33 }
 0x33b   : > { %3481 = vmatmul.bf16.gmra.mxu1 %v9135_v1  ;;  %3432 = vmatmul.bf16.gmra.mxu0 %v9137_v16 }
 0x33c   : > { %3763 = vmatmul.bf16.gmra.mxu2 %v9136_v5  ;;  %4310 = vmatpush.bf16.msra.mxu1 %v6330_v0 }
 0x33d   : > { %4577 = vmatpush.bf16.msra.mxu0 %v6342_v55 }
 0x33e   : > { %3852 = vmatmul.bf16.gmra.mxu3 %v7775_v59 }
 0x33f   : > { %v3111_v57 = vpop.f32.mrf.mxu2 }
 0x340   : > { %v3112_v24 = vadd.f32 %v3111_v57, %v3023_v60  ;;  %v3024_v23 = vpop.f32.mrf.mxu1  ;;  %v3395_v30 = vpop.f32.mrf.mxu0  ;;  %v9140_v60 = vld [vmem:[#allocation21_spill] sm:$0xff] }
 0x341   : > { %v3344_v26 = vpop.f32.mrf.mxu3  ;;  %v8076_v59 = vadd.f32 %v3395_v30, %v7945_v45  ;;  %v3025_v63 = vadd.f32 %v3024_v23, %v7942_v47  ;;  %v9141_v47 = vld [vmem:[#allocation40_spill] sm:$0xff] }
 0x342   : > { %v8073_v49 = vadd.f32 %v3344_v26, %v3112_v24 }
 0x343   : > { %9138 = vst [vmem:[#allocation29_spill] sm:$0xff] %v8076_v59  ;;  %v6547_v59 = vld [vmem:[#allocation9 + $0x6c] sm:$0xf0] }
 0x347   : > { %v3113_v51 = vpop.f32.mrf.mxu2 }
 0x348   : > { %v3114_v29 = vadd.f32 %v3113_v51, %v3025_v63  ;;  %v3027_v4 = vpop.f32.mrf.mxu1  ;;  %v3398_v5 = vpop.f32.mrf.mxu0  ;;  %v6557_v51 = vld [vmem:[#allocation9 + $0xc4] sm:$0xf] }
 0x349   : > { %v3346_v9 = vpop.f32.mrf.mxu3  ;;  %v8084_v57 = vadd.f32 %v3398_v5, %v7962_v58  ;;  %v3028_v45 = vadd.f32 %v3027_v4, %v7953_v25  ;;  %v6560_v5 = vld [vmem:[#allocation9 + $0xd4] sm:$0xf0] }
 0x34a   : > { %v8079_v56 = vadd.f32 %v3346_v9, %v3114_v29  ;;  %v6315_v29 = vld [vmem:[#allocation9 + $0xd0] sm:$0xf0]  ;;  %v6321_v9 = vld [vmem:[#allocation9 + $0xc8] sm:$0xf] }
 0x34b   : > { %3486 = vmatmul.bf16.gmra.mxu1 %v9139_v32  ;;  %3437 = vmatmul.bf16.gmra.mxu0 %v9141_v47  ;;  %v6318_v4 = vor.u32 %v6557_v51, %v6315_v29 }
 0x34c   : > { %3768 = vmatmul.bf16.gmra.mxu2 %v9140_v60 }
 0x34d   : > { %4400 = vmatpush.bf16.msra.mxu2 %v6318_v4 }
 0x34e   : > { %3857 = vmatmul.bf16.gmra.mxu3 %v7807_v48 }
 0x34f   : > { %v3116_v24 = vpop.f32.mrf.mxu2 }
 0x350   : > { %v3117_v26 = vadd.f32 %v3116_v24, %v3028_v45  ;;  %v3029_v42 = vpop.f32.mrf.mxu1  ;;  %v3400_v35 = vpop.f32.mrf.mxu0  ;;  %v9143_v45 = vld [vmem:[#allocation28_spill] sm:$0xff] }
 0x351   : > { %v3349_v23 = vpop.f32.mrf.mxu3  ;;  %v8092_v0 = vadd.f32 %v3400_v35, %v7968_v22  ;;  %v3030_v33 = vadd.f32 %v3029_v42, %v7964_v53  ;;  %v9144_v22 = vld [vmem:[#allocation39_spill] sm:$0xff]  ;;  %v6322_v53 = vor.u32 %v6560_v5, %v6321_v9  ;;  %v6313_v35 = vld [vmem:[#allocation9 + $0xc0] sm:$0xf] }
 0x352   : > { %v8089_v6 = vadd.f32 %v3349_v23, %v3117_v26 }
 0x353   : > { %9142 = vst [vmem:[#allocation20_spill] sm:$0xff] %v8092_v0  ;;  %4489 = vmatpush.bf16.msra.mxu3 %v6322_v53 }
 0x357   : > { %v3118_v58 = vpop.f32.mrf.mxu2 }
 0x358   : > { %v3119_v55 = vadd.f32 %v3118_v58, %v3030_v33  ;;  %v3452_v48 = vpop.f32.mrf.mxu1  ;;  %v3403_v60 = vpop.f32.mrf.mxu0  ;;  %v6559_v33 = vld [vmem:[#allocation9 + $0xcc] sm:$0xf0]  ;;  %v6558_v58 = vld [vmem:[#allocation9 + $0xcc] sm:$0xf] }
 0x359   : > { %v3351_v30 = vpop.f32.mrf.mxu3  ;;  %v8098_v25 = vadd.f32 %v3452_v48, %v7971_v46  ;;  %v8103_v24 = vadd.f32 %v3403_v60, %v7978_v37  ;;  %v6323_v37 = vld [vmem:[#allocation9 + $0xd8] sm:$0xf0] }
 0x35a   : > { %v8095_v63 = vadd.f32 %v3351_v30, %v3119_v55  ;;  %v6314_v30 = vor.u32 %v6559_v33, %v6313_v35  ;;  %v6326_v48 = vor.u32 %v6558_v58, %v6323_v37 }
 0x35b   : > { %3491 = vmatmul.bf16.gmra.mxu1 %v9143_v45  ;;  %3911 = vmatmul.bf16.vlgmr.msrb.gmra.mxu0 %v9129_v15 }
 0x35c   : > { %3773 = vmatmul.bf16.gmra.mxu2 %v9144_v22  ;;  %4311 = vmatpush.bf16.msra.mxu1 %v6314_v30  ;;  %v9147_v22 = vld [vmem:[#allocation24_spill] sm:$0xff] }
 0x35d   : > { %4578 = vmatpush.bf16.msra.mxu0 %v6326_v48  ;;  %v6299_v48 = vld [vmem:[#allocation9 + $0xb0] sm:$0xf0] }
 0x35e   : > { %3862 = vmatmul.bf16.gmra.mxu3 %v7828_v31 }
 0x35f   : > { %v3734_v46 = vpop.f32.mrf.mxu2 }
 0x360   : > { %v3454_v42 = vpop.f32.mrf.mxu1  ;;  %v3405_v51 = vpop.f32.mrf.mxu0 }
 0x361   : > { %v3823_v26 = vpop.f32.mrf.mxu3  ;;  %v8110_v55 = vadd.f32 %v3454_v42, %v7981_v2  ;;  %v8113_v31 = vadd.f32 %v3405_v51, %v7985_v27  ;;  %v9146_v2 = vld [vmem:[#allocation30_spill] sm:$0xff] }
 0x362   : > { %v8107_v23 = vadd.f32 %v3823_v26, %v3734_v46  ;;  %v6305_v51 = vld [vmem:[#allocation9 + $0xa8] sm:$0xf] }
 0x363   : > { %9145 = vst [vmem:[#allocation22_spill] sm:$0xff] %v8113_v31  ;;  %v6273_v31 = vld [vmem:[#allocation9 + $0x68] sm:$0xf] }
 0x367   : > { %v3736_v15 = vpop.f32.mrf.mxu2 }
 0x368   : > { %v3457_v4 = vpop.f32.mrf.mxu1  ;;  %v3408_v60 = vpop.f32.mrf.mxu0 }
 0x369   : > { %v3825_v29 = vpop.f32.mrf.mxu3  ;;  %v8118_v5 = vadd.f32 %v3457_v4, %v7989_v62  ;;  %v8123_v53 = vadd.f32 %v3408_v60, %v7994_v41  ;;  %v9150_v60 = vld [vmem:[#allocation45_spill] sm:$0xff] }
 0x36a   : > { %v8115_v9 = vadd.f32 %v3825_v29, %v3736_v15  ;;  %v6556_v29 = vld [vmem:[#allocation9 + $0xb4] sm:$0xf0] }
 0x36b   : > { %3496 = vmatmul.bf16.gmra.mxu1 %v9146_v2  ;;  %3916 = vmatmul.bf16.gmra.mxu0 %v9130_v34  ;;  %v6553_v34 = vld [vmem:[#allocation9 + $0xa4] sm:$0xf] }
 0x36c   : > { %3778 = vmatmul.bf16.gmra.mxu2 %v9147_v22  ;;  %v6302_v15 = vor.u32 %v6553_v34, %v6299_v48 }
 0x36e   : > { %3867 = vmatmul.bf16.gmra.mxu3 %v9133_v40  ;;  %4401 = vmatpush.bf16.msra.mxu2 %v6302_v15 }
 0x36f   : > { %v3739_v27 = vpop.f32.mrf.mxu2 }
 0x370   : > { %v3459_v42 = vpop.f32.mrf.mxu1  ;;  %v3410_v35 = vpop.f32.mrf.mxu0 }
 0x371   : > { %v3828_v46 = vpop.f32.mrf.mxu3  ;;  %v8130_v62 = vadd.f32 %v3459_v42, %v7997_v28  ;;  %v8133_v33 = vadd.f32 %v3410_v35, %v8000_v61  ;;  %v9149_v28 = vld [vmem:[#allocation31_spill] sm:$0xff]  ;;  %v6306_v61 = vor.u32 %v6556_v29, %v6305_v51  ;;  %v6297_v35 = vld [vmem:[#allocation9 + $0xa0] sm:$0xf] }
 0x372   : > { %v8127_v26 = vadd.f32 %v3828_v46, %v3739_v27 }
 0x373   : > { %9148 = vst [vmem:[#allocation18_spill] sm:$0xff] %v8133_v33  ;;  %4490 = vmatpush.bf16.msra.mxu3 %v6306_v61  ;;  %v6267_v33 = vld [vmem:[#allocation9 + $0x70] sm:$0xf0] }
 0x377   : > { %v3741_v58 = vpop.f32.mrf.mxu2 }
 0x378   : > { %v3462_v37 = vpop.f32.mrf.mxu1  ;;  %v3413_v4 = vpop.f32.mrf.mxu0 }
 0x379   : > { %v3830_v30 = vpop.f32.mrf.mxu3  ;;  %v8138_v40 = vadd.f32 %v3462_v37, %v8004_v3  ;;  %v8143_v22 = vadd.f32 %v3413_v4, %v8009_v14  ;;  %v6307_v14 = vld [vmem:[#allocation9 + $0xb8] sm:$0xf0] }
 0x37a   : > { %v8135_v41 = vadd.f32 %v3830_v30, %v3741_v58  ;;  %v6555_v58 = vld [vmem:[#allocation9 + $0xac] sm:$0xf0]  ;;  %v6554_v30 = vld [vmem:[#allocation9 + $0xac] sm:$0xf] }
 0x37b   : > { %3501 = vmatmul.bf16.gmra.mxu1 %v9149_v28  ;;  %3921 = vmatmul.bf16.gmra.mxu0 %v9135_v1  ;;  %v6298_v34 = vor.u32 %v6555_v58, %v6297_v35  ;;  %v6310_v48 = vor.u32 %v6554_v30, %v6307_v14 }
 0x37c   : > { %3783 = vmatmul.bf16.gmra.mxu2 %v9150_v60 }
 0x37d   : > { %4312 = vmatpush.bf16.msra.mxu1 %v6298_v34  ;;  %4579 = vmatpush.bf16.msra.mxu0 %v6310_v48  ;;  %v6283_v48 = vld [vmem:[#allocation9 + $0x90] sm:$0xf0] }
 0x37e   : > { %3872 = vmatmul.bf16.gmra.mxu3 %v9137_v16 }
 0x37f   : > { %v3744_v3 = vpop.f32.mrf.mxu2 }
 0x380   : > { %v3464_v42 = vpop.f32.mrf.mxu1  ;;  %v3415_v51 = vpop.f32.mrf.mxu0 }
 0x381   : > { %v3833_v27 = vpop.f32.mrf.mxu3  ;;  %v8150_v37 = vadd.f32 %v3464_v42, %v8012_v38  ;;  %v8153_v16 = vadd.f32 %v3415_v51, %v8015_v44  ;;  %v9152_v38 = vld [vmem:[#allocation32_spill] sm:$0xff]  ;;  %v6289_v51 = vld [vmem:[#allocation9 + $0x88] sm:$0xf] }
 0x382   : > { %v8147_v46 = vadd.f32 %v3833_v27, %v3744_v3 }
 0x383   : > { %9151 = vst [vmem:[#allocation23_spill] sm:$0xff] %v8153_v16  ;;  %v6545_v16 = vld [vmem:[#allocation9 + $0x64] sm:$0xf] }
 0x387   : > { %v3746_v1 = vpop.f32.mrf.mxu2 }
 0x388   : > { %v3467_v4 = vpop.f32.mrf.mxu1  ;;  %v3418_v61 = vpop.f32.mrf.mxu0 }
 0x389   : > { %v3835_v15 = vpop.f32.mrf.mxu3  ;;  %v8158_v60 = vadd.f32 %v3467_v4, %v8020_v10  ;;  %v8163_v3 = vadd.f32 %v3418_v61, %v8025_v54  ;;  %v6760_v61 = vld [vmem:[#allocation2 + $0xc0] sm:$0xff]  }
 0x38a   : > { %v8155_v29 = vadd.f32 %v3835_v15, %v3746_v1  ;;  %v6552_v15 = vld [vmem:[#allocation9 + $0x94] sm:$0xf0] }
 0x38b   : > { %3506 = vmatmul.bf16.gmra.mxu1 %v9152_v38  ;;  %3926 = vmatmul.bf16.gmra.mxu0 %v9139_v32  ;;  %v6549_v32 = vld [vmem:[#allocation9 + $0x84] sm:$0xf] }
 0x38c   : > { %3788 = vmatmul.bf16.gmra.mxu2 %v7694_v50  ;;  %v6286_v1 = vor.u32 %v6549_v32, %v6283_v48  ;;  %v6291_v32 = vld [vmem:[#allocation9 + $0x98] sm:$0xf0] }
 0x38e   : > { %3877 = vmatmul.bf16.gmra.mxu3 %v9141_v47  ;;  %4402 = vmatpush.bf16.msra.mxu2 %v6286_v1 }
 0x38f   : > { %v3749_v44 = vpop.f32.mrf.mxu2 }
 0x390   : > { %v3469_v35 = vpop.f32.mrf.mxu1  ;;  %v3420_v58 = vpop.f32.mrf.mxu0 }
 0x391   : > { %v3838_v27 = vpop.f32.mrf.mxu3  ;;  %v8170_v10 = vadd.f32 %v3469_v35, %v8028_v18  ;;  %v8173_v30 = vadd.f32 %v3420_v58, %v8031_v12  ;;  %v9154_v18 = vld [vmem:[#allocation33_spill] sm:$0xff]  ;;  %v6290_v12 = vor.u32 %v6552_v15, %v6289_v51 }
 0x392   : > { %v8167_v42 = vadd.f32 %v3838_v27, %v3749_v44  ;;  %v9155_v27 = vld [vmem:[#allocation43_spill] sm:$0xff]  ;;  %v6281_v58 = vld [vmem:[#allocation9 + $0x80] sm:$0xf] }
 0x393   : > { %9153 = vst [vmem:[#allocation25_spill] sm:$0xff] %v8173_v30  ;;  %4491 = vmatpush.bf16.msra.mxu3 %v6290_v12  ;;  %v2047_v12 = vld [vmem:[#allocation2 + $0xd8] sm:$0xe] }
 0x397   : > { %v3751_v50 = vpop.f32.mrf.mxu2 }
 0x398   : > { %v3472_v14 = vpop.f32.mrf.mxu1  ;;  %v3423_v4 = vpop.f32.mrf.mxu0 }
 0x399   : > { %v3840_v34 = vpop.f32.mrf.mxu3  ;;  %v8178_v47 = vadd.f32 %v3472_v14, %v8036_v36  ;;  %v8182_v44 = vadd.f32 %v3423_v4, %v8041_v21 }
 0x39a   : > { %v8175_v54 = vadd.f32 %v3840_v34, %v3751_v50  ;;  %v6551_v50 = vld [vmem:[#allocation9 + $0x8c] sm:$0xf0]  ;;  %v6550_v34 = vld [vmem:[#allocation9 + $0x8c] sm:$0xf] }
 0x39b   : > { %3511 = vmatmul.bf16.gmra.mxu1 %v9154_v18  ;;  %3931 = vmatmul.bf16.gmra.mxu0 %v9143_v45  ;;  %v6282_v14 = vor.u32 %v6551_v50, %v6281_v58  ;;  %v6294_v48 = vor.u32 %v6550_v34, %v6291_v32  ;;  %v9158_v50 = vld [vmem:[#allocation36_spill] sm:$0xff] }
 0x39c   : > { %3793 = vmatmul.bf16.gmra.mxu2 %v6760_v61  ;;  %v8200_v61 = vld [vmem:[#allocation2 + $0xd8] sm:$0xff]  }
 0x39d   : > { %4313 = vmatpush.bf16.msra.mxu1 %v6282_v14  ;;  %4580 = vmatpush.bf16.msra.mxu0 %v6294_v48  ;;  %9157 = vst [vmem:[#allocation42_spill] sm:$0xff] %v8200_v61  ;;  %v9058_v34 = vunpack.c.h.b16 %v8200_v61  ;;  %v2287_v14 = vunpack.c.l.b16 %v2047_v12 }
 0x39e   : > { %3882 = vmatmul.bf16.gmra.mxu3 %v9155_v27  ;;  %v2048_v27 = vld [vmem:[#allocation2 + $0xe0] sm:$0x1] }
 0x39f   : > { %v8185_v36 = vpop.f32.mrf.mxu2  ;;  %v2288_v32 = vunpack.c.l.b16 %v2048_v27 }
 0x3a0   : > { %v8188_v35 = vpop.f32.mrf.mxu1  ;;  %v3425_v51 = vpop.f32.mrf.mxu0 }
 0x3a1   : > { %v8191_v21 = vadd.f32 %v3425_v51, %v8047_v11  ;;  %v8193_v1 = vpop.f32.mrf.mxu3 }
 0x3a3   : > { %9156 = vst [vmem:[#allocation19_spill] sm:$0xff] %v8191_v21 }
 0x3a7   : > { %v8195_v15 = vpop.f32.mrf.mxu2 }
 0x3a8   : > { %v3477_v4 = vpop.f32.mrf.mxu1  ;;  %v3428_v58 = vpop.f32.mrf.mxu0 }
 0x3a9   : > { %v8198_v45 = vadd.f32 %v3477_v4, %v8052_v39  ;;  %v8205_v11 = vadd.f32 %v3428_v58, %v8057_v17  ;;  %v8212_v48 = vpop.f32.mrf.mxu3  ;;  %v2328_v4 = vpack.c.b16 %v2288_v32, %v2288_v32  ;;  %v6548_v32 = vld [vmem:[#allocation9 + $0x74] sm:$0xf0] }
 0x3ab   : > { %3516 = vmatmul.bf16.gmra.mxu1 %v9158_v50  ;;  %3936 = vmatmul.bf16.gmra.mxu0 %v9146_v2  ;;  %v2387_v21 = vrot.slane %v2328_v4, 1  ;;  %v9162_v4 = vld [vmem:[#allocation38_spill] sm:$0xff] }
 0x3ac   : > { %3798 = vmatmul.bf16.gmra.mxu2 %v7743_v20  ;;  %v2327_v20 = vpack.c.b16 %v9058_v34, %v2287_v14  ;;  %v6270_v14 = vor.u32 %v6545_v16, %v6267_v33  ;;  %v8229_v34 = vld [vmem:[#allocation2 + $0xe4] sm:$0xff]  }
 0x3ae   : > { %3887 = vmatmul.bf16.gmra.mxu3 %v7948_v13  ;;  %v2386_v13 = vrot.slane %v2327_v20, 1  ;;  %4403 = vmatpush.bf16.msra.mxu2 %v6270_v14  ;;  %v6275_v14 = vld [vmem:[#allocation9 + $0x78] sm:$0xf0] }
 0x3af   : > { %v8209_v39 = vpop.f32.mrf.mxu2 }
 0x3b0   : > { %v8214_v51 = vpop.f32.mrf.mxu1  ;;  %v3430_v17 = vpop.f32.mrf.mxu0  ;;  %v2388_v2 = vsel %vm2331_vm3, %v2386_v13, %v2387_v21  ;;  %v9059_v21 = vunpack.c.h.b16 %v8229_v34 }
 0x3b1   : > { %9159 = vst [vmem:[#allocation35_spill] sm:$0xff] %v8214_v51  ;;  %v8219_v58 = vadd.f32 %v3430_v17, %v8063_v43  ;;  %v8227_v0 = vpop.f32.mrf.mxu3  ;;  %v2049_v43 = vld [vmem:[#allocation2 + $0xe4] sm:$0xe]  ;;  %v6274_v17 = vor.u32 %v6548_v32, %v6273_v31 }
 0x3b2   : > { %v2289_v33 = vunpack.c.l.b16 %v2049_v43  ;;  %v6249_v43 = vld [vmem:[#allocation9 + $0x40] sm:$0xf] }
 0x3b3   : > { %9160 = vst [vmem:[#allocation26_spill] sm:$0xff] %v8219_v58  ;;  %4492 = vmatpush.bf16.msra.mxu3 %v6274_v17  ;;  %v6265_v58 = vld [vmem:[#allocation9 + $0x60] sm:$0xf] }
 0x3b4   : > { %v6266_v31 = vor.u32 %v6547_v59, %v6265_v58  ;;  %v6257_v59 = vld [vmem:[#allocation9 + $0x48] sm:$0xf]  ;;  %v6544_v58 = vld [vmem:[#allocation9 + $0x54] sm:$0xf0] }
 0x3b6   : > { %4314 = vmatpush.bf16.msra.mxu1 %v6266_v31  ;;  %v6258_v31 = vor.u32 %v6544_v58, %v6257_v59  ;;  %v6535_v59 = vld [vmem:[#allocation9 + $0xc] sm:$0xf0]  ;;  %v6533_v58 = vld [vmem:[#allocation9 + $0x4] sm:$0xf] }
 0x3b7   : > { %v8221_v12 = vpop.f32.mrf.mxu2 }
 0x3b8   : > { %v3482_v27 = vpop.f32.mrf.mxu1  ;;  %v3433_v20 = vpop.f32.mrf.mxu0  ;;  %4493 = vmatpush.bf16.msra.mxu3 %v6258_v31  ;;  %v6225_v31 = vld [vmem:[#allocation9 + $0x8] sm:$0xf] }
 0x3b9   : > { %v8224_v30 = vadd.f32 %v3482_v27, %v8068_v7  ;;  %v2050_v7 = vld [vmem:[#allocation2 + $0xec] sm:$0x1]  ;;  %v8234_v27 = vadd.f32 %v3433_v20, %v8073_v49  ;;  %v2329_v49 = vpack.c.b16 %v9059_v21, %v2289_v33 }
 0x3ba   : > { %v2290_v16 = vunpack.c.l.b16 %v2050_v7  ;;  %v6543_v7 = vld [vmem:[#allocation9 + $0x4c] sm:$0xf0] }
 0x3bb   : > { %9161 = vst [vmem:[#allocation34_spill] sm:$0xff] %v8224_v30  ;;  %3521 = vmatmul.bf16.gmra.mxu1 %v9162_v4  ;;  %3941 = vmatmul.bf16.gmra.mxu0 %v9149_v28  ;;  %v6250_v51 = vor.u32 %v6543_v7, %v6249_v43  ;;  %v2389_v19 = vrot.slane %v2329_v49, 1  ;;  %v6241_v43 = vld [vmem:[#allocation9 + $0x28] sm:$0xf]  ;;  %v6540_v7 = vld [vmem:[#allocation9 + $0x34] sm:$0xf0] }
 0x3bc   : > { %3803 = vmatmul.bf16.gmra.mxu2 %v8200_v61  ;;  %9163 = vst [vmem:[#allocation37_spill] sm:$0xff] %v8234_v27  ;;  %v2330_v32 = vpack.c.b16 %v2290_v16, %v2290_v16  ;;  %v6541_v27 = vld [vmem:[#allocation9 + $0x44] sm:$0xf] }
 0x3bd   : > { %4315 = vmatpush.bf16.msra.mxu1 %v6250_v51  ;;  %v6537_v61 = vld [vmem:[#allocation9 + $0x24] sm:$0xf] }
 0x3be   : > { %3892 = vmatmul.bf16.gmra.mxu3 %v2388_v2  ;;  %v6546_v2 = vld [vmem:[#allocation9 + $0x6c] sm:$0xf]  ;;  %v2390_v33 = vrot.slane %v2330_v32, 1  ;;  %v9168_v51 = vld [vmem:[#allocation41_spill] sm:$0xff] }
 0x3bf   : > { %v8237_v13 = vpop.f32.mrf.mxu2  ;;  %v6278_v17 = vor.u32 %v6546_v2, %v6275_v14  ;;  %v6233_v2 = vld [vmem:[#allocation9 + $0x20] sm:$0xf]  ;;  %v6539_v14 = vld [vmem:[#allocation9 + $0x2c] sm:$0xf0] }
 0x3c0   : > { %9164 = vst [vmem:[#allocation27_spill] sm:$0xff] %v8237_v13  ;;  %v8240_v30 = vpop.f32.mrf.mxu1  ;;  %v3435_v20 = vpop.f32.mrf.mxu0  ;;  %v2391_v49 = vsel %vm2331_vm3, %v2389_v19, %v2390_v33  ;;  %v6536_v19 = vld [vmem:[#allocation9 + $0x14] sm:$0xf0] }
 0x3c1   : > { %9165 = vst [vmem:[#allocation21_spill] sm:$0xff] %v8240_v30  ;;  %v8244_v13 = vpop.f32.mrf.mxu3  ;;  %v8247_v28 = vadd.f32 %v3435_v20, %v8079_v56  ;;  %v6251_v30 = vld [vmem:[#allocation9 + $0x50] sm:$0xf0]  ;;  %4581 = vmatpush.bf16.msra.mxu0 %v6278_v17  ;;  %v6234_v56 = vor.u32 %v6539_v14, %v6233_v2  ;;  %v6217_v17 = vld [vmem:[#allocation9] sm:$0xf]  ;;  %v6226_v33 = vor.u32 %v6536_v19, %v6225_v31 }
 0x3c2   : > { %9166 = vst [vmem:[#allocation40_spill] sm:$0xff] %v8244_v13  ;;  %v6254_v16 = vor.u32 %v6541_v27, %v6251_v30  ;;  %v6235_v20 = vld [vmem:[#allocation9 + $0x30] sm:$0xf0]  ;;  %v6242_v27 = vor.u32 %v6540_v7, %v6241_v43 }
 0x3c3   : > { %9167 = vst [vmem:[#allocation28_spill] sm:$0xff] %v8247_v28  ;;  %v6238_v30 = vor.u32 %v6537_v61, %v6235_v20  ;;  %4316 = vmatpush.bf16.msra.mxu1 %v6234_v56 }
 0x3c4   : > { %4404 = vmatpush.bf16.msra.mxu2 %v6254_v16  ;;  %4494 = vmatpush.bf16.msra.mxu3 %v6242_v27 }
 0x3c7   : > { %v8249_v21 = vpop.f32.mrf.mxu2 }
 0x3c8   : > { %v3487_v13 = vpop.f32.mrf.mxu1  ;;  %v3438_v32 = vpop.f32.mrf.mxu0  ;;  %4405 = vmatpush.bf16.msra.mxu2 %v6238_v30  ;;  %4495 = vmatpush.bf16.msra.mxu3 %v6226_v33 }
 0x3c9   : > { %v8252_v28 = vadd.f32 %v3487_v13, %v8084_v57  ;;  %v8258_v16 = vadd.f32 %v3438_v32, %v8089_v6  ;;  %v6218_v57 = vor.u32 %v6535_v59, %v6217_v17  ;;  %v6219_v13 = vld [vmem:[#allocation9 + $0x10] sm:$0xf0]  ;;  %v8260_v2 = vpop.f32.mrf.mxu3 }
 0x3ca   : > { %v6222_v61 = vor.u32 %v6533_v58, %v6219_v13  ;;  %v8286_v58 = vld [vmem:[#allocation11] ss:$0 sm:$0xff]  ;;  %v6259_v13 = vld [vmem:[#allocation9 + $0x58] sm:$0xf0] }
 0x3cb   : > { %3526 = vmatmul.bf16.gmra.mxu1 %v9168_v51  ;;  %3946 = vmatmul.bf16.gmra.mxu0 %v9152_v38 }
 0x3cc   : > { %3808 = vmatmul.bf16.gmra.mxu2 %v8229_v34  ;;  %4317 = vmatpush.bf16.msra.mxu1 %v6218_v57  ;;  %v6542_v57 = vld [vmem:[#allocation9 + $0x4c] sm:$0xf] }
 0x3cd   : > { %4406 = vmatpush.bf16.msra.mxu2 %v6222_v61 }
 0x3ce   : > { %3897 = vmatmul.bf16.gmra.mxu3 %v2391_v49 }
 0x3cf   : > { %v8262_v14 = vpop.f32.mrf.mxu2 }
 0x3d0   : > { %v8265_v56 = vpop.f32.mrf.mxu1  ;;  %v3440_v6 = vpop.f32.mrf.mxu0 }
 0x3d1   : > { %v8268_v20 = vadd.f32 %v3440_v6, %v8095_v63  ;;  %v8272_v7 = vpop.f32.mrf.mxu3 }
 0x3d3   : > { %9169 = vst [vmem:[#allocation39_spill] sm:$0xff] %v8268_v20 }
 0x3d7   : > { %v8270_v43 = vpop.f32.mrf.mxu2 }
 0x3d8   : > { %v3492_v49 = vpop.f32.mrf.mxu1  ;;  %v3912_v27 = vpop.f32.mrf.mxu0 }
 0x3d9   : > { %v8275_v30 = vadd.f32 %v3492_v49, %v8103_v24  ;;  %v3913_v38 = vadd.f32 %v3912_v27, %v8107_v23  ;;  %v8284_v63 = vpop.f32.mrf.mxu3  ;;  %v6262_v24 = vor.u32 %v6542_v57, %v6259_v13 }
 0x3db   : > { %v3992_v32 = vadd.f32 %v3913_v38, %v8098_v25  ;;  %3951 = vmatmul.bf16.gmra.mxu0 %v9154_v18 }
 0x3dc   : > { %4582 = vmatpush.bf16.msra.mxu0 %v6262_v24 }
 0x3dd   : > { %v4028_v23 = vadd.f32 %v8286_v58, %v3992_v32 }
 0x3df   : > { %v8279_v17 = vpop.f32.mrf.mxu2  ;;  %v4060_v49 = vmax.f32 %v4028_v23, 0.0 }
 0x3e0   : > { %v8282_v59 = vpop.f32.mrf.mxu1  ;;  %v3914_v31 = vpop.f32.mrf.mxu0 }
 0x3e1   : > { %v3915_v19 = vadd.f32 %v3914_v31, %v8115_v9  ;;  %v8297_v20 = vpop.f32.mrf.mxu3 }
 0x3e3   : > { %v3993_v25 = vadd.f32 %v3915_v19, %v8110_v55 }
 0x3e5   : > { %v4029_v18 = vadd.f32 %v8286_v58, %v3993_v25 }
 0x3e7   : > { %v8291_v61 = vpop.f32.mrf.mxu2  ;;  %v4061_v27 = vmax.f32 %v4029_v18, 0.0 }
 0x3e8   : > { %v3497_v33 = vpop.f32.mrf.mxu1  ;;  %v3917_v38 = vpop.f32.mrf.mxu0 }
 0x3e9   : > { %v8295_v6 = vadd.f32 %v3497_v33, %v8123_v53  ;;  %v8299_v57 = vpack.c.bf16 %v4061_v27, %v4060_v49  ;;  %v3918_v9 = vadd.f32 %v3917_v38, %v8127_v26  ;;  %v8312_v24 = vpop.f32.mrf.mxu3 }
 0x3eb   : > { %v3994_v32 = vadd.f32 %v3918_v9, %v8118_v5  ;;  %3956 = vmatmul.bf16.gmra.mxu0 %v9158_v50  ;;  %4318 = vmatmul.bf16.vlgmr.msra.gmra.mxu1 %v8299_v57 }
 0x3ec   : > { %4407 = vmatmul.bf16.vlgmr.msra.gmra.mxu2 %v8299_v57  ;;  %4496 = vmatmul.bf16.vlgmr.msra.gmra.mxu3 %v8299_v57 }
 0x3ed   : > { %v4030_v26 = vadd.f32 %v8286_v58, %v3994_v32  ;;  %v6538_v32 = vld [vmem:[#allocation9 + $0x2c] sm:$0xf] }
 0x3ef   : > { %v8303_v55 = vpop.f32.mrf.mxu2  ;;  %v4062_v18 = vmax.f32 %v4030_v26, 0.0 }
 0x3f0   : > { %v8309_v53 = vpop.f32.mrf.mxu1  ;;  %v3919_v13 = vpop.f32.mrf.mxu0 }
 0x3f1   : > { %v3920_v31 = vadd.f32 %v3919_v13, %v8135_v41 }
 0x3f3   : > { %v3995_v5 = vadd.f32 %v3920_v31, %v8130_v62  ;;  %v8332_v62 = vpop.f32.mrf.mxu3 }
 0x3f5   : > { %v4031_v50 = vadd.f32 %v8286_v58, %v3995_v5 }
 0x3f7   : > { %v8316_v19 = vpop.f32.mrf.mxu2  ;;  %v4063_v33 = vmax.f32 %v4031_v50, 0.0 }
 0x3f8   : > { %v3502_v23 = vpop.f32.mrf.mxu1  ;;  %v3922_v49 = vpop.f32.mrf.mxu0 }
 0x3f9   : > { %v8320_v25 = vadd.f32 %v3502_v23, %v8143_v22  ;;  %v3923_v27 = vadd.f32 %v3922_v49, %v8147_v46  ;;  %v8323_v41 = vpack.c.bf16 %v4063_v33, %v4062_v18  ;;  %v6243_v46 = vld [vmem:[#allocation9 + $0x38] sm:$0xf0] }
 0x3fa   : > { %v6246_v31 = vor.u32 %v6538_v32, %v6243_v46 }
 0x3fb   : > { %v3996_v38 = vadd.f32 %v3923_v27, %v8138_v40  ;;  %3961 = vmatmul.bf16.gmra.mxu0 %v9162_v4  ;;  %4323 = vmatmul.bf16.gmra.mxu1 %v8323_v41  ;;  %v8345_v33 = vpop.f32.mrf.mxu3 }
 0x3fc   : > { %4412 = vmatmul.bf16.gmra.mxu2 %v8323_v41  ;;  %4501 = vmatmul.bf16.gmra.mxu3 %v8323_v41 }
 0x3fd   : > { %4583 = vmatpush.bf16.msra.mxu0 %v6246_v31  ;;  %v4032_v26 = vadd.f32 %v8286_v58, %v3996_v38 }
 0x3ff   : > { %v8326_v9 = vpop.f32.mrf.mxu2  ;;  %v4064_v49 = vmax.f32 %v4032_v26, 0.0 }
 0x400   : > { %v8334_v22 = vpop.f32.mrf.mxu1  ;;  %v3924_v13 = vpop.f32.mrf.mxu0 }
 0x401   : > { %v3925_v40 = vadd.f32 %v3924_v13, %v8155_v29 }
 0x403   : > { %v3997_v4 = vadd.f32 %v3925_v40, %v8150_v37  ;;  %v8359_v31 = vpop.f32.mrf.mxu3 }
 0x405   : > { %v4033_v50 = vadd.f32 %v8286_v58, %v3997_v4 }
 0x407   : > { %v8339_v5 = vpop.f32.mrf.mxu2  ;;  %v4065_v27 = vmax.f32 %v4033_v50, 0.0  ;;  %v3844_v50 = vadd.f32 %v8193_v1, %v8185_v36  ;;  %v3846_v36 = vadd.f32 %v8212_v48, %v8195_v15  ;;  %v6534_v1 = vld [vmem:[#allocation9 + $0xc] sm:$0xf]  ;;  %v3849_v48 = vadd.f32 %v8227_v0, %v8209_v39 }
 0x408   : > { %v3507_v23 = vpop.f32.mrf.mxu1  ;;  %v3927_v32 = vpop.f32.mrf.mxu0 }
 0x409   : > { %v8343_v18 = vadd.f32 %v3507_v23, %v8163_v3  ;;  %v3928_v29 = vadd.f32 %v3927_v32, %v8167_v42  ;;  %v8348_v46 = vpack.c.bf16 %v4065_v27, %v4064_v49 }
 0x40b   : > { %v3998_v38 = vadd.f32 %v3928_v29, %v8158_v60  ;;  %3966 = vmatmul.bf16.gmra.mxu0 %v9168_v51  ;;  %4328 = vmatmul.bf16.gmra.mxu1 %v8348_v46 }
 0x40c   : > { %4417 = vmatmul.bf16.gmra.mxu2 %v8348_v46  ;;  %4506 = vmatmul.bf16.gmra.mxu3 %v8348_v46 }
 0x40d   : > { %v4034_v40 = vadd.f32 %v8286_v58, %v3998_v38  ;;  %v8374_v38 = vpop.f32.mrf.mxu3 }
 0x40f   : > { %v8355_v37 = vpop.f32.mrf.mxu2  ;;  %v4066_v23 = vmax.f32 %v4034_v40, 0.0 }
 0x410   : > { %v8357_v3 = vpop.f32.mrf.mxu1  ;;  %v3929_v13 = vpop.f32.mrf.mxu0 }
 0x411   : > { %v3930_v42 = vadd.f32 %v3929_v13, %v8175_v54  ;;  %v9170_v13 = vld [vmem:[#allocation44_spill] sm:$0xff] }
 0x413   : > { %v3999_v60 = vadd.f32 %v3930_v42, %v8170_v10  ;;  %v6227_v42 = vld [vmem:[#allocation9 + $0x18] sm:$0xf0] }
 0x415   : > { %v4035_v51 = vadd.f32 %v8286_v58, %v3999_v60  ;;  %v6230_v60 = vor.u32 %v6534_v1, %v6227_v42  ;;  %v2087_v1 = vld [vmem:[#allocation2 + $0xd8] sm:$0xc] }
 0x417   : > { %v4067_v49 = vmax.f32 %v4035_v51, 0.0  ;;  %v8370_v27 = vpop.f32.mrf.mxu2  ;;  %4584 = vmatpush.bf16.msra.mxu0 %v6230_v60 }
 0x418   : > { %v3512_v26 = vpop.f32.mrf.mxu1  ;;  %v3932_v32 = vpop.f32.mrf.mxu0 }
 0x419   : > { %v8366_v4 = vadd.f32 %v3512_v26, %v8182_v44  ;;  %v3933_v29 = vadd.f32 %v3932_v32, %v3844_v50  ;;  %v8372_v54 = vpack.c.bf16 %v4067_v49, %v4066_v23  ;;  %v8390_v49 = vpop.f32.mrf.mxu3 }
 0x41b   : > { %v4000_v10 = vadd.f32 %v3933_v29, %v8178_v47  ;;  %3971 = vmatmul.bf16.gmra.mxu0 %v9170_v13  ;;  %4333 = vmatmul.bf16.gmra.mxu1 %v8372_v54  ;;  %v3475_v47 = vadd.f32 %v8188_v35, %v8044_v8 }
 0x41c   : > { %4422 = vmatmul.bf16.gmra.mxu2 %v8372_v54  ;;  %4511 = vmatmul.bf16.gmra.mxu3 %v8372_v54 }
 0x41d   : > { %v4036_v50 = vadd.f32 %v8286_v58, %v4000_v10  ;;  %v2088_v10 = vld [vmem:[#allocation2 + $0xe0] sm:$0x3] }
 0x41e   : > { %v2489_v0 = vunpack.c.l.b16 %v2088_v10 }
 0x41f   : > { %v8387_v51 = vpop.f32.mrf.mxu2  ;;  %v4068_v13 = vmax.f32 %v4036_v50, 0.0 }
 0x420   : > { %v8381_v44 = vpop.f32.mrf.mxu1  ;;  %v3934_v40 = vpop.f32.mrf.mxu0 }
 0x421   : > { %9171 = vst [vmem:[#allocation30_spill] sm:$0xff] %v8381_v44  ;;  %v3935_v26 = vadd.f32 %v3934_v40, %v3846_v36  ;;  %v8411_v50 = vpop.f32.mrf.mxu3  ;;  %v9180_v44 = vld [vmem:[#allocation37_spill] sm:$0xff] }
 0x423   : > { %v4001_v23 = vadd.f32 %v3935_v26, %v3475_v47  ;;  %v9175_v47 = vld [vmem:[#allocation40_spill] sm:$0xff] }
 0x424   : > { %v3851_v26 = vadd.f32 %v9175_v47, %v8221_v12 }
 0x425   : > { %v4037_v32 = vadd.f32 %v8286_v58, %v4001_v23  ;;  %v9176_v23 = vld [vmem:[#allocation42_spill] sm:$0xff] }
 0x427   : > { %v4069_v8 = vmax.f32 %v4037_v32, 0.0  ;;  %v8400_v40 = vpop.f32.mrf.mxu2  ;;  %v9177_v32 = vunpack.c.h.b16 %v9176_v23 }
 0x428   : > { %v3517_v29 = vpop.f32.mrf.mxu1  ;;  %v3937_v35 = vpop.f32.mrf.mxu0  ;;  %9173 = vst [vmem:[#allocation31_spill] sm:$0xff] %v8400_v40 }
 0x429   : > { %v8394_v15 = vadd.f32 %v3517_v29, %v8205_v11  ;;  %v3938_v36 = vadd.f32 %v3937_v35, %v3849_v48  ;;  %v8398_v42 = vpack.c.bf16 %v4069_v8, %v4068_v13  ;;  %v2488_v11 = vunpack.c.l.b16 %v2087_v1  ;;  %v9178_v48 = vld [vmem:[#allocation17_spill] sm:$0xff]  ;;  %v9179_v13 = vld [vmem:[#allocation35_spill] sm:$0xff] }
 0x42a   : > { %v3480_v8 = vadd.f32 %v9179_v13, %v9178_v48  ;;  %v2090_v13 = vld [vmem:[#allocation2 + $0xec] sm:$0x3] }
 0x42b   : > { %9172 = vst [vmem:[#allocation24_spill] sm:$0xff] %v8394_v15  ;;  %v4002_v60 = vadd.f32 %v3938_v36, %v8198_v45  ;;  %3976 = vmatmul.bf16.gmra.mxu0 %v7951_v52  ;;  %4338 = vmatmul.bf16.gmra.mxu1 %v8398_v42  ;;  %v2528_v45 = vpack.c.b16 %v9177_v32, %v2488_v11  ;;  %v9181_v11 = vld [vmem:[#allocation27_spill] sm:$0xff] }
 0x42c   : > { %4427 = vmatmul.bf16.gmra.mxu2 %v8398_v42  ;;  %4516 = vmatmul.bf16.gmra.mxu3 %v8398_v42  ;;  %v2529_v52 = vpack.c.b16 %v2489_v0, %v2489_v0  ;;  %v3854_v0 = vadd.f32 %v8260_v2, %v9181_v11 }
 0x42d   : > { %v4038_v1 = vadd.f32 %v8286_v58, %v4002_v60  ;;  %v2587_v10 = vrot.slane %v2528_v45, 2  ;;  %v8427_v60 = vpop.f32.mrf.mxu3 }
 0x42e   : > { %v2588_v15 = vrot.slane %v2529_v52, 2  ;;  %v2089_v52 = vld [vmem:[#allocation2 + $0xe4] sm:$0xc] }
 0x42f   : > { %v4070_v23 = vmax.f32 %v4038_v1, 0.0  ;;  %v2490_v2 = vunpack.c.l.b16 %v2089_v52 }
 0x430   : > { %v8407_v39 = vpop.f32.mrf.mxu1  ;;  %v3939_v29 = vpop.f32.mrf.mxu0 }
 0x431   : > { %9174 = vst [vmem:[#allocation45_spill] sm:$0xff] %v8407_v39  ;;  %v3940_v35 = vadd.f32 %v3939_v29, %v3851_v26  ;;  %v8418_v39 = vpop.f32.mrf.mxu2  ;;  %v2589_v26 = vsel %vm2532_vm4, %v2587_v10, %v2588_v15  ;;  %v3856_v15 = vadd.f32 %v8272_v7, %v8249_v21 }
 0x433   : > { %v4003_v36 = vadd.f32 %v3940_v35, %v3480_v8  ;;  %v9182_v8 = vld [vmem:[#allocation34_spill] sm:$0xff] }
 0x435   : > { %v4039_v12 = vadd.f32 %v8286_v58, %v4003_v36 }
 0x437   : > { %v4071_v32 = vmax.f32 %v4039_v12, 0.0  ;;  %v9184_v12 = vunpack.c.h.b16 %v8229_v34  ;;  %v3859_v34 = vadd.f32 %v8284_v63, %v8262_v14  ;;  %v3861_v14 = vadd.f32 %v8297_v20, %v8270_v43 }
 0x438   : > { %v3522_v47 = vpop.f32.mrf.mxu1  ;;  %v3942_v48 = vpop.f32.mrf.mxu0 }
 0x439   : > { %v8422_v40 = vadd.f32 %v3522_v47, %v9180_v44  ;;  %v3943_v45 = vadd.f32 %v3942_v48, %v3854_v0  ;;  %v8429_v29 = vpack.c.bf16 %v4071_v32, %v4070_v23  ;;  %v2491_v44 = vunpack.c.l.b16 %v2090_v13  ;;  %v8439_v36 = vpop.f32.mrf.mxu2  ;;  %v9185_v0 = vld [vmem:[#allocation29_spill] sm:$0xff] }
 0x43a   : > { %v2530_v47 = vpack.c.b16 %v9184_v12, %v2490_v2  ;;  %v9186_v23 = vld [vmem:[#allocation21_spill] sm:$0xff] }
 0x43b   : > { %v4004_v35 = vadd.f32 %v3943_v45, %v9182_v8  ;;  %3981 = vmatmul.bf16.gmra.mxu0 %v2589_v26  ;;  %4343 = vmatmul.bf16.gmra.mxu1 %v8429_v29  ;;  %v2531_v11 = vpack.c.b16 %v2491_v44, %v2491_v44  ;;  %v3485_v32 = vadd.f32 %v9186_v23, %v9185_v0  ;;  %v8445_v26 = vpop.f32.mrf.mxu3 }
 0x43c   : > { %4432 = vmatmul.bf16.gmra.mxu2 %v8429_v29  ;;  %4521 = vmatmul.bf16.gmra.mxu3 %v8429_v29  ;;  %v2590_v13 = vrot.slane %v2530_v47, 2 }
 0x43d   : > { %v4040_v45 = vadd.f32 %v8286_v58, %v4004_v35  ;;  %v2591_v8 = vrot.slane %v2531_v11, 2  ;;  %v9187_v11 = vld [vmem:[#allocation20_spill] sm:$0xff] }
 0x43e   : > { %v3490_v23 = vadd.f32 %v8265_v56, %v9187_v11 }
 0x43f   : > { %v4072_v2 = vmax.f32 %v4040_v45, 0.0 }
 0x440   : > { %v8435_v1 = vpop.f32.mrf.mxu1  ;;  %v3944_v10 = vpop.f32.mrf.mxu0 }
 0x441   : > { %9183 = vst [vmem:[#allocation32_spill] sm:$0xff] %v8435_v1  ;;  %v3945_v48 = vadd.f32 %v3944_v10, %v3856_v15  ;;  %v8454_v12 = vpop.f32.mrf.mxu2  ;;  %v2592_v10 = vsel %vm2532_vm4, %v2590_v13, %v2591_v8  ;;  %v3864_v13 = vadd.f32 %v8312_v24, %v8279_v17  ;;  %v3866_v17 = vadd.f32 %v8332_v62, %v8291_v61 }
 0x443   : > { %v4005_v52 = vadd.f32 %v3945_v48, %v3485_v32 }
 0x445   : > { %v4041_v21 = vadd.f32 %v8286_v58, %v4005_v52 }
 0x447   : > { %v4073_v44 = vmax.f32 %v4041_v21, 0.0 }
 0x448   : > { %v3527_v7 = vpop.f32.mrf.mxu1  ;;  %v3947_v15 = vpop.f32.mrf.mxu0 }
 0x449   : > { %v8450_v1 = vadd.f32 %v3527_v7, %v8258_v16  ;;  %v3948_v35 = vadd.f32 %v3947_v15, %v3859_v34  ;;  %v8457_v0 = vpack.c.bf16 %v4073_v44, %v4072_v2  ;;  %v8463_v16 = vpop.f32.mrf.mxu3  ;;  %v8469_v48 = vpop.f32.mrf.mxu2  ;;  %v9188_v15 = vld [vmem:[#allocation22_spill] sm:$0xff] }
 0x44b   : > { %v4006_v47 = vadd.f32 %v3948_v35, %v8252_v28  ;;  %3986 = vmatmul.bf16.gmra.mxu0 %v2592_v10  ;;  %4348 = vmatmul.bf16.gmra.mxu1 %v8457_v0  ;;  %v3495_v10 = vadd.f32 %v8282_v59, %v9188_v15  ;;  %v3869_v59 = vadd.f32 %v8345_v33, %v8303_v55 }
 0x44c   : > { %4437 = vmatmul.bf16.gmra.mxu2 %v8457_v0  ;;  %4526 = vmatmul.bf16.gmra.mxu3 %v8457_v0 }
 0x44d   : > { %v4042_v28 = vadd.f32 %v8286_v58, %v4006_v47 }
 0x44f   : > { %v4074_v21 = vmax.f32 %v4042_v28, 0.0 }
 0x450   : > { %v3949_v63 = vpop.f32.mrf.mxu0  ;;  %v8488_v24 = vpop.f32.mrf.mxu1 }
 0x451   : > { %v3950_v32 = vadd.f32 %v3949_v63, %v3861_v14  ;;  %v8475_v8 = vpop.f32.mrf.mxu3  ;;  %v8482_v2 = vpop.f32.mrf.mxu2  ;;  %v8498_v14 = vld [vmem:[%s9007_s6] sm:$0xf] }
 0x452   : > { %v8504_v63 = vperm.slane %v8498_v14, 0  ;;  %v8520_v55 = vperm.slane %v8498_v14, 1 }
 0x453   : > { %v4007_v45 = vadd.f32 %v3950_v32, %v3490_v23 }
 0x455   : > { %v4043_v52 = vadd.f32 %v8286_v58, %v4007_v45 }
 0x457   : > { %v4075_v7 = vmax.f32 %v4043_v52, 0.0 }
 0x458   : > { %v3952_v20 = vpop.f32.mrf.mxu0 }
 0x459   : > { %v3953_v43 = vadd.f32 %v3952_v20, %v3864_v13  ;;  %v8477_v34 = vpack.c.bf16 %v4075_v7, %v4074_v21  ;;  %v8501_v62 = vpop.f32.mrf.mxu2  ;;  %v389_v20 = vld [vmem:[%s7181_s22] sm:$0xff] }
 0x45b   : > { %v4008_v56 = vadd.f32 %v3953_v43, %v8275_v30  ;;  %4353 = vmatmul.bf16.gmra.mxu1 %v8477_v34  ;;  %4585 = vmatmul.bf16.vlgmr.msra.gmra.mxu0 %v8299_v57  ;;  %v8492_v30 = vpop.f32.mrf.mxu3  ;;  %v4794_v43 = vunpack.c.l.bf16 %v389_v20 }
 0x45c   : > { %4442 = vmatmul.bf16.gmra.mxu2 %v8477_v34  ;;  %4531 = vmatmul.bf16.gmra.mxu3 %v8477_v34 }
 0x45d   : > { %v4044_v57 = vadd.f32 %v8286_v58, %v4008_v56  ;;  %v3871_v56 = vadd.f32 %v8359_v31, %v8316_v19  ;;  %v391_v19 = vld [vmem:[%s7181_s22 + $0x10] sm:$0xff] }
 0x45f   : > { %v4076_v11 = vmax.f32 %v4044_v57, 0.0 }
 0x460   : > { %v3954_v44 = vpop.f32.mrf.mxu0 }
 0x461   : > { %v3955_v35 = vadd.f32 %v3954_v44, %v3866_v17  ;;  %v4795_v44 = vunpack.c.h.bf16 %v389_v20 }
 0x463   : > { %v4009_v47 = vadd.f32 %v3955_v35, %v3495_v10  ;;  %v8508_v45 = vpop.f32.mrf.mxu3 }
 0x465   : > { %v4045_v61 = vadd.f32 %v8286_v58, %v4009_v47 }
 0x467   : > { %v4077_v23 = vmax.f32 %v4045_v61, 0.0 }
 0x468   : > { %v3957_v32 = vpop.f32.mrf.mxu0  ;;  %v4319_v28 = vpop.f32.mrf.mxu1 }
 0x469   : > { %v3958_v52 = vadd.f32 %v3957_v32, %v3869_v59  ;;  %v8510_v13 = vpack.c.bf16 %v4077_v23, %v4076_v11  ;;  %v4320_v21 = vadd.f32 %v4319_v28, %v8504_v63 }
 0x46b   : > { %v4010_v7 = vadd.f32 %v3958_v52, %v8295_v6  ;;  %4358 = vmatmul.bf16.gmra.mxu1 %v8510_v13  ;;  %4590 = vmatmul.bf16.gmra.mxu0 %v8323_v41  ;;  %v4666_v33 = vmax.f32 %v4320_v21, 0.0  ;;  %v9189_v41 = vld [vmem:[#allocation18_spill] sm:$0xff]  ;;  %v8528_v11 = vpop.f32.mrf.mxu3 }
 0x46c   : > { %4447 = vmatmul.bf16.gmra.mxu2 %v8510_v13  ;;  %4536 = vmatmul.bf16.gmra.mxu3 %v8510_v13  ;;  %v3500_v35 = vadd.f32 %v8309_v53, %v9189_v41  ;;  %v3874_v53 = vadd.f32 %v8374_v38, %v8326_v9 }
 0x46d   : > { %v4922_v47 = vadd.f32 %v4794_v43, %v4666_v33  ;;  %v4046_v23 = vadd.f32 %v8286_v58, %v4010_v7 }
 0x46f   : > { %v4408_v17 = vpop.f32.mrf.mxu2  ;;  %v5050_v52 = vmax.f32 %v4922_v47, 0.0  ;;  %v4078_v33 = vmax.f32 %v4046_v23, 0.0 }
 0x470   : > { %v4409_v6 = vadd.f32 %v4408_v17, %v8520_v55  ;;  %v3959_v15 = vpop.f32.mrf.mxu0  ;;  %v4321_v10 = vpop.f32.mrf.mxu1  ;;  %v4798_v17 = vunpack.c.l.bf16 %v391_v19 }
 0x471   : > { %v3960_v57 = vadd.f32 %v3959_v15, %v3871_v56  ;;  %v4322_v59 = vadd.f32 %v4321_v10, %v8504_v63  ;;  %v4799_v15 = vunpack.c.h.bf16 %v391_v19 }
 0x472   : > { %v4667_v61 = vmax.f32 %v4409_v6, 0.0 }
 0x473   : > { %v4011_v32 = vadd.f32 %v3960_v57, %v3500_v35  ;;  %v4670_v20 = vmax.f32 %v4322_v59, 0.0  ;;  %v8550_v23 = vpop.f32.mrf.mxu3 }
 0x474   : > { %v4923_v31 = vadd.f32 %v4795_v44, %v4667_v61  ;;  %v393_v61 = vld [vmem:[%s7181_s22 + $0x20] sm:$0xff] }
 0x475   : > { %v4047_v28 = vadd.f32 %v8286_v58, %v4011_v32  ;;  %v4926_v57 = vadd.f32 %v4798_v17, %v4670_v20  ;;  %v4803_v20 = vunpack.c.h.bf16 %v393_v61 }
 0x476   : > { %v5051_v21 = vmax.f32 %v4923_v31, 0.0 }
 0x477   : > { %v4079_v43 = vmax.f32 %v4047_v28, 0.0  ;;  %v4410_v56 = vpop.f32.mrf.mxu2  ;;  %v5054_v32 = vmax.f32 %v4926_v57, 0.0  ;;  %v4802_v28 = vunpack.c.l.bf16 %v393_v61 }
 0x478   : > { %v5178_v6 = vpack.c.bf16 %v5051_v21, %v5050_v52  ;;  %v4411_v7 = vadd.f32 %v4410_v56, %v8520_v55  ;;  %v3962_v10 = vpop.f32.mrf.mxu0  ;;  %v4324_v44 = vpop.f32.mrf.mxu1 }
 0x479   : > { %v3963_v41 = vadd.f32 %v3962_v10, %v3874_v53  ;;  %v8536_v35 = vpack.c.bf16 %v4079_v43, %v4078_v33  ;;  %v4325_v38 = vadd.f32 %v4324_v44, %v8504_v63  ;;  %v9190_v33 = vld [vmem:[#allocation23_spill] sm:$0xff] }
 0x47a   : > { %5242 = vst [vmem:[%s8540_s16] sm:$0xff] %v5178_v6  ;;  %v4671_v9 = vmax.f32 %v4411_v7, 0.0  ;;  %v3505_v43 = vadd.f32 %v8334_v22, %v9190_v33  ;;  %v3879_v22 = vadd.f32 %v8411_v50, %v8355_v37  ;;  %v397_v33 = vld [vmem:[%s7181_s22 + $0x40] sm:$0xff] }
 0x47b   : > { %v4012_v47 = vadd.f32 %v3963_v41, %v8320_v25  ;;  %4363 = vmatmul.bf16.gmra.mxu1 %v8536_v35  ;;  %4595 = vmatmul.bf16.gmra.mxu0 %v8348_v46  ;;  %v4674_v31 = vmax.f32 %v4325_v38, 0.0  ;;  %v3876_v25 = vadd.f32 %v8390_v49, %v8339_v5  ;;  %v395_v5 = vld [vmem:[%s7181_s22 + $0x30] sm:$0xff] }
 0x47c   : > { %v4927_v59 = vadd.f32 %v4799_v15, %v4671_v9  ;;  %4452 = vmatmul.bf16.gmra.mxu2 %v8536_v35  ;;  %4541 = vmatmul.bf16.gmra.mxu3 %v8536_v35  ;;  %v4806_v61 = vunpack.c.l.bf16 %v395_v5 }
 0x47d   : > { %v4930_v6 = vadd.f32 %v4802_v28, %v4674_v31  ;;  %v4048_v10 = vadd.f32 %v8286_v58, %v4012_v47 }
 0x47e   : > { %v5055_v19 = vmax.f32 %v4927_v59, 0.0  ;;  %v8564_v59 = vpop.f32.mrf.mxu3 }
 0x47f   : > { %v4413_v52 = vpop.f32.mrf.mxu2  ;;  %v5058_v57 = vmax.f32 %v4930_v6, 0.0 }
 0x480   : > { %v5180_v21 = vpack.c.bf16 %v5055_v19, %v5054_v32  ;;  %v4414_v46 = vadd.f32 %v4413_v52, %v8520_v55  ;;  %v3964_v17 = vpop.f32.mrf.mxu0  ;;  %v4326_v53 = vpop.f32.mrf.mxu1  ;;  %v4080_v32 = vmax.f32 %v4048_v10, 0.0  ;;  %v3881_v10 = vadd.f32 %v8427_v60, %v8370_v27 }
 0x481   : > { %v3965_v56 = vadd.f32 %v3964_v17, %v3876_v25  ;;  %v4327_v15 = vadd.f32 %v4326_v53, %v8504_v63  ;;  %v4807_v25 = vunpack.c.h.bf16 %v395_v5 }
 0x482   : > { %5244 = vst [vmem:[%s8540_s16 + $0x10] sm:$0xff] %v5180_v21  ;;  %v4675_v7 = vmax.f32 %v4414_v46, 0.0 }
 0x483   : > { %v4013_v44 = vadd.f32 %v3965_v56, %v3505_v43  ;;  %v4678_v38 = vmax.f32 %v4327_v15, 0.0  ;;  %v4810_v15 = vunpack.c.l.bf16 %v397_v33 }
 0x484   : > { %v4931_v49 = vadd.f32 %v4803_v20, %v4675_v7 }
 0x485   : > { %v4049_v41 = vadd.f32 %v8286_v58, %v4013_v44  ;;  %v4934_v17 = vadd.f32 %v4806_v61, %v4678_v38 }
 0x486   : > { %v5059_v9 = vmax.f32 %v4931_v49, 0.0  ;;  %v4811_v49 = vunpack.c.h.bf16 %v397_v33  ;;  %v8582_v38 = vpop.f32.mrf.mxu3 }
 0x487   : > { %v4081_v19 = vmax.f32 %v4049_v41, 0.0  ;;  %v4415_v31 = vpop.f32.mrf.mxu2  ;;  %v5062_v56 = vmax.f32 %v4934_v17, 0.0 }
 0x488   : > { %v5182_v47 = vpack.c.bf16 %v5059_v9, %v5058_v57  ;;  %v4416_v28 = vadd.f32 %v4415_v31, %v8520_v55  ;;  %v3967_v52 = vpop.f32.mrf.mxu0  ;;  %v4329_v21 = vpop.f32.mrf.mxu1  ;;  %v9191_v57 = vld [vmem:[#allocation25_spill] sm:$0xff]  ;;  %v399_v31 = vld [vmem:[%s7181_s22 + $0x50] sm:$0xff] }
 0x489   : > { %v3968_v46 = vadd.f32 %v3967_v52, %v3879_v22  ;;  %v8567_v20 = vpack.c.bf16 %v4081_v19, %v4080_v32  ;;  %v4330_v37 = vadd.f32 %v4329_v21, %v8504_v63  ;;  %v3510_v9 = vadd.f32 %v8357_v3, %v9191_v57 }
 0x48a   : > { %5246 = vst [vmem:[%s8540_s16 + $0x20] sm:$0xff] %v5182_v47  ;;  %v4679_v53 = vmax.f32 %v4416_v28, 0.0  ;;  %v4814_v3 = vunpack.c.l.bf16 %v399_v31 }
 0x48b   : > { %v4014_v50 = vadd.f32 %v3968_v46, %v8343_v18  ;;  %4368 = vmatmul.bf16.gmra.mxu1 %v8567_v20  ;;  %4600 = vmatmul.bf16.gmra.mxu0 %v8372_v54  ;;  %v4682_v7 = vmax.f32 %v4330_v37, 0.0  ;;  %v3884_v46 = vadd.f32 %v8445_v26, %v8387_v51  ;;  %v401_v26 = vld [vmem:[%s7181_s22 + $0x60] sm:$0xff] }
 0x48c   : > { %v4935_v43 = vadd.f32 %v4807_v25, %v4679_v53  ;;  %4457 = vmatmul.bf16.gmra.mxu2 %v8567_v20  ;;  %4546 = vmatmul.bf16.gmra.mxu3 %v8567_v20 }
 0x48d   : > { %v4938_v22 = vadd.f32 %v4810_v15, %v4682_v7  ;;  %v4050_v27 = vadd.f32 %v8286_v58, %v4014_v50 }
 0x48e   : > { %v5063_v6 = vmax.f32 %v4935_v43, 0.0  ;;  %v4815_v43 = vunpack.c.h.bf16 %v399_v31  ;;  %v9193_v31 = vld [vmem:[#allocation19_spill] sm:$0xff] }
 0x48f   : > { %v4418_v18 = vpop.f32.mrf.mxu2  ;;  %v5066_v25 = vmax.f32 %v4938_v22, 0.0  ;;  %v4082_v17 = vmax.f32 %v4050_v27, 0.0  ;;  %v4819_v27 = vunpack.c.h.bf16 %v401_v26 }
 0x490   : > { %v5184_v44 = vpack.c.bf16 %v5063_v6, %v5062_v56  ;;  %v4419_v5 = vadd.f32 %v4418_v18, %v8520_v55  ;;  %v3969_v54 = vpop.f32.mrf.mxu0  ;;  %v4331_v41 = vpop.f32.mrf.mxu1 }
 0x491   : > { %v3970_v61 = vadd.f32 %v3969_v54, %v3881_v10  ;;  %v4332_v19 = vadd.f32 %v4331_v41, %v8504_v63 }
 0x492   : > { %5248 = vst [vmem:[%s8540_s16 + $0x30] sm:$0xff] %v5184_v44  ;;  %v4683_v32 = vmax.f32 %v4419_v5, 0.0  ;;  %v8596_v5 = vpop.f32.mrf.mxu3 }
 0x493   : > { %v4015_v60 = vadd.f32 %v3970_v61, %v3510_v9  ;;  %v4686_v21 = vmax.f32 %v4332_v19, 0.0  ;;  %v4818_v9 = vunpack.c.l.bf16 %v401_v26  ;;  %v9192_v61 = vld [vmem:[#allocation31_spill] sm:$0xff] }
 0x494   : > { %v4939_v47 = vadd.f32 %v4811_v49, %v4683_v32  ;;  %v3886_v22 = vadd.f32 %v8463_v16, %v9192_v61  ;;  %v403_v16 = vld [vmem:[%s7181_s22 + $0x70] sm:$0xff] }
 0x495   : > { %v4051_v28 = vadd.f32 %v8286_v58, %v4015_v60  ;;  %v4942_v10 = vadd.f32 %v4814_v3, %v4686_v21 }
 0x496   : > { %v5067_v52 = vmax.f32 %v4939_v47, 0.0  ;;  %v9194_v47 = vld [vmem:[#allocation30_spill] sm:$0xff] }
 0x497   : > { %v4083_v53 = vmax.f32 %v4051_v28, 0.0  ;;  %v4420_v37 = vpop.f32.mrf.mxu2  ;;  %v5070_v54 = vmax.f32 %v4942_v10, 0.0  ;;  %v3515_v28 = vadd.f32 %v9194_v47, %v9193_v31  ;;  %v3891_v47 = vadd.f32 %v8492_v30, %v8439_v36 }
 0x498   : > { %v5186_v33 = vpack.c.bf16 %v5067_v52, %v5066_v25  ;;  %v4421_v50 = vadd.f32 %v4420_v37, %v8520_v55  ;;  %v3972_v56 = vpop.f32.mrf.mxu0  ;;  %v4334_v6 = vpop.f32.mrf.mxu1 }
 0x499   : > { %v3973_v7 = vadd.f32 %v3972_v56, %v3884_v46  ;;  %v8592_v15 = vpack.c.bf16 %v4083_v53, %v4082_v17  ;;  %v4335_v44 = vadd.f32 %v4334_v6, %v8504_v63  ;;  %v4822_v6 = vunpack.c.l.bf16 %v403_v16 }
 0x49a   : > { %5250 = vst [vmem:[%s8540_s16 + $0x40] sm:$0xff] %v5186_v33  ;;  %v4687_v18 = vmax.f32 %v4421_v50, 0.0  ;;  %v8613_v37 = vpop.f32.mrf.mxu3 }
 0x49b   : > { %v4016_v51 = vadd.f32 %v3973_v7, %v8366_v4  ;;  %4373 = vmatmul.bf16.gmra.mxu1 %v8592_v15  ;;  %4605 = vmatmul.bf16.gmra.mxu0 %v8398_v42  ;;  %v4690_v57 = vmax.f32 %v4335_v44, 0.0  ;;  %v3889_v7 = vadd.f32 %v8475_v8, %v8418_v39  ;;  %v405_v8 = vld [vmem:[%s7181_s22 + $0x80] sm:$0xff] }
 0x49c   : > { %v4943_v49 = vadd.f32 %v4815_v43, %v4687_v18  ;;  %4462 = vmatmul.bf16.gmra.mxu2 %v8592_v15  ;;  %4551 = vmatmul.bf16.gmra.mxu3 %v8592_v15  ;;  %v4826_v31 = vunpack.c.l.bf16 %v405_v8 }
 0x49d   : > { %v4946_v52 = vadd.f32 %v4818_v9, %v4690_v57  ;;  %v4052_v46 = vadd.f32 %v8286_v58, %v4016_v51 }
 0x49e   : > { %v5071_v41 = vmax.f32 %v4943_v49, 0.0  ;;  %v4823_v49 = vunpack.c.h.bf16 %v403_v16  ;;  %v9197_v16 = vld [vmem:[#allocation45_spill] sm:$0xff] }
 0x49f   : > { %v4423_v4 = vpop.f32.mrf.mxu2  ;;  %v5074_v50 = vmax.f32 %v4946_v52, 0.0  ;;  %v4084_v10 = vmax.f32 %v4052_v46, 0.0 }
 0x4a0   : > { %v5188_v32 = vpack.c.bf16 %v5071_v41, %v5070_v54  ;;  %v4424_v19 = vadd.f32 %v4423_v4, %v8520_v55  ;;  %v3974_v42 = vpop.f32.mrf.mxu0  ;;  %v4336_v60 = vpop.f32.mrf.mxu1 }
 0x4a1   : > { %v3975_v25 = vadd.f32 %v3974_v42, %v3886_v22  ;;  %v4337_v3 = vadd.f32 %v4336_v60, %v8504_v63 }
 0x4a2   : > { %5252 = vst [vmem:[%s8540_s16 + $0x50] sm:$0xff] %v5188_v32  ;;  %v4691_v21 = vmax.f32 %v4424_v19, 0.0  ;;  %v9195_v32 = vld [vmem:[#allocation24_spill] sm:$0xff] }
 0x4a3   : > { %v4017_v17 = vadd.f32 %v3975_v25, %v3515_v28  ;;  %v4694_v56 = vmax.f32 %v4337_v3, 0.0  ;;  %v8631_v28 = vpop.f32.mrf.mxu3 }
 0x4a4   : > { %v4947_v53 = vadd.f32 %v4819_v27, %v4691_v21  ;;  %v4827_v21 = vunpack.c.h.bf16 %v405_v8 }
 0x4a5   : > { %v4053_v33 = vadd.f32 %v8286_v58, %v4017_v17  ;;  %v4950_v61 = vadd.f32 %v4822_v6, %v4694_v56  ;;  %v9196_v17 = vld [vmem:[#allocation26_spill] sm:$0xff] }
 0x4a6   : > { %v5075_v43 = vmax.f32 %v4947_v53, 0.0  ;;  %v3520_v53 = vadd.f32 %v9197_v16, %v9196_v17  ;;  %v407_v6 = vld [vmem:[%s7181_s22 + $0x90] sm:$0xff] }
 0x4a7   : > { %v4085_v18 = vmax.f32 %v4053_v33, 0.0  ;;  %v4425_v44 = vpop.f32.mrf.mxu2  ;;  %v5078_v27 = vmax.f32 %v4950_v61, 0.0 }
 0x4a8   : > { %v5190_v51 = vpack.c.bf16 %v5075_v43, %v5074_v50  ;;  %v4426_v26 = vadd.f32 %v4425_v44, %v8520_v55  ;;  %v3977_v54 = vpop.f32.mrf.mxu0  ;;  %v4339_v41 = vpop.f32.mrf.mxu1 }
 0x4a9   : > { %v3978_v57 = vadd.f32 %v3977_v54, %v3889_v7  ;;  %v8619_v9 = vpack.c.bf16 %v4085_v18, %v4084_v10  ;;  %v4340_v4 = vadd.f32 %v4339_v41, %v8504_v63  ;;  %v3894_v10 = vadd.f32 %v8508_v45, %v8454_v12 }
 0x4aa   : > { %5254 = vst [vmem:[%s8540_s16 + $0x60] sm:$0xff] %v5190_v51  ;;  %v4695_v22 = vmax.f32 %v4426_v26, 0.0 }
 0x4ab   : > { %v4018_v39 = vadd.f32 %v3978_v57, %v9195_v32  ;;  %4378 = vmatmul.bf16.gmra.mxu1 %v8619_v9  ;;  %4610 = vmatmul.bf16.gmra.mxu0 %v8429_v29  ;;  %v4698_v60 = vmax.f32 %v4340_v4, 0.0  ;;  %v4831_v4 = vunpack.c.h.bf16 %v407_v6  ;;  %v8644_v8 = vpop.f32.mrf.mxu3 }
 0x4ac   : > { %v4951_v19 = vadd.f32 %v4823_v49, %v4695_v22  ;;  %4467 = vmatmul.bf16.gmra.mxu2 %v8619_v9  ;;  %4556 = vmatmul.bf16.gmra.mxu3 %v8619_v9  ;;  %v4830_v49 = vunpack.c.l.bf16 %v407_v6 }
 0x4ad   : > { %v4954_v50 = vadd.f32 %v4826_v31, %v4698_v60  ;;  %v4054_v36 = vadd.f32 %v8286_v58, %v4018_v39  ;;  %v409_v31 = vld [vmem:[%s7181_s22 + $0xa0] sm:$0xff] }
 0x4ae   : > { %v5079_v42 = vmax.f32 %v4951_v19, 0.0  ;;  %v4835_v16 = vunpack.c.h.bf16 %v409_v31 }
 0x4af   : > { %v4428_v25 = vpop.f32.mrf.mxu2  ;;  %v5082_v44 = vmax.f32 %v4954_v50, 0.0  ;;  %v4086_v54 = vmax.f32 %v4054_v36, 0.0  ;;  %v9199_v50 = vld [vmem:[#allocation32_spill] sm:$0xff] }
 0x4b0   : > { %v5192_v52 = vpack.c.bf16 %v5079_v42, %v5078_v27  ;;  %v4429_v29 = vadd.f32 %v4428_v25, %v8520_v55  ;;  %v3979_v3 = vpop.f32.mrf.mxu0  ;;  %v4341_v46 = vpop.f32.mrf.mxu1 }
 0x4b1   : > { %v3980_v33 = vadd.f32 %v3979_v3, %v3891_v47  ;;  %v4342_v56 = vadd.f32 %v4341_v46, %v8504_v63  ;;  %v3896_v3 = vadd.f32 %v8528_v11, %v8469_v48 }
 0x4b2   : > { %5256 = vst [vmem:[%s8540_s16 + $0x70] sm:$0xff] %v5192_v52  ;;  %v4699_v43 = vmax.f32 %v4429_v29, 0.0 }
 0x4b3   : > { %v4019_v30 = vadd.f32 %v3980_v33, %v3520_v53  ;;  %v4702_v26 = vmax.f32 %v4342_v56, 0.0  ;;  %v9198_v33 = vld [vmem:[#allocation28_spill] sm:$0xff] }
 0x4b4   : > { %v4955_v7 = vadd.f32 %v4827_v21, %v4699_v43  ;;  %v4834_v21 = vunpack.c.l.bf16 %v409_v31  ;;  %v3525_v43 = vadd.f32 %v9199_v50, %v9198_v33  ;;  %v413_v31 = vld [vmem:[%s7181_s22 + $0xc0] sm:$0xff]  ;;  %v9200_v33 = vld [vmem:[#allocation39_spill] sm:$0xff] }
 0x4b5   : > { %v4055_v18 = vadd.f32 %v8286_v58, %v4019_v30  ;;  %v4958_v19 = vadd.f32 %v4830_v49, %v4702_v26  ;;  %v3530_v50 = vadd.f32 %v8488_v24, %v9200_v33 }
 0x4b6   : > { %v5083_v51 = vmax.f32 %v4955_v7, 0.0  ;;  %v8663_v7 = vpop.f32.mrf.mxu3 }
 0x4b7   : > { %v4087_v41 = vmax.f32 %v4055_v18, 0.0  ;;  %v4430_v57 = vpop.f32.mrf.mxu2  ;;  %v5086_v25 = vmax.f32 %v4958_v19, 0.0 }
 0x4b8   : > { %v5194_v61 = vpack.c.bf16 %v5083_v51, %v5082_v44  ;;  %v4431_v22 = vadd.f32 %v4430_v57, %v8520_v55  ;;  %v3982_v32 = vpop.f32.mrf.mxu0  ;;  %v4344_v39 = vpop.f32.mrf.mxu1  ;;  %v3899_v44 = vadd.f32 %v8550_v23, %v8482_v2 }
 0x4b9   : > { %v3983_v12 = vadd.f32 %v3982_v32, %v3894_v10  ;;  %v8646_v45 = vpack.c.bf16 %v4087_v41, %v4086_v54  ;;  %v4345_v42 = vadd.f32 %v4344_v39, %v8504_v63  ;;  %v411_v10 = vld [vmem:[%s7181_s22 + $0xb0] sm:$0xff] }
 0x4ba   : > { %5258 = vst [vmem:[%s8540_s16 + $0x80] sm:$0xff] %v5194_v61  ;;  %v4703_v27 = vmax.f32 %v4431_v22, 0.0  ;;  %v4838_v41 = vunpack.c.l.bf16 %v411_v10  ;;  %v4839_v39 = vunpack.c.h.bf16 %v411_v10  ;;  %v390_v10 = vld [vmem:[%s7181_s22 + $0x8] sm:$0xff] }
 0x4bb   : > { %v4020_v60 = vadd.f32 %v3983_v12, %v8422_v40  ;;  %4383 = vmatmul.bf16.gmra.mxu1 %v8646_v45  ;;  %4615 = vmatmul.bf16.gmra.mxu0 %v8457_v0  ;;  %v4706_v29 = vmax.f32 %v4345_v42, 0.0 }
 0x4bc   : > { %v4959_v47 = vadd.f32 %v4831_v4, %v4703_v27  ;;  %4472 = vmatmul.bf16.gmra.mxu2 %v8646_v45  ;;  %4561 = vmatmul.bf16.gmra.mxu3 %v8646_v45 }
 0x4bd   : > { %v4962_v36 = vadd.f32 %v4834_v21, %v4706_v29  ;;  %v4056_v48 = vadd.f32 %v8286_v58, %v4020_v60 }
 0x4be   : > { %v5087_v52 = vmax.f32 %v4959_v47, 0.0 }
 0x4bf   : > { %v4433_v40 = vpop.f32.mrf.mxu2  ;;  %v5090_v26 = vmax.f32 %v4962_v36, 0.0  ;;  %v4088_v57 = vmax.f32 %v4056_v48, 0.0 }
 0x4c0   : > { %v5196_v46 = vpack.c.bf16 %v5087_v52, %v5086_v25  ;;  %v4434_v17 = vadd.f32 %v4433_v40, %v8520_v55  ;;  %v3984_v0 = vpop.f32.mrf.mxu0  ;;  %v4346_v53 = vpop.f32.mrf.mxu1  ;;  %v8686_v40 = vperm.slane %v8498_v14, 2 }
 0x4c1   : > { %v3985_v56 = vadd.f32 %v3984_v0, %v3896_v3  ;;  %v4347_v6 = vadd.f32 %v4346_v53, %v8504_v63  ;;  %v8681_v25 = vpop.f32.mrf.mxu3  ;;  %v4842_v3 = vunpack.c.l.bf16 %v413_v31 }
 0x4c2   : > { %5260 = vst [vmem:[%s8540_s16 + $0x90] sm:$0xff] %v5196_v46  ;;  %v4707_v30 = vmax.f32 %v4434_v17, 0.0 }
 0x4c3   : > { %v4021_v11 = vadd.f32 %v3985_v56, %v3525_v43  ;;  %v4710_v54 = vmax.f32 %v4347_v6, 0.0 }
 0x4c4   : > { %v4963_v18 = vadd.f32 %v4835_v16, %v4707_v30  ;;  %v4843_v16 = vunpack.c.h.bf16 %v413_v31  ;;  %v6761_v30 = vld [vmem:[#allocation11] ss:$0 sm:$0xff] }
 0x4c5   : > { %v4057_v51 = vadd.f32 %v8286_v58, %v4021_v11  ;;  %v4966_v2 = vadd.f32 %v4838_v41, %v4710_v54  ;;  %v415_v11 = vld [vmem:[%s7181_s22 + $0xd0] sm:$0xff] }
 0x4c6   : > { %v5091_v49 = vmax.f32 %v4963_v18, 0.0  ;;  %v4846_v54 = vunpack.c.l.bf16 %v415_v11 }
 0x4c7   : > { %v4089_v61 = vmax.f32 %v4057_v51, 0.0  ;;  %v4435_v22 = vpop.f32.mrf.mxu2  ;;  %v5094_v52 = vmax.f32 %v4966_v2, 0.0  ;;  %v8698_v51 = vperm.slane %v8498_v14, 3  ;;  %v4797_v2 = vunpack.c.h.bf16 %v390_v10 }
 0x4c8   : > { %v5198_v4 = vpack.c.bf16 %v5091_v49, %v5090_v26  ;;  %v4436_v32 = vadd.f32 %v4435_v22, %v8520_v55  ;;  %v3987_v12 = vpop.f32.mrf.mxu0  ;;  %v4349_v19 = vpop.f32.mrf.mxu1 }
 0x4c9   : > { %v3988_v27 = vadd.f32 %v3987_v12, %v3899_v44  ;;  %v8671_v42 = vpack.c.bf16 %v4089_v61, %v4088_v57  ;;  %v4350_v23 = vadd.f32 %v4349_v19, %v8504_v63  ;;  %v4796_v57 = vunpack.c.l.bf16 %v390_v10  ;;  %v8700_v61 = vpop.f32.mrf.mxu3 }
 0x4ca   : > { %5262 = vst [vmem:[%s8540_s16 + $0xa0] sm:$0xff] %v5198_v4  ;;  %v4711_v58 = vmax.f32 %v4436_v32, 0.0  ;;  %v4847_v12 = vunpack.c.h.bf16 %v415_v11 }
 0x4cb   : > { %v4022_v60 = vadd.f32 %v3988_v27, %v8450_v1  ;;  %4388 = vmatmul.bf16.gmra.mxu1 %v8671_v42  ;;  %4620 = vmatmul.bf16.gmra.mxu0 %v8477_v34  ;;  %v4714_v21 = vmax.f32 %v4350_v23, 0.0  ;;  %v3901_v1 = vadd.f32 %v8564_v59, %v8501_v62  ;;  %v4498_v59 = vadd.f32 %v8582_v38, %v8686_v40 }
 0x4cc   : > { %v4967_v47 = vadd.f32 %v4839_v39, %v4711_v58  ;;  %4477 = vmatmul.bf16.gmra.mxu2 %v8671_v42  ;;  %4566 = vmatmul.bf16.gmra.mxu3 %v8671_v42 }
 0x4cd   : > { %v4970_v56 = vadd.f32 %v4842_v3, %v4714_v21  ;;  %v4058_v6 = vadd.f32 %v6761_v30, %v4022_v60  ;;  %v4668_v41 = vmax.f32 %v4498_v59, 0.0  ;;  %v392_v3 = vld [vmem:[%s7181_s22 + $0x18] sm:$0xff] }
 0x4ce   : > { %v5095_v29 = vmax.f32 %v4967_v47, 0.0  ;;  %v4800_v33 = vunpack.c.l.bf16 %v392_v3  ;;  %v4801_v11 = vunpack.c.h.bf16 %v392_v3 }
 0x4cf   : > { %v4438_v46 = vpop.f32.mrf.mxu2  ;;  %v5098_v24 = vmax.f32 %v4970_v56, 0.0  ;;  %v4090_v38 = vmax.f32 %v4058_v6, 0.0  ;;  %v4924_v47 = vadd.f32 %v4796_v57, %v4668_v41  ;;  %v394_v41 = vld [vmem:[%s7181_s22 + $0x28] sm:$0xff] }
 0x4d0   : > { %v5200_v34 = vpack.c.bf16 %v5095_v29, %v5094_v52  ;;  %v4439_v17 = vadd.f32 %v4438_v46, %v8520_v55  ;;  %v3989_v0 = vpop.f32.mrf.mxu0  ;;  %v4351_v53 = vpop.f32.mrf.mxu1  ;;  %v4500_v52 = vadd.f32 %v8596_v5, %v8686_v40  ;;  %v417_v29 = vld [vmem:[%s7181_s22 + $0xe0] sm:$0xff] }
 0x4d1   : > { %v3990_v43 = vadd.f32 %v3989_v0, %v3901_v1  ;;  %v4352_v62 = vadd.f32 %v4351_v53, %v8504_v63  ;;  %v4850_v0 = vunpack.c.l.bf16 %v417_v29  ;;  %v5052_v53 = vmax.f32 %v4924_v47, 0.0 }
 0x4d2   : > { %5264 = vst [vmem:[%s8540_s16 + $0xb0] sm:$0xff] %v5200_v34  ;;  %v4715_v36 = vmax.f32 %v4439_v17, 0.0  ;;  %v4672_v5 = vmax.f32 %v4500_v52, 0.0 }
 0x4d3   : > { %v4023_v48 = vadd.f32 %v3990_v43, %v3530_v50  ;;  %v4718_v49 = vmax.f32 %v4352_v62, 0.0 }
 0x4d4   : > { %v4971_v18 = vadd.f32 %v4843_v16, %v4715_v36  ;;  %v4851_v36 = vunpack.c.h.bf16 %v417_v29 }
 0x4d5   : > { %v4059_v44 = vadd.f32 %v6761_v30, %v4023_v48  ;;  %v4974_v23 = vadd.f32 %v4846_v54, %v4718_v49  ;;  %v8717_v30 = vpop.f32.mrf.mxu3  ;;  %v419_v49 = vld [vmem:[%s7181_s22 + $0xf0] sm:$0xff] }
 0x4d6   : > { %v5099_v26 = vmax.f32 %v4971_v18, 0.0 }
 0x4d7   : > { %v4091_v22 = vmax.f32 %v4059_v44, 0.0  ;;  %v4440_v4 = vpop.f32.mrf.mxu2  ;;  %v5102_v34 = vmax.f32 %v4974_v23, 0.0 }
 0x4d8   : > { %v5202_v32 = vpack.c.bf16 %v5099_v26, %v5098_v24  ;;  %v4441_v39 = vadd.f32 %v4440_v4, %v8520_v55  ;;  %v4354_v14 = vpop.f32.mrf.mxu1  ;;  %v4586_v19 = vpop.f32.mrf.mxu0  ;;  %v4928_v24 = vadd.f32 %v4800_v33, %v4672_v5  ;;  %v4503_v26 = vadd.f32 %v8613_v37, %v8686_v40  ;;  %v396_v5 = vld [vmem:[%s7181_s22 + $0x38] sm:$0xff] }
 0x4d9   : > { %v4587_v27 = vadd.f32 %v4586_v19, %v8698_v51  ;;  %v8704_v58 = vpack.c.bf16 %v4091_v22, %v4090_v38  ;;  %v4355_v31 = vadd.f32 %v4354_v14, %v8504_v63  ;;  %v4804_v19 = vunpack.c.l.bf16 %v394_v41 }
 0x4da   : > { %5266 = vst [vmem:[%s8540_s16 + $0xc0] sm:$0xff] %v5202_v32  ;;  %v4719_v60 = vmax.f32 %v4441_v39, 0.0  ;;  %v4854_v39 = vunpack.c.l.bf16 %v419_v49  ;;  %v4676_v14 = vmax.f32 %v4503_v26, 0.0 }
 0x4db   : > { %v4669_v21 = vmax.f32 %v4587_v27, 0.0  ;;  %4393 = vmatmul.bf16.gmra.mxu1 %v8704_v58  ;;  %4625 = vmatmul.bf16.gmra.mxu0 %v8510_v13  ;;  %v4722_v16 = vmax.f32 %v4355_v31, 0.0 }
 0x4dc   : > { %v4975_v1 = vadd.f32 %v4847_v12, %v4719_v60  ;;  %4482 = vmatmul.bf16.gmra.mxu2 %v8704_v58  ;;  %4571 = vmatmul.bf16.gmra.mxu3 %v8704_v58  ;;  %v5056_v12 = vmax.f32 %v4928_v24, 0.0  ;;  %v4855_v60 = vunpack.c.h.bf16 %v419_v49  ;;  %v4809_v49 = vunpack.c.h.bf16 %v396_v5 }
 0x4dd   : > { %v4925_v46 = vadd.f32 %v4797_v2, %v4669_v21  ;;  %v4978_v10 = vadd.f32 %v4850_v0, %v4722_v16  ;;  %v4805_v21 = vunpack.c.h.bf16 %v394_v41  ;;  %v8733_v16 = vpop.f32.mrf.mxu3  ;;  %v421_v0 = vld [vmem:[%s7181_s22 + $0x100] sm:$0xff] }
 0x4de   : > { %v5103_v17 = vmax.f32 %v4975_v1, 0.0 }
 0x4df   : > { %v5053_v50 = vmax.f32 %v4925_v46, 0.0  ;;  %v4443_v43 = vpop.f32.mrf.mxu2  ;;  %v5106_v22 = vmax.f32 %v4978_v10, 0.0 }
 0x4e0   : > { %v5204_v56 = vpack.c.bf16 %v5103_v17, %v5102_v34  ;;  %v4444_v13 = vadd.f32 %v4443_v43, %v8520_v55  ;;  %v4356_v62 = vpop.f32.mrf.mxu1  ;;  %v4588_v59 = vpop.f32.mrf.mxu0  ;;  %v4932_v34 = vadd.f32 %v4804_v19, %v4676_v14  ;;  %v4505_v17 = vadd.f32 %v8631_v28, %v8686_v40 }
 0x4e1   : > { %v5179_v6 = vpack.c.bf16 %v5053_v50, %v5052_v53  ;;  %v4589_v48 = vadd.f32 %v4588_v59, %v8698_v51  ;;  %v4357_v44 = vadd.f32 %v4356_v62, %v8504_v63 }
 0x4e2   : > { %5268 = vst [vmem:[%s8540_s16 + $0xd0] sm:$0xff] %v5204_v56  ;;  %v4723_v18 = vmax.f32 %v4444_v13, 0.0  ;;  %v5060_v62 = vmax.f32 %v4932_v34, 0.0  ;;  %v4680_v59 = vmax.f32 %v4505_v17, 0.0 }
 0x4e3   : > { %5243 = vst [vmem:[%s8540_s16 + $0x8] sm:$0xff] %v5179_v6  ;;  %v4673_v54 = vmax.f32 %v4589_v48, 0.0  ;;  %v4726_v32 = vmax.f32 %v4357_v44, 0.0  ;;  %v4808_v6 = vunpack.c.l.bf16 %v396_v5 }
 0x4e4   : > { %v4979_v57 = vadd.f32 %v4851_v36, %v4723_v18  ;;  %v4858_v36 = vunpack.c.l.bf16 %v421_v0 }
 0x4e5   : > { %v4929_v38 = vadd.f32 %v4801_v11, %v4673_v54  ;;  %v4982_v3 = vadd.f32 %v4854_v39, %v4726_v32  ;;  %v398_v39 = vld [vmem:[%s7181_s22 + $0x48] sm:$0xff]  ;;  %v8748_v14 = vpop.f32.mrf.mxu3 }
 0x4e6   : > { %v5107_v4 = vmax.f32 %v4979_v57, 0.0 }
 0x4e7   : > { %v5057_v27 = vmax.f32 %v4929_v38, 0.0  ;;  %v4445_v2 = vpop.f32.mrf.mxu2  ;;  %v5110_v43 = vmax.f32 %v4982_v3, 0.0  ;;  %v4936_v38 = vadd.f32 %v4808_v6, %v4680_v59 }
 0x4e8   : > { %v5206_v23 = vpack.c.bf16 %v5107_v4, %v5106_v22  ;;  %v4446_v37 = vadd.f32 %v4445_v2, %v8520_v55  ;;  %v4359_v31 = vpop.f32.mrf.mxu1  ;;  %v4591_v47 = vpop.f32.mrf.mxu0  ;;  %v4508_v22 = vadd.f32 %v8644_v8, %v8686_v40  ;;  %v423_v4 = vld [vmem:[%s7181_s22 + $0x110] sm:$0xff] }
 0x4e9   : > { %v5181_v52 = vpack.c.bf16 %v5057_v27, %v5056_v12  ;;  %v4592_v29 = vadd.f32 %v4591_v47, %v8698_v51  ;;  %v4360_v46 = vadd.f32 %v4359_v31, %v8504_v63  ;;  %v4812_v47 = vunpack.c.l.bf16 %v398_v39 }
 0x4ea   : > { %5270 = vst [vmem:[%s8540_s16 + $0xe0] sm:$0xff] %v5206_v23  ;;  %v4727_v1 = vmax.f32 %v4446_v37, 0.0  ;;  %v4862_v37 = vunpack.c.l.bf16 %v423_v4  ;;  %v4684_v31 = vmax.f32 %v4508_v22, 0.0  ;;  %v4863_v3 = vunpack.c.h.bf16 %v423_v4 }
 0x4eb   : > { %5245 = vst [vmem:[%s8540_s16 + $0x18] sm:$0xff] %v5181_v52  ;;  %v4677_v53 = vmax.f32 %v4592_v29, 0.0  ;;  %4630 = vmatmul.bf16.gmra.mxu0 %v8536_v35  ;;  %v4730_v13 = vmax.f32 %v4360_v46, 0.0  ;;  %v4859_v35 = vunpack.c.h.bf16 %v421_v0  ;;  %v4813_v0 = vunpack.c.h.bf16 %v398_v39 }
 0x4ec   : > { %v4983_v33 = vadd.f32 %v4855_v60, %v4727_v1  ;;  %v5064_v60 = vmax.f32 %v4936_v38, 0.0 }
 0x4ed   : > { %v4933_v50 = vadd.f32 %v4805_v21, %v4677_v53  ;;  %v4986_v54 = vadd.f32 %v4858_v36, %v4730_v13  ;;  %v400_v36 = vld [vmem:[%s7181_s22 + $0x58] sm:$0xff] }
 0x4ee   : > { %v5111_v56 = vmax.f32 %v4983_v33, 0.0  ;;  %v4817_v22 = vunpack.c.h.bf16 %v400_v36 }
 0x4ef   : > { %v5061_v48 = vmax.f32 %v4933_v50, 0.0  ;;  %v4448_v28 = vpop.f32.mrf.mxu2  ;;  %v5114_v27 = vmax.f32 %v4986_v54, 0.0  ;;  %v4940_v50 = vadd.f32 %v4812_v47, %v4684_v31 }
 0x4f0   : > { %v5208_v11 = vpack.c.bf16 %v5111_v56, %v5110_v43  ;;  %v4449_v10 = vadd.f32 %v4448_v28, %v8520_v55  ;;  %v4361_v18 = vpop.f32.mrf.mxu1  ;;  %v4593_v44 = vpop.f32.mrf.mxu0  ;;  %v4510_v43 = vadd.f32 %v8663_v7, %v8686_v40  ;;  %v425_v56 = vld [vmem:[%s7181_s22 + $0x120] sm:$0xff] }
 0x4f1   : > { %v5183_v24 = vpack.c.bf16 %v5061_v48, %v5060_v62  ;;  %v4594_v26 = vadd.f32 %v4593_v44, %v8698_v51  ;;  %v4362_v57 = vadd.f32 %v4361_v18, %v8504_v63  ;;  %v4816_v18 = vunpack.c.l.bf16 %v400_v36  ;;  %v8760_v44 = vpop.f32.mrf.mxu3 }
 0x4f2   : > { %5272 = vst [vmem:[%s8540_s16 + $0xf0] sm:$0xff] %v5208_v11  ;;  %v4731_v41 = vmax.f32 %v4449_v10, 0.0  ;;  %v4866_v11 = vunpack.c.l.bf16 %v425_v56  ;;  %v5068_v10 = vmax.f32 %v4940_v50, 0.0 }
 0x4f3   : > { %5247 = vst [vmem:[%s8540_s16 + $0x28] sm:$0xff] %v5183_v24  ;;  %v4681_v32 = vmax.f32 %v4594_v26, 0.0  ;;  %v4734_v23 = vmax.f32 %v4362_v57, 0.0 }
 0x4f4   : > { %v4987_v12 = vadd.f32 %v4859_v35, %v4731_v41  ;;  %v4688_v35 = vmax.f32 %v4510_v43, 0.0 }
 0x4f5   : > { %v4937_v19 = vadd.f32 %v4809_v49, %v4681_v32  ;;  %v4990_v53 = vadd.f32 %v4862_v37, %v4734_v23  ;;  %v4867_v49 = vunpack.c.h.bf16 %v425_v56  ;;  %v402_v23 = vld [vmem:[%s7181_s22 + $0x68] sm:$0xff] }
 0x4f6   : > { %v5115_v2 = vmax.f32 %v4987_v12, 0.0  ;;  %v4944_v12 = vadd.f32 %v4816_v18, %v4688_v35  ;;  %v4821_v43 = vunpack.c.h.bf16 %v402_v23 }
 0x4f7   : > { %v5065_v52 = vmax.f32 %v4937_v19, 0.0  ;;  %v4450_v29 = vpop.f32.mrf.mxu2  ;;  %v5118_v6 = vmax.f32 %v4990_v53, 0.0  ;;  %v4513_v19 = vadd.f32 %v8681_v25, %v8686_v40 }
 0x4f8   : > { %v5210_v8 = vpack.c.bf16 %v5115_v2, %v5114_v27  ;;  %v4451_v21 = vadd.f32 %v4450_v29, %v8520_v55  ;;  %v4364_v1 = vpop.f32.mrf.mxu1  ;;  %v4596_v46 = vpop.f32.mrf.mxu0  ;;  %v427_v27 = vld [vmem:[%s7181_s22 + $0x130] sm:$0xff] }
 0x4f9   : > { %v5185_v34 = vpack.c.bf16 %v5065_v52, %v5064_v60  ;;  %v4597_v17 = vadd.f32 %v4596_v46, %v8698_v51  ;;  %v4365_v33 = vadd.f32 %v4364_v1, %v8504_v63  ;;  %v4870_v29 = vunpack.c.l.bf16 %v427_v27 }
 0x4fa   : > { %5274 = vst [vmem:[%s8540_s16 + $0x100] sm:$0xff] %v5210_v8  ;;  %v4735_v5 = vmax.f32 %v4451_v21, 0.0  ;;  %v5072_v8 = vmax.f32 %v4944_v12, 0.0  ;;  %v4692_v21 = vmax.f32 %v4513_v19, 0.0 }
 0x4fb   : > { %5249 = vst [vmem:[%s8540_s16 + $0x38] sm:$0xff] %v5185_v34  ;;  %v4685_v13 = vmax.f32 %v4597_v17, 0.0  ;;  %4635 = vmatmul.bf16.gmra.mxu0 %v8567_v20  ;;  %v4738_v28 = vmax.f32 %v4365_v33, 0.0  ;;  %v4871_v17 = vunpack.c.h.bf16 %v427_v27 }
 0x4fc   : > { %v4991_v62 = vadd.f32 %v4863_v3, %v4735_v5  ;;  %v4820_v3 = vunpack.c.l.bf16 %v402_v23  ;;  %v8772_v5 = vpop.f32.mrf.mxu3  ;;  %v4518_v23 = vadd.f32 %v8717_v30, %v8686_v40 }
 0x4fd   : > { %v4941_v59 = vadd.f32 %v4813_v0, %v4685_v13  ;;  %v4994_v4 = vadd.f32 %v4866_v11, %v4738_v28  ;;  %v404_v28 = vld [vmem:[%s7181_s22 + $0x78] sm:$0xff] }
 0x4fe   : > { %v5119_v48 = vmax.f32 %v4991_v62, 0.0  ;;  %v4948_v62 = vadd.f32 %v4820_v3, %v4692_v21 }
 0x4ff   : > { %v5069_v24 = vmax.f32 %v4941_v59, 0.0  ;;  %v4453_v7 = vpop.f32.mrf.mxu2  ;;  %v5122_v31 = vmax.f32 %v4994_v4, 0.0  ;;  %v4515_v59 = vadd.f32 %v8700_v61, %v8686_v40 }
 0x500   : > { %v5212_v26 = vpack.c.bf16 %v5119_v48, %v5118_v6  ;;  %v4454_v20 = vadd.f32 %v4453_v7, %v8520_v55  ;;  %v4366_v54 = vpop.f32.mrf.mxu1  ;;  %v4598_v41 = vpop.f32.mrf.mxu0  ;;  %v429_v6 = vld [vmem:[%s7181_s22 + $0x140] sm:$0xff] }
 0x501   : > { %v5187_v57 = vpack.c.bf16 %v5069_v24, %v5068_v10  ;;  %v4599_v38 = vadd.f32 %v4598_v41, %v8698_v51  ;;  %v4367_v39 = vadd.f32 %v4366_v54, %v8504_v63  ;;  %v4874_v7 = vunpack.c.l.bf16 %v429_v6 }
 0x502   : > { %5276 = vst [vmem:[%s8540_s16 + $0x110] sm:$0xff] %v5212_v26  ;;  %v4739_v32 = vmax.f32 %v4454_v20, 0.0  ;;  %v5076_v26 = vmax.f32 %v4948_v62, 0.0  ;;  %v4696_v20 = vmax.f32 %v4515_v59, 0.0 }
 0x503   : > { %5251 = vst [vmem:[%s8540_s16 + $0x48] sm:$0xff] %v5187_v57  ;;  %v4689_v2 = vmax.f32 %v4599_v38, 0.0  ;;  %v4742_v52 = vmax.f32 %v4367_v39, 0.0  ;;  %v4875_v38 = vunpack.c.h.bf16 %v429_v6  ;;  %v4825_v39 = vunpack.c.h.bf16 %v404_v28 }
 0x504   : > { %v4995_v37 = vadd.f32 %v4867_v49, %v4739_v32  ;;  %v4824_v49 = vunpack.c.l.bf16 %v404_v28  ;;  %v4520_v28 = vadd.f32 %v8733_v16, %v8686_v40 }
 0x505   : > { %v4945_v60 = vadd.f32 %v4817_v22, %v4689_v2  ;;  %v4998_v56 = vadd.f32 %v4870_v29, %v4742_v52 }
 0x506   : > { %v5123_v47 = vmax.f32 %v4995_v37, 0.0  ;;  %v4952_v2 = vadd.f32 %v4824_v49, %v4696_v20  ;;  %v8789_v37 = vpop.f32.mrf.mxu3 }
 0x507   : > { %v5073_v1 = vmax.f32 %v4945_v60, 0.0  ;;  %v4455_v46 = vpop.f32.mrf.mxu2  ;;  %v5126_v35 = vmax.f32 %v4998_v56, 0.0  ;;  %v431_v60 = vld [vmem:[%s7181_s22 + $0x150] sm:$0xff] }
 0x508   : > { %v5214_v34 = vpack.c.bf16 %v5123_v47, %v5122_v31  ;;  %v4456_v25 = vadd.f32 %v4455_v46, %v8520_v55  ;;  %v4369_v0 = vpop.f32.mrf.mxu1  ;;  %v4601_v53 = vpop.f32.mrf.mxu0  ;;  %v406_v47 = vld [vmem:[%s7181_s22 + $0x88] sm:$0xff]  ;;  %v5080_v46 = vmax.f32 %v4952_v2, 0.0 }
 0x509   : > { %v5189_v33 = vpack.c.bf16 %v5073_v1, %v5072_v8  ;;  %v4602_v50 = vadd.f32 %v4601_v53, %v8698_v51  ;;  %v4370_v36 = vadd.f32 %v4369_v0, %v8504_v63  ;;  %v4878_v1 = vunpack.c.l.bf16 %v431_v60 }
 0x50a   : > { %5278 = vst [vmem:[%s8540_s16 + $0x120] sm:$0xff] %v5214_v34  ;;  %v4743_v13 = vmax.f32 %v4456_v25, 0.0  ;;  %v4700_v34 = vmax.f32 %v4518_v23, 0.0  ;;  %v4828_v25 = vunpack.c.l.bf16 %v406_v47 }
 0x50b   : > { %5253 = vst [vmem:[%s8540_s16 + $0x58] sm:$0xff] %v5189_v33  ;;  %v4693_v48 = vmax.f32 %v4602_v50, 0.0  ;;  %4640 = vmatmul.bf16.gmra.mxu0 %v8592_v15  ;;  %v4746_v24 = vmax.f32 %v4370_v36, 0.0  ;;  %v4879_v33 = vunpack.c.h.bf16 %v431_v60  ;;  %v4829_v36 = vunpack.c.h.bf16 %v406_v47  ;;  %v435_v47 = vld [vmem:[%s7181_s22 + $0x170] sm:$0xff] }
 0x50c   : > { %v4999_v11 = vadd.f32 %v4871_v17, %v4743_v13 }
 0x50d   : > { %v4949_v10 = vadd.f32 %v4821_v43, %v4693_v48  ;;  %v5002_v12 = vadd.f32 %v4874_v7, %v4746_v24  ;;  %v4956_v48 = vadd.f32 %v4828_v25, %v4700_v34  ;;  %v4886_v34 = vunpack.c.l.bf16 %v435_v47 }
 0x50e   : > { %v5127_v18 = vmax.f32 %v4999_v11, 0.0  ;;  %v433_v11 = vld [vmem:[%s7181_s22 + $0x160] sm:$0xff]  ;;  %v8804_v24 = vpop.f32.mrf.mxu3 }
 0x50f   : > { %v5077_v54 = vmax.f32 %v4949_v10, 0.0  ;;  %v4458_v41 = vpop.f32.mrf.mxu2  ;;  %v5130_v8 = vmax.f32 %v5002_v12, 0.0 }
 0x510   : > { %v5216_v61 = vpack.c.bf16 %v5127_v18, %v5126_v35  ;;  %v4459_v57 = vadd.f32 %v4458_v41, %v8520_v55  ;;  %v4371_v15 = vpop.f32.mrf.mxu1  ;;  %v4603_v22 = vpop.f32.mrf.mxu0  ;;  %v408_v35 = vld [vmem:[%s7181_s22 + $0x98] sm:$0xff]  ;;  %v5084_v41 = vmax.f32 %v4956_v48, 0.0 }
 0x511   : > { %v5191_v4 = vpack.c.bf16 %v5077_v54, %v5076_v26  ;;  %v4604_v32 = vadd.f32 %v4603_v22, %v8698_v51  ;;  %v4372_v27 = vadd.f32 %v4371_v15, %v8504_v63  ;;  %v4882_v54 = vunpack.c.l.bf16 %v433_v11 }
 0x512   : > { %5280 = vst [vmem:[%s8540_s16 + $0x130] sm:$0xff] %v5216_v61  ;;  %v4747_v19 = vmax.f32 %v4459_v57, 0.0  ;;  %v4704_v61 = vmax.f32 %v4520_v28, 0.0  ;;  %v4832_v57 = vunpack.c.l.bf16 %v408_v35  ;;  %v4883_v22 = vunpack.c.h.bf16 %v433_v11 }
 0x513   : > { %5255 = vst [vmem:[%s8540_s16 + $0x68] sm:$0xff] %v5191_v4  ;;  %v4697_v31 = vmax.f32 %v4604_v32, 0.0  ;;  %v4750_v3 = vmax.f32 %v4372_v27, 0.0 }
 0x514   : > { %v5003_v52 = vadd.f32 %v4875_v38, %v4747_v19  ;;  %v4833_v19 = vunpack.c.h.bf16 %v408_v35  ;;  %v4960_v60 = vadd.f32 %v4832_v57, %v4704_v61  ;;  %v437_v35 = vld [vmem:[%s7181_s22 + $0x180] sm:$0xff] }
 0x515   : > { %v4953_v29 = vadd.f32 %v4825_v39, %v4697_v31  ;;  %v5006_v62 = vadd.f32 %v4878_v1, %v4750_v3  ;;  %v4523_v31 = vadd.f32 %v8748_v14, %v8686_v40  ;;  %v4890_v61 = vunpack.c.l.bf16 %v437_v35 }
 0x516   : > { %v5131_v21 = vmax.f32 %v5003_v52, 0.0  ;;  %v5088_v25 = vmax.f32 %v4960_v60, 0.0 }
 0x517   : > { %v5081_v17 = vmax.f32 %v4953_v29, 0.0  ;;  %v4460_v0 = vpop.f32.mrf.mxu2  ;;  %v5134_v26 = vmax.f32 %v5006_v62, 0.0  ;;  %v410_v29 = vld [vmem:[%s7181_s22 + $0xa8] sm:$0xff] }
 0x518   : > { %v5218_v30 = vpack.c.bf16 %v5131_v21, %v5130_v8  ;;  %v4461_v53 = vadd.f32 %v4460_v0, %v8520_v55  ;;  %v4374_v50 = vpop.f32.mrf.mxu1  ;;  %v4606_v43 = vpop.f32.mrf.mxu0  ;;  %v4836_v0 = vunpack.c.l.bf16 %v410_v29 }
 0x519   : > { %v5193_v56 = vpack.c.bf16 %v5081_v17, %v5080_v46  ;;  %v4607_v13 = vadd.f32 %v4606_v43, %v8698_v51  ;;  %v4375_v6 = vadd.f32 %v4374_v50, %v8504_v63  ;;  %v4708_v17 = vmax.f32 %v4523_v31, 0.0 }
 0x51a   : > { %5282 = vst [vmem:[%s8540_s16 + $0x140] sm:$0xff] %v5218_v30  ;;  %v4751_v59 = vmax.f32 %v4461_v53, 0.0  ;;  %v8815_v30 = vpop.f32.mrf.mxu3  ;;  %v4887_v43 = vunpack.c.h.bf16 %v435_v47  ;;  %v4528_v47 = vadd.f32 %v8772_v5, %v8686_v40 }
 0x51b   : > { %5257 = vst [vmem:[%s8540_s16 + $0x78] sm:$0xff] %v5193_v56  ;;  %v4701_v10 = vmax.f32 %v4607_v13, 0.0  ;;  %4645 = vmatmul.bf16.gmra.mxu0 %v8619_v9  ;;  %v4754_v49 = vmax.f32 %v4375_v6, 0.0  ;;  %v4964_v11 = vadd.f32 %v4836_v0, %v4708_v17 }
 0x51c   : > { %v5007_v18 = vadd.f32 %v4879_v33, %v4751_v59  ;;  %v4837_v59 = vunpack.c.h.bf16 %v410_v29  ;;  %v4716_v0 = vmax.f32 %v4528_v47, 0.0  ;;  %v443_v47 = vld [vmem:[%s7181_s22 + $0x1b0] sm:$0xff] }
 0x51d   : > { %v4957_v7 = vadd.f32 %v4829_v36, %v4701_v10  ;;  %v5010_v27 = vadd.f32 %v4882_v54, %v4754_v49  ;;  %v4525_v10 = vadd.f32 %v8760_v44, %v8686_v40  ;;  %v5092_v57 = vmax.f32 %v4964_v11, 0.0 }
 0x51e   : > { %v5135_v20 = vmax.f32 %v5007_v18, 0.0 }
 0x51f   : > { %v5085_v38 = vmax.f32 %v4957_v7, 0.0  ;;  %v4463_v16 = vpop.f32.mrf.mxu2  ;;  %v5138_v3 = vmax.f32 %v5010_v27, 0.0  ;;  %v412_v7 = vld [vmem:[%s7181_s22 + $0xb8] sm:$0xff] }
 0x520   : > { %v5220_v15 = vpack.c.bf16 %v5135_v20, %v5134_v26  ;;  %v4464_v9 = vadd.f32 %v4463_v16, %v8520_v55  ;;  %v4376_v4 = vpop.f32.mrf.mxu1  ;;  %v4608_v32 = vpop.f32.mrf.mxu0  ;;  %v4840_v16 = vunpack.c.l.bf16 %v412_v7  ;;  %v4841_v27 = vunpack.c.h.bf16 %v412_v7 }
 0x521   : > { %v5195_v39 = vpack.c.bf16 %v5085_v38, %v5084_v41  ;;  %v4609_v12 = vadd.f32 %v4608_v32, %v8698_v51  ;;  %v4377_v23 = vadd.f32 %v4376_v4, %v8504_v63  ;;  %v4712_v38 = vmax.f32 %v4525_v10, 0.0 }
 0x522   : > { %5284 = vst [vmem:[%s8540_s16 + $0x150] sm:$0xff] %v5220_v15  ;;  %v4755_v2 = vmax.f32 %v4464_v9, 0.0  ;;  %v4891_v4 = vunpack.c.h.bf16 %v437_v35  ;;  %v4530_v10 = vadd.f32 %v8789_v37, %v8686_v40 }
 0x523   : > { %5259 = vst [vmem:[%s8540_s16 + $0x88] sm:$0xff] %v5195_v39  ;;  %v4705_v52 = vmax.f32 %v4609_v12, 0.0  ;;  %v4758_v46 = vmax.f32 %v4377_v23, 0.0  ;;  %v8828_v39 = vpop.f32.mrf.mxu3  ;;  %v4968_v31 = vadd.f32 %v4840_v16, %v4712_v38 }
 0x524   : > { %v5011_v8 = vadd.f32 %v4883_v22, %v4755_v2  ;;  %v4720_v16 = vmax.f32 %v4530_v10, 0.0  ;;  %v445_v10 = vld [vmem:[%s7181_s22 + $0x1c0] sm:$0xff] }
 0x525   : > { %v4961_v21 = vadd.f32 %v4833_v19, %v4705_v52  ;;  %v5014_v6 = vadd.f32 %v4886_v34, %v4758_v46  ;;  %v439_v52 = vld [vmem:[%s7181_s22 + $0x190] sm:$0xff]  ;;  %v5096_v17 = vmax.f32 %v4968_v31, 0.0  ;;  %v4533_v31 = vadd.f32 %v8804_v24, %v8686_v40 }
 0x526   : > { %v5139_v1 = vmax.f32 %v5011_v8, 0.0  ;;  %v414_v8 = vld [vmem:[%s7181_s22 + $0xc8] sm:$0xff] }
 0x527   : > { %v5089_v53 = vmax.f32 %v4961_v21, 0.0  ;;  %v4465_v33 = vpop.f32.mrf.mxu2  ;;  %v5142_v49 = vmax.f32 %v5014_v6, 0.0 }
 0x528   : > { %v5222_v14 = vpack.c.bf16 %v5139_v1, %v5138_v3  ;;  %v4466_v50 = vadd.f32 %v4465_v33, %v8520_v55  ;;  %v4379_v56 = vpop.f32.mrf.mxu1  ;;  %v4611_v13 = vpop.f32.mrf.mxu0 }
 0x529   : > { %v5197_v36 = vpack.c.bf16 %v5089_v53, %v5088_v25  ;;  %v4612_v62 = vadd.f32 %v4611_v13, %v8698_v51  ;;  %v4380_v28 = vadd.f32 %v4379_v56, %v8504_v63  ;;  %v4894_v25 = vunpack.c.l.bf16 %v439_v52 }
 0x52a   : > { %5286 = vst [vmem:[%s8540_s16 + $0x160] sm:$0xff] %v5222_v14  ;;  %v4759_v48 = vmax.f32 %v4466_v50, 0.0  ;;  %v4844_v53 = vunpack.c.l.bf16 %v414_v8 }
 0x52b   : > { %5261 = vst [vmem:[%s8540_s16 + $0x98] sm:$0xff] %v5197_v36  ;;  %v4709_v18 = vmax.f32 %v4612_v62, 0.0  ;;  %4650 = vmatmul.bf16.gmra.mxu0 %v8646_v45  ;;  %v4762_v41 = vmax.f32 %v4380_v28, 0.0  ;;  %v8844_v35 = vpop.f32.mrf.mxu3 }
 0x52c   : > { %v5015_v26 = vadd.f32 %v4887_v43, %v4759_v48  ;;  %v4895_v43 = vunpack.c.h.bf16 %v439_v52  ;;  %v4972_v11 = vadd.f32 %v4844_v53, %v4716_v0  ;;  %v4724_v0 = vmax.f32 %v4533_v31, 0.0 }
 0x52d   : > { %v4965_v20 = vadd.f32 %v4837_v59, %v4709_v18  ;;  %v5018_v2 = vadd.f32 %v4890_v61, %v4762_v41  ;;  %v4845_v59 = vunpack.c.h.bf16 %v414_v8  ;;  %v441_v18 = vld [vmem:[%s7181_s22 + $0x1a0] sm:$0xff] }
 0x52e   : > { %v5143_v54 = vmax.f32 %v5015_v26, 0.0  ;;  %v416_v26 = vld [vmem:[%s7181_s22 + $0xd8] sm:$0xff]  ;;  %v5100_v38 = vmax.f32 %v4972_v11, 0.0  ;;  %v4535_v11 = vadd.f32 %v8815_v30, %v8686_v40 }
 0x52f   : > { %v5093_v15 = vmax.f32 %v4965_v20, 0.0  ;;  %v4468_v9 = vpop.f32.mrf.mxu2  ;;  %v5146_v1 = vmax.f32 %v5018_v2, 0.0 }
 0x530   : > { %v5224_v44 = vpack.c.bf16 %v5143_v54, %v5142_v49  ;;  %v4469_v22 = vadd.f32 %v4468_v9, %v8520_v55  ;;  %v4381_v45 = vpop.f32.mrf.mxu1  ;;  %v4613_v32 = vpop.f32.mrf.mxu0 }
 0x531   : > { %v5199_v12 = vpack.c.bf16 %v5093_v15, %v5092_v57  ;;  %v4614_v19 = vadd.f32 %v4613_v32, %v8698_v51  ;;  %v4382_v60 = vadd.f32 %v4381_v45, %v8504_v63  ;;  %v4898_v57 = vunpack.c.l.bf16 %v441_v18 }
 0x532   : > { %5288 = vst [vmem:[%s8540_s16 + $0x170] sm:$0xff] %v5224_v44  ;;  %v4763_v23 = vmax.f32 %v4469_v22, 0.0  ;;  %v4848_v15 = vunpack.c.l.bf16 %v416_v26 }
 0x533   : > { %5263 = vst [vmem:[%s8540_s16 + $0xa8] sm:$0xff] %v5199_v12  ;;  %v4713_v29 = vmax.f32 %v4614_v19, 0.0  ;;  %v4766_v34 = vmax.f32 %v4382_v60, 0.0  ;;  %v4849_v19 = vunpack.c.h.bf16 %v416_v26 }
 0x534   : > { %v5019_v21 = vadd.f32 %v4891_v4, %v4763_v23  ;;  %v4976_v60 = vadd.f32 %v4848_v15, %v4720_v16 }
 0x535   : > { %v4969_v3 = vadd.f32 %v4841_v27, %v4713_v29  ;;  %v5022_v6 = vadd.f32 %v4894_v25, %v4766_v34  ;;  %v418_v29 = vld [vmem:[%s7181_s22 + $0xe8] sm:$0xff]  ;;  %v4902_v25 = vunpack.c.l.bf16 %v443_v47 }
 0x536   : > { %v5147_v46 = vmax.f32 %v5019_v21, 0.0  ;;  %v8859_v21 = vpop.f32.mrf.mxu3  ;;  %v4852_v53 = vunpack.c.l.bf16 %v418_v29 }
 0x537   : > { %v5097_v33 = vmax.f32 %v4969_v3, 0.0  ;;  %v4470_v14 = vpop.f32.mrf.mxu2  ;;  %v5150_v54 = vmax.f32 %v5022_v6, 0.0 }
 0x538   : > { %v5226_v50 = vpack.c.bf16 %v5147_v46, %v5146_v1  ;;  %v4471_v5 = vadd.f32 %v4470_v14, %v8520_v55  ;;  %v4384_v56 = vpop.f32.mrf.mxu1  ;;  %v4616_v13 = vpop.f32.mrf.mxu0 }
 0x539   : > { %v5201_v36 = vpack.c.bf16 %v5097_v33, %v5096_v17  ;;  %v4617_v62 = vadd.f32 %v4616_v13, %v8698_v51  ;;  %v4385_v28 = vadd.f32 %v4384_v56, %v8504_v63  ;;  %v5104_v17 = vmax.f32 %v4976_v60, 0.0  ;;  %v447_v60 = vld [vmem:[%s7181_s22 + $0x1d0] sm:$0xff] }
 0x53a   : > { %5290 = vst [vmem:[%s8540_s16 + $0x180] sm:$0xff] %v5226_v50  ;;  %v4767_v48 = vmax.f32 %v4471_v5, 0.0  ;;  %v4903_v5 = vunpack.c.h.bf16 %v443_v47  ;;  %v422_v47 = vld [vmem:[%s7181_s22 + $0x108] sm:$0xff] }
 0x53b   : > { %5265 = vst [vmem:[%s8540_s16 + $0xb8] sm:$0xff] %v5201_v36  ;;  %v4717_v7 = vmax.f32 %v4617_v62, 0.0  ;;  %4655 = vmatmul.bf16.gmra.mxu0 %v8671_v42  ;;  %v4770_v61 = vmax.f32 %v4385_v28, 0.0  ;;  %v4899_v42 = vunpack.c.h.bf16 %v441_v18  ;;  %v4853_v62 = vunpack.c.h.bf16 %v418_v29 }
 0x53c   : > { %v5023_v20 = vadd.f32 %v4895_v43, %v4767_v48  ;;  %v4980_v28 = vadd.f32 %v4852_v53, %v4724_v0 }
 0x53d   : > { %v4973_v49 = vadd.f32 %v4845_v59, %v4717_v7  ;;  %v5026_v27 = vadd.f32 %v4898_v57, %v4770_v61  ;;  %v420_v7 = vld [vmem:[%s7181_s22 + $0xf8] sm:$0xff]  ;;  %v4906_v61 = vunpack.c.l.bf16 %v445_v10 }
 0x53e   : > { %v5151_v41 = vmax.f32 %v5023_v20, 0.0  ;;  %v5108_v57 = vmax.f32 %v4980_v28, 0.0  ;;  %v4856_v16 = vunpack.c.l.bf16 %v420_v7  ;;  %v8871_v15 = vpop.f32.mrf.mxu3  ;;  %v449_v28 = vld [vmem:[%s7181_s22 + $0x1e0] sm:$0xff] }
 0x53f   : > { %v5101_v9 = vmax.f32 %v4973_v49, 0.0  ;;  %v4473_v37 = vpop.f32.mrf.mxu2  ;;  %v5154_v1 = vmax.f32 %v5026_v27, 0.0 }
 0x540   : > { %v5228_v44 = vpack.c.bf16 %v5151_v41, %v5150_v54  ;;  %v4474_v22 = vadd.f32 %v4473_v37, %v8520_v55  ;;  %v4386_v4 = vpop.f32.mrf.mxu1  ;;  %v4618_v45 = vpop.f32.mrf.mxu0 }
 0x541   : > { %v5203_v32 = vpack.c.bf16 %v5101_v9, %v5100_v38  ;;  %v4619_v12 = vadd.f32 %v4618_v45, %v8698_v51  ;;  %v4387_v23 = vadd.f32 %v4386_v4, %v8504_v63  ;;  %v4728_v38 = vmax.f32 %v4535_v11, 0.0 }
 0x542   : > { %5292 = vst [vmem:[%s8540_s16 + $0x190] sm:$0xff] %v5228_v44  ;;  %v4771_v2 = vmax.f32 %v4474_v22, 0.0  ;;  %v4907_v44 = vunpack.c.h.bf16 %v445_v10  ;;  %v424_v10 = vld [vmem:[%s7181_s22 + $0x118] sm:$0xff] }
 0x543   : > { %5267 = vst [vmem:[%s8540_s16 + $0xc8] sm:$0xff] %v5203_v32  ;;  %v4721_v52 = vmax.f32 %v4619_v12, 0.0  ;;  %v4774_v34 = vmax.f32 %v4387_v23, 0.0  ;;  %v4857_v32 = vunpack.c.h.bf16 %v420_v7  ;;  %v4538_v23 = vadd.f32 %v8828_v39, %v8686_v40 }
 0x544   : > { %v5027_v8 = vadd.f32 %v4899_v42, %v4771_v2  ;;  %v4984_v2 = vadd.f32 %v4856_v16, %v4728_v38 }
 0x545   : > { %v4977_v3 = vadd.f32 %v4849_v19, %v4721_v52  ;;  %v5030_v59 = vadd.f32 %v4902_v25, %v4774_v34  ;;  %v4732_v25 = vmax.f32 %v4538_v23, 0.0  ;;  %v426_v23 = vld [vmem:[%s7181_s22 + $0x128] sm:$0xff] }
 0x546   : > { %v5155_v46 = vmax.f32 %v5027_v8, 0.0  ;;  %v5112_v34 = vmax.f32 %v4984_v2, 0.0 }
 0x547   : > { %v5105_v33 = vmax.f32 %v4977_v3, 0.0  ;;  %v4475_v14 = vpop.f32.mrf.mxu2  ;;  %v5158_v49 = vmax.f32 %v5030_v59, 0.0 }
 0x548   : > { %v5230_v24 = vpack.c.bf16 %v5155_v46, %v5154_v1  ;;  %v4476_v50 = vadd.f32 %v4475_v14, %v8520_v55  ;;  %v4389_v43 = vpop.f32.mrf.mxu1  ;;  %v4621_v56 = vpop.f32.mrf.mxu0  ;;  %v4910_v46 = vunpack.c.l.bf16 %v447_v60  ;;  %v4911_v14 = vunpack.c.h.bf16 %v447_v60 }
 0x549   : > { %v5205_v13 = vpack.c.bf16 %v5105_v33, %v5104_v17  ;;  %v4622_v36 = vadd.f32 %v4621_v56, %v8698_v51  ;;  %v4390_v48 = vadd.f32 %v4389_v43, %v8504_v63  ;;  %v4860_v17 = vunpack.c.l.bf16 %v422_v47 }
 0x54a   : > { %5294 = vst [vmem:[%s8540_s16 + $0x1a0] sm:$0xff] %v5230_v24  ;;  %v4775_v6 = vmax.f32 %v4476_v50, 0.0  ;;  %v4861_v56 = vunpack.c.h.bf16 %v422_v47 }
 0x54b   : > { %5269 = vst [vmem:[%s8540_s16 + $0xd8] sm:$0xff] %v5205_v13  ;;  %v4725_v18 = vmax.f32 %v4622_v36, 0.0  ;;  %4660 = vmatmul.bf16.gmra.mxu0 %v8704_v58  ;;  %v4778_v41 = vmax.f32 %v4390_v48, 0.0  ;;  %v8884_v13 = vpop.f32.mrf.mxu3  ;;  %v4540_v48 = vadd.f32 %v8844_v35, %v8686_v40 }
 0x54c   : > { %v5031_v26 = vadd.f32 %v4903_v5, %v4775_v6  ;;  %v4988_v6 = vadd.f32 %v4860_v17, %v4732_v25 }
 0x54d   : > { %v4981_v20 = vadd.f32 %v4853_v62, %v4725_v18  ;;  %v5034_v12 = vadd.f32 %v4906_v61, %v4778_v41  ;;  %v4736_v61 = vmax.f32 %v4540_v48, 0.0 }
 0x54e   : > { %v5159_v54 = vmax.f32 %v5031_v26, 0.0  ;;  %v5116_v41 = vmax.f32 %v4988_v6, 0.0 }
 0x54f   : > { %v5109_v9 = vmax.f32 %v4981_v20, 0.0  ;;  %v4478_v30 = vpop.f32.mrf.mxu2  ;;  %v5162_v8 = vmax.f32 %v5034_v12, 0.0 }
 0x550   : > { %v5232_v37 = vpack.c.bf16 %v5159_v54, %v5158_v49  ;;  %v4479_v58 = vadd.f32 %v4478_v30, %v8520_v55  ;;  %v4391_v22 = vpop.f32.mrf.mxu1  ;;  %v4623_v42 = vpop.f32.mrf.mxu0  ;;  %v4914_v54 = vunpack.c.l.bf16 %v449_v28  ;;  %v4915_v30 = vunpack.c.h.bf16 %v449_v28 }
 0x551   : > { %v5207_v4 = vpack.c.bf16 %v5109_v9, %v5108_v57  ;;  %v4624_v45 = vadd.f32 %v4623_v42, %v8698_v51  ;;  %v4392_v27 = vadd.f32 %v4391_v22, %v8504_v63  ;;  %v4864_v57 = vunpack.c.l.bf16 %v424_v10 }
 0x552   : > { %5296 = vst [vmem:[%s8540_s16 + $0x1b0] sm:$0xff] %v5232_v37  ;;  %v4779_v19 = vmax.f32 %v4479_v58, 0.0  ;;  %v4865_v42 = vunpack.c.h.bf16 %v424_v10 }
 0x553   : > { %5271 = vst [vmem:[%s8540_s16 + $0xe8] sm:$0xff] %v5207_v4  ;;  %v4729_v31 = vmax.f32 %v4624_v45, 0.0  ;;  %v4782_v1 = vmax.f32 %v4392_v27, 0.0  ;;  %v4992_v12 = vadd.f32 %v4864_v57, %v4736_v61  ;;  %v451_v27 = vld [vmem:[%s7181_s22 + $0x1f0] sm:$0xff]  ;;  %v4549_v60 = vpop.f32.mrf.mxu3  ;;  %v430_v57 = vld [vmem:[%s7181_s22 + $0x148] sm:$0xff] }
 0x554   : > { %v5035_v52 = vadd.f32 %v4907_v44, %v4779_v19  ;;  %v4543_v19 = vadd.f32 %v8859_v21, %v8686_v40 }
 0x555   : > { %v4985_v29 = vadd.f32 %v4857_v32, %v4729_v31  ;;  %v5038_v36 = vadd.f32 %v4910_v46, %v4782_v1  ;;  %v5120_v1 = vmax.f32 %v4992_v12, 0.0 }
 0x556   : > { %v5163_v3 = vmax.f32 %v5035_v52, 0.0  ;;  %v4740_v46 = vmax.f32 %v4543_v19, 0.0 }
 0x557   : > { %v5113_v0 = vmax.f32 %v4985_v29, 0.0  ;;  %v4480_v53 = vpop.f32.mrf.mxu2  ;;  %v5166_v26 = vmax.f32 %v5038_v36, 0.0  ;;  %v428_v36 = vld [vmem:[%s7181_s22 + $0x138] sm:$0xff] }
 0x558   : > { %v5234_v33 = vpack.c.bf16 %v5163_v3, %v5162_v8  ;;  %v4481_v39 = vadd.f32 %v4480_v53, %v8520_v55  ;;  %v4394_v24 = vpop.f32.mrf.mxu1  ;;  %v4626_v50 = vpop.f32.mrf.mxu0  ;;  %v4918_v3 = vunpack.c.l.bf16 %v451_v27  ;;  %v4872_v10 = vunpack.c.l.bf16 %v428_v36 }
 0x559   : > { %v5209_v5 = vpack.c.bf16 %v5113_v0, %v5112_v34  ;;  %v4627_v43 = vadd.f32 %v4626_v50, %v8698_v51  ;;  %v4395_v59 = vadd.f32 %v4394_v24, %v8504_v63  ;;  %v4919_v0 = vunpack.c.h.bf16 %v451_v27 }
 0x55a   : > { %5298 = vst [vmem:[%s8540_s16 + $0x1c0] sm:$0xff] %v5234_v33  ;;  %v4783_v62 = vmax.f32 %v4481_v39, 0.0 }
 0x55b   : > { %5273 = vst [vmem:[%s8540_s16 + $0xf8] sm:$0xff] %v5209_v5  ;;  %v4733_v11 = vmax.f32 %v4627_v43, 0.0  ;;  %v4786_v49 = vmax.f32 %v4395_v59, 0.0  ;;  %v4545_v43 = vadd.f32 %v8871_v15, %v8686_v40 }
 0x55c   : > { %v5039_v18 = vadd.f32 %v4911_v14, %v4783_v62  ;;  %v4869_v14 = vunpack.c.h.bf16 %v426_v23 }
 0x55d   : > { %v4989_v7 = vadd.f32 %v4861_v56, %v4733_v11  ;;  %v5042_v4 = vadd.f32 %v4914_v54, %v4786_v49  ;;  %v4744_v11 = vmax.f32 %v4545_v43, 0.0  ;;  %v4873_v49 = vunpack.c.h.bf16 %v428_v36 }
 0x55e   : > { %v5167_v20 = vmax.f32 %v5039_v18, 0.0 }
 0x55f   : > { %v5117_v38 = vmax.f32 %v4989_v7, 0.0  ;;  %v4483_v16 = vpop.f32.mrf.mxu2  ;;  %v5170_v52 = vmax.f32 %v5042_v4, 0.0  ;;  %v5000_v54 = vadd.f32 %v4872_v10, %v4744_v11 }
 0x560   : > { %v5236_v9 = vpack.c.bf16 %v5167_v20, %v5166_v26  ;;  %v4484_v35 = vadd.f32 %v4483_v16, %v8520_v55  ;;  %v4396_v37 = vpop.f32.mrf.mxu1  ;;  %v4628_v58 = vpop.f32.mrf.mxu0 }
 0x561   : > { %v5211_v44 = vpack.c.bf16 %v5117_v38, %v5116_v41  ;;  %v4629_v22 = vadd.f32 %v4628_v58, %v8698_v51  ;;  %v4397_v32 = vadd.f32 %v4396_v37, %v8504_v63  ;;  %v4868_v63 = vunpack.c.l.bf16 %v426_v23 }
 0x562   : > { %5300 = vst [vmem:[%s8540_s16 + $0x1d0] sm:$0xff] %v5236_v9  ;;  %v4787_v45 = vmax.f32 %v4484_v35, 0.0  ;;  %v4548_v41 = vadd.f32 %v8884_v13, %v8686_v40  ;;  %v5128_v16 = vmax.f32 %v5000_v54, 0.0  ;;  %v4876_v35 = vunpack.c.l.bf16 %v430_v57 }
 0x563   : > { %5275 = vst [vmem:[%s8540_s16 + $0x108] sm:$0xff] %v5211_v44  ;;  %v4737_v2 = vmax.f32 %v4629_v22, 0.0  ;;  %v4790_v8 = vmax.f32 %v4397_v32, 0.0  ;;  %v4996_v5 = vadd.f32 %v4868_v63, %v4740_v46  ;;  %v432_v32 = vld [vmem:[%s7181_s22 + $0x158] sm:$0xff]  ;;  %v434_v46 = vld [vmem:[%s7181_s22 + $0x168] sm:$0xff] }
 0x564   : > { %v5043_v31 = vadd.f32 %v4915_v30, %v4787_v45  ;;  %v4748_v9 = vmax.f32 %v4548_v41, 0.0  ;;  %v4550_v45 = vadd.f32 %v4549_v60, %v8686_v40 }
 0x565   : > { %v4993_v47 = vadd.f32 %v4865_v42, %v4737_v2  ;;  %v5046_v24 = vadd.f32 %v4918_v3, %v4790_v8  ;;  %v5124_v28 = vmax.f32 %v4996_v5, 0.0  ;;  %v4877_v42 = vunpack.c.h.bf16 %v430_v57  ;;  %v436_v5 = vld [vmem:[%s7181_s22 + $0x178] sm:$0xff] }
 0x566   : > { %v5171_v29 = vmax.f32 %v5043_v31, 0.0  ;;  %v5004_v4 = vadd.f32 %v4876_v35, %v4748_v9  ;;  %v4752_v27 = vmax.f32 %v4550_v45, 0.0  ;;  %v4880_v2 = vunpack.c.l.bf16 %v432_v32 }
 0x567   : > { %v5121_v34 = vmax.f32 %v4993_v47, 0.0  ;;  %v4485_v25 = vpop.f32.mrf.mxu2  ;;  %v5174_v6 = vmax.f32 %v5046_v24, 0.0  ;;  %v4889_v11 = vunpack.c.h.bf16 %v436_v5 }
 0x568   : > { %v5238_v21 = vpack.c.bf16 %v5171_v29, %v5170_v52  ;;  %v4486_v17 = vadd.f32 %v4485_v25, %v8520_v55  ;;  %v4631_v53 = vpop.f32.mrf.mxu0  ;;  %v4552_v55 = vpop.f32.mrf.mxu3  ;;  %v5132_v19 = vmax.f32 %v5004_v4, 0.0  ;;  %v4881_v29 = vunpack.c.h.bf16 %v432_v32 }
 0x569   : > { %v5213_v33 = vpack.c.bf16 %v5121_v34, %v5120_v1  ;;  %v4632_v39 = vadd.f32 %v4631_v53, %v8698_v51  ;;  %v5008_v3 = vadd.f32 %v4880_v2, %v4752_v27  ;;  %v4553_v60 = vadd.f32 %v4552_v55, %v8686_v40 }
 0x56a   : > { %5302 = vst [vmem:[%s8540_s16 + $0x1e0] sm:$0xff] %v5238_v21  ;;  %v4791_v50 = vmax.f32 %v4486_v17, 0.0  ;;  %v4884_v21 = vunpack.c.l.bf16 %v434_v46 }
 0x56b   : > { %5277 = vst [vmem:[%s8540_s16 + $0x118] sm:$0xff] %v5213_v33  ;;  %v4741_v56 = vmax.f32 %v4632_v39, 0.0  ;;  %v5136_v34 = vmax.f32 %v5008_v3, 0.0  ;;  %v4756_v25 = vmax.f32 %v4553_v60, 0.0  ;;  %v4885_v39 = vunpack.c.h.bf16 %v434_v46 }
 0x56c   : > { %v5047_v62 = vadd.f32 %v4919_v0, %v4791_v50 }
 0x56d   : > { %v4997_v59 = vadd.f32 %v4869_v14, %v4741_v56  ;;  %v5012_v14 = vadd.f32 %v4884_v21, %v4756_v25 }
 0x56e   : > { %v5175_v48 = vmax.f32 %v5047_v62, 0.0 }
 0x56f   : > { %v5125_v18 = vmax.f32 %v4997_v59, 0.0  ;;  %v5140_v36 = vmax.f32 %v5012_v14, 0.0  ;;  %v4888_v59 = vunpack.c.l.bf16 %v436_v5 }
 0x570   : > { %v5240_v7 = vpack.c.bf16 %v5175_v48, %v5174_v6  ;;  %v4633_v26 = vpop.f32.mrf.mxu0  ;;  %v4554_v37 = vpop.f32.mrf.mxu3 }
 0x571   : > { %v5215_v20 = vpack.c.bf16 %v5125_v18, %v5124_v28  ;;  %v4634_v15 = vadd.f32 %v4633_v26, %v8698_v51  ;;  %v4555_v24 = vadd.f32 %v4554_v37, %v8686_v40  ;;  %v438_v26 = vld [vmem:[%s7181_s22 + $0x188] sm:$0xff] }
 0x572   : > { %5304 = vst [vmem:[%s8540_s16 + $0x1f0] sm:$0xff] %v5240_v7  ;;  %v4892_v41 = vunpack.c.l.bf16 %v438_v26  ;;  %v4893_v9 = vunpack.c.h.bf16 %v438_v26 }
 0x573   : > { %5279 = vst [vmem:[%s8540_s16 + $0x128] sm:$0xff] %v5215_v20  ;;  %v4745_v61 = vmax.f32 %v4634_v15, 0.0  ;;  %v4760_v62 = vmax.f32 %v4555_v24, 0.0 }
 0x575   : > { %v5001_v38 = vadd.f32 %v4873_v49, %v4745_v61  ;;  %v5016_v10 = vadd.f32 %v4888_v59, %v4760_v62 }
 0x577   : > { %v5129_v30 = vmax.f32 %v5001_v38, 0.0  ;;  %v5144_v49 = vmax.f32 %v5016_v10, 0.0 }
 0x578   : > { %v4636_v58 = vpop.f32.mrf.mxu0  ;;  %v4557_v8 = vpop.f32.mrf.mxu3 }
 0x579   : > { %v5217_v44 = vpack.c.bf16 %v5129_v30, %v5128_v16  ;;  %v4637_v22 = vadd.f32 %v4636_v58, %v8698_v51  ;;  %v4558_v18 = vadd.f32 %v4557_v8, %v8686_v40  ;;  %v440_v58 = vld [vmem:[%s7181_s22 + $0x198] sm:$0xff] }
 0x57a   : > { %v4896_v4 = vunpack.c.l.bf16 %v440_v58  ;;  %v4897_v27 = vunpack.c.h.bf16 %v440_v58 }
 0x57b   : > { %5281 = vst [vmem:[%s8540_s16 + $0x138] sm:$0xff] %v5217_v44  ;;  %v4749_v13 = vmax.f32 %v4637_v22, 0.0  ;;  %v4764_v54 = vmax.f32 %v4558_v18, 0.0 }
 0x57d   : > { %v5005_v12 = vadd.f32 %v4877_v42, %v4749_v13  ;;  %v5020_v35 = vadd.f32 %v4892_v41, %v4764_v54 }
 0x57f   : > { %v5133_v23 = vmax.f32 %v5005_v12, 0.0  ;;  %v5148_v22 = vmax.f32 %v5020_v35, 0.0 }
 0x580   : > { %v4638_v31 = vpop.f32.mrf.mxu0  ;;  %v4559_v43 = vpop.f32.mrf.mxu3 }
 0x581   : > { %v5219_v47 = vpack.c.bf16 %v5133_v23, %v5132_v19  ;;  %v4639_v52 = vadd.f32 %v4638_v31, %v8698_v51  ;;  %v4560_v30 = vadd.f32 %v4559_v43, %v8686_v40 }
 0x583   : > { %5283 = vst [vmem:[%s8540_s16 + $0x148] sm:$0xff] %v5219_v47  ;;  %v4753_v1 = vmax.f32 %v4639_v52, 0.0  ;;  %v4768_v42 = vmax.f32 %v4560_v30, 0.0  ;;  %v442_v47 = vld [vmem:[%s7181_s22 + $0x1a8] sm:$0xff] }
 0x584   : > { %v4900_v3 = vunpack.c.l.bf16 %v442_v47 }
 0x585   : > { %v5009_v63 = vadd.f32 %v4881_v29, %v4753_v1  ;;  %v5024_v2 = vadd.f32 %v4896_v4, %v4768_v42 }
 0x587   : > { %v5137_v17 = vmax.f32 %v5009_v63, 0.0  ;;  %v5152_v29 = vmax.f32 %v5024_v2, 0.0 }
 0x588   : > { %v4641_v0 = vpop.f32.mrf.mxu0  ;;  %v4562_v15 = vpop.f32.mrf.mxu3 }
 0x589   : > { %v5221_v53 = vpack.c.bf16 %v5137_v17, %v5136_v34  ;;  %v4642_v33 = vadd.f32 %v4641_v0, %v8698_v51  ;;  %v4563_v23 = vadd.f32 %v4562_v15, %v8686_v40  ;;  %v4901_v34 = vunpack.c.h.bf16 %v442_v47 }
 0x58b   : > { %5285 = vst [vmem:[%s8540_s16 + $0x158] sm:$0xff] %v5221_v53  ;;  %v4757_v50 = vmax.f32 %v4642_v33, 0.0  ;;  %v4772_v8 = vmax.f32 %v4563_v23, 0.0  ;;  %v444_v53 = vld [vmem:[%s7181_s22 + $0x1b8] sm:$0xff] }
 0x58c   : > { %v4904_v24 = vunpack.c.l.bf16 %v444_v53 }
 0x58d   : > { %v5013_v56 = vadd.f32 %v4885_v39, %v4757_v50  ;;  %v5028_v21 = vadd.f32 %v4900_v3, %v4772_v8 }
 0x58f   : > { %v5141_v55 = vmax.f32 %v5013_v56, 0.0  ;;  %v5156_v39 = vmax.f32 %v5028_v21, 0.0 }
 0x590   : > { %v4643_v6 = vpop.f32.mrf.mxu0  ;;  %v4564_v13 = vpop.f32.mrf.mxu3 }
 0x591   : > { %v5223_v48 = vpack.c.bf16 %v5141_v55, %v5140_v36  ;;  %v4644_v28 = vadd.f32 %v4643_v6, %v8698_v51  ;;  %v4565_v17 = vadd.f32 %v4564_v13, %v8686_v40  ;;  %v4905_v36 = vunpack.c.h.bf16 %v444_v53  ;;  %v446_v6 = vld [vmem:[%s7181_s22 + $0x1c8] sm:$0xff] }
 0x592   : > { %v4908_v18 = vunpack.c.l.bf16 %v446_v6 }
 0x593   : > { %5287 = vst [vmem:[%s8540_s16 + $0x168] sm:$0xff] %v5223_v48  ;;  %v4761_v7 = vmax.f32 %v4644_v28, 0.0  ;;  %v4776_v14 = vmax.f32 %v4565_v17, 0.0 }
 0x595   : > { %v5017_v20 = vadd.f32 %v4889_v11, %v4761_v7  ;;  %v5032_v62 = vadd.f32 %v4904_v24, %v4776_v14 }
 0x597   : > { %v5145_v61 = vmax.f32 %v5017_v20, 0.0  ;;  %v5160_v11 = vmax.f32 %v5032_v62, 0.0 }
 0x598   : > { %v4646_v57 = vpop.f32.mrf.mxu0  ;;  %v4567_v25 = vpop.f32.mrf.mxu3 }
 0x599   : > { %v5225_v38 = vpack.c.bf16 %v5145_v61, %v5144_v49  ;;  %v4647_v16 = vadd.f32 %v4646_v57, %v8698_v51  ;;  %v4568_v59 = vadd.f32 %v4567_v25, %v8686_v40  ;;  %v4909_v49 = vunpack.c.h.bf16 %v446_v6  ;;  %v448_v57 = vld [vmem:[%s7181_s22 + $0x1d8] sm:$0xff] }
 0x59a   : > { %v4912_v30 = vunpack.c.l.bf16 %v448_v57  ;;  %v4913_v42 = vunpack.c.h.bf16 %v448_v57 }
 0x59b   : > { %5289 = vst [vmem:[%s8540_s16 + $0x178] sm:$0xff] %v5225_v38  ;;  %v4765_v37 = vmax.f32 %v4647_v16, 0.0  ;;  %v4780_v10 = vmax.f32 %v4568_v59, 0.0 }
 0x59d   : > { %v5021_v44 = vadd.f32 %v4893_v9, %v4765_v37  ;;  %v5036_v54 = vadd.f32 %v4908_v18, %v4780_v10 }
 0x59f   : > { %v5149_v45 = vmax.f32 %v5021_v44, 0.0  ;;  %v5164_v9 = vmax.f32 %v5036_v54, 0.0 }
 0x5a0   : > { %v4648_v32 = vpop.f32.mrf.mxu0  ;;  %v4569_v48 = vpop.f32.mrf.mxu3 }
 0x5a1   : > { %v5227_v12 = vpack.c.bf16 %v5149_v45, %v5148_v22  ;;  %v4649_v19 = vadd.f32 %v4648_v32, %v8698_v51  ;;  %v4570_v41 = vadd.f32 %v4569_v48, %v8686_v40  ;;  %v450_v32 = vld [vmem:[%s7181_s22 + $0x1e8] sm:$0xff] }
 0x5a2   : > { %v4916_v2 = vunpack.c.l.bf16 %v450_v32  ;;  %v4917_v8 = vunpack.c.h.bf16 %v450_v32 }
 0x5a3   : > { %5291 = vst [vmem:[%s8540_s16 + $0x188] sm:$0xff] %v5227_v12  ;;  %v4769_v31 = vmax.f32 %v4649_v19, 0.0  ;;  %v4784_v35 = vmax.f32 %v4570_v41, 0.0 }
 0x5a5   : > { %v5025_v52 = vadd.f32 %v4897_v27, %v4769_v31  ;;  %v5040_v4 = vadd.f32 %v4912_v30, %v4784_v35 }
 0x5a7   : > { %v5153_v60 = vmax.f32 %v5025_v52, 0.0  ;;  %v5168_v19 = vmax.f32 %v5040_v4, 0.0 }
 0x5a8   : > { %v4651_v1 = vpop.f32.mrf.mxu0  ;;  %v4572_v16 = vpop.f32.mrf.mxu3 }
 0x5a9   : > { %v5229_v46 = vpack.c.bf16 %v5153_v60, %v5152_v29  ;;  %v4652_v63 = vadd.f32 %v4651_v1, %v8698_v51  ;;  %v4573_v45 = vadd.f32 %v4572_v16, %v8686_v40 }
 0x5ab   : > { %5293 = vst [vmem:[%s8540_s16 + $0x198] sm:$0xff] %v5229_v46  ;;  %v4773_v0 = vmax.f32 %v4652_v63, 0.0  ;;  %v4788_v27 = vmax.f32 %v4573_v45, 0.0  ;;  %v452_v46 = vld [vmem:[%s7181_s22 + $0x1f8] sm:$0xff] }
 0x5ac   : > { %v4920_v21 = vunpack.c.l.bf16 %v452_v46 }
 0x5ad   : > { %v5029_v33 = vadd.f32 %v4901_v34, %v4773_v0  ;;  %v5044_v3 = vadd.f32 %v4916_v2, %v4788_v27 }
 0x5af   : > { %v5157_v50 = vmax.f32 %v5029_v33, 0.0  ;;  %v5172_v34 = vmax.f32 %v5044_v3, 0.0 }
 0x5b0   : > { %v4653_v5 = vpop.f32.mrf.mxu0  ;;  %v4574_v31 = vpop.f32.mrf.mxu3 }
 0x5b1   : > { %v5231_v43 = vpack.c.bf16 %v5157_v50, %v5156_v39  ;;  %v4654_v56 = vadd.f32 %v4653_v5, %v8698_v51  ;;  %v4575_v60 = vadd.f32 %v4574_v31, %v8686_v40  ;;  %v4921_v39 = vunpack.c.h.bf16 %v452_v46 }
 0x5b3   : > { %5295 = vst [vmem:[%s8540_s16 + $0x1a8] sm:$0xff] %v5231_v43  ;;  %v4777_v55 = vmax.f32 %v4654_v56, 0.0  ;;  %v4792_v25 = vmax.f32 %v4575_v60, 0.0 }
 0x5b5   : > { %v5033_v28 = vadd.f32 %v4905_v36, %v4777_v55  ;;  %v5048_v40 = vadd.f32 %v4920_v21, %v4792_v25 }
 0x5b7   : > { %v5161_v7 = vmax.f32 %v5033_v28, 0.0  ;;  %v5176_v50 = vmax.f32 %v5048_v40, 0.0 }
 0x5b8   : > { %v4656_v26 = vpop.f32.mrf.mxu0 }
 0x5b9   : > { %v5233_v20 = vpack.c.bf16 %v5161_v7, %v5160_v11  ;;  %v4657_v15 = vadd.f32 %v4656_v26, %v8698_v51 }
 0x5bb   : > { %5297 = vst [vmem:[%s8540_s16 + $0x1b8] sm:$0xff] %v5233_v20  ;;  %v4781_v61 = vmax.f32 %v4657_v15, 0.0 }
 0x5bd   : > { %v5037_v38 = vadd.f32 %v4909_v49, %v4781_v61 }
 0x5bf   : > { %v5165_v37 = vmax.f32 %v5037_v38, 0.0 }
 0x5c0   : > { %v4658_v58 = vpop.f32.mrf.mxu0 }
 0x5c1   : > { %v5235_v44 = vpack.c.bf16 %v5165_v37, %v5164_v9  ;;  %v4659_v22 = vadd.f32 %v4658_v58, %v8698_v51 }
 0x5c3   : > { %5299 = vst [vmem:[%s8540_s16 + $0x1c8] sm:$0xff] %v5235_v44  ;;  %v4785_v13 = vmax.f32 %v4659_v22, 0.0 }
 0x5c5   : > { %v5041_v12 = vadd.f32 %v4913_v42, %v4785_v13 }
 0x5c7   : > { %v5169_v23 = vmax.f32 %v5041_v12, 0.0 }
 0x5c8   : > { %v4661_v47 = vpop.f32.mrf.mxu0 }
 0x5c9   : > { %v5237_v52 = vpack.c.bf16 %v5169_v23, %v5168_v19  ;;  %v4662_v29 = vadd.f32 %v4661_v47, %v8698_v51 }
 0x5cb   : > { %5301 = vst [vmem:[%s8540_s16 + $0x1d8] sm:$0xff] %v5237_v52  ;;  %v4789_v1 = vmax.f32 %v4662_v29, 0.0 }
 0x5cd   : > { %v5045_v63 = vadd.f32 %v4917_v8, %v4789_v1 }
 0x5cf   : > { %v5173_v17 = vmax.f32 %v5045_v63, 0.0 }
 0x5d0   : > { %v4663_v0 = vpop.f32.mrf.mxu0 }
 0x5d1   : > { %v5239_v53 = vpack.c.bf16 %v5173_v17, %v5172_v34  ;;  %v4664_v33 = vadd.f32 %v4663_v0, %v8698_v51 }
 0x5d3   : > { %5303 = vst [vmem:[%s8540_s16 + $0x1e8] sm:$0xff] %v5239_v53  ;;  %v4793_v14 = vmax.f32 %v4664_v33, 0.0 }
 0x5d5   : > { %v5049_v24 = vadd.f32 %v4921_v39, %v4793_v14 }
 0x5d7   : > { %v5177_v5 = vmax.f32 %v5049_v24, 0.0 }
 0x5d9   : > { %v5241_v43 = vpack.c.bf16 %v5177_v5, %v5176_v50 }
 0x5db   : > { %5305 = vst [vmem:[%s8540_s16 + $0x1f8] sm:$0xff] %v5241_v43 }
 0x5dc   : > { %6939 = shalt.err (!%p6936_p0)
}
 0x5dd   : > { %s7013_s14 = smov 256   ;;  %s7014_s15 = smov 16  }
 0x5de   : > { %6657 = dma.vmem_to_hbm [thread:$0]  (%p7152_p2), %s5323_s12, 8192, %s5325_s19, %s5307_s27, %s7013_s14, %s7013_s14, %s7014_s15  }
 0x5df PF: > { %s5339_s13 = sand.u32 1, %s6982_s24   ;;  %p6677_p4 = pnand %p5460_p10, %p7102_p5 }
 0x5e0   : > { %s5340_s16 = scalar_lea.sflag [#allocation5], %s5339_s13 }
 0x5e1   : > { %p6678_p6 = pneg %p6677_p4 }
 0x5e3   : > { %6977 = dma.done.wait (%p6678_p6), %s5340_s16, 8192  }
 0x5e4   : > { %6979 = vsyncadd (%p6678_p6), %s5340_s16, 4294959104  ;;  %s25_s29 = sadd.s32 1, %s7002_s29   ;;  %s9201_s24 = smov %s6986_s25 }
 0x5e5   : > { %p22_p8 = scmp.ge.s32.totalorder %s25_s29, 4   ;;  %s9202_s25 = smov %s6990_s26 }
 0x5e6   : > { %s9203_s26 = smov %s7162_s23  ;;  %s9204_s27 = smov %s6998_s28 }
 0x5e7   : > { %s9205_s28 = smov %s9207_s20  ;;  %24 = sbr.rel (!%p22_p8) target bundleno = 13 (0xd), region = 119 }
 0x5ec   :  { %5346 = vsyncpa [#allocation4], 1 }
 0x5ed   :  { %5348 = vsyncpa [#allocation4 + $0x1], 1 }
 0x5ee   :  { %5349 = vsyncpa [#allocation7], 1 }
 0x5ef   :  { %5350 = vsyncpa [#allocation10], 1 }
 0x5f0   :  { %5351 = vsyncpa [#allocation5], 1 }
 0x5f1   :  { %5353 = vsyncpa [#allocation5 + $0x1], 1 }

</bundles_post_ra>
